<compile_context>
chip_gen: v7x
topology: tpu7x:2x2x1
jax: 0.10.0
libtpu: 0.0.40
codegen_flags: <defaults>
</compile_context>

<pallas_src>
import math

import jax
import jax.numpy as jnp
import numpy as np
from jax.experimental import pallas as pl
from jax.experimental.pallas import tpu as pltpu


def _make_resblock_kernel(h, w, cin, cout, dilation):
    eps = 1e-5
    d = dilation

    def _conv3x3(pad_ref, w_ref, c_out):
        # pad_ref: (h+2d, w+2d, c_in) zero-padded input, w_ref: (9, c_in, c_out).
        acc = jnp.zeros((h * w, c_out), jnp.float32)
        for ky in range(3):
            for kx in range(3):
                win = pad_ref[pl.ds(ky * d, h), pl.ds(kx * d, w), :]
                acc = acc + jnp.dot(win.reshape(h * w, win.shape[-1]),
                                    w_ref[ky * 3 + kx],
                                    preferred_element_type=jnp.float32)
        return acc  # (h*w, c_out)

    def _instance_norm_relu(y2d):
        # y2d: (h*w, c). InstanceNorm2d(affine=False): per-channel mean / biased
        # variance over the spatial axis, then ReLU.
        mean = jnp.mean(y2d, axis=0, keepdims=True)
        cen = y2d - mean
        var = jnp.mean(cen * cen, axis=0, keepdims=True)
        return jnp.maximum(cen * jax.lax.rsqrt(var + eps), 0.0)

    def kernel(x_ref, w1_ref, w2_ref, o_ref, xpad_ref, ypad_ref):
        x = x_ref[0]                                   # (h, w, cin)

        # conv1 -> norm1 -> relu
        xpad_ref[...] = jnp.zeros_like(xpad_ref)
        xpad_ref[pl.ds(d, h), pl.ds(d, w), :] = x
        y = _instance_norm_relu(_conv3x3(xpad_ref, w1_ref, cout))

        # conv2 -> norm2 -> relu
        ypad_ref[...] = jnp.zeros_like(ypad_ref)
        ypad_ref[pl.ds(d, h), pl.ds(d, w), :] = y.reshape(h, w, cout)
        y = _instance_norm_relu(_conv3x3(ypad_ref, w2_ref, cout))

        # identity skip (stride=1, in_planes == planes) + final relu
        o_ref[0] = jnp.maximum(x + y.reshape(h, w, cout), 0.0)

    return kernel


def residual_block(x_nchw, conv1_w, conv2_w, dilation=1):
    """JAX/Pallas equivalent of ResidualBlock.forward (stride=1, in_planes==planes).

    x_nchw:  (B, Cin, H, W) float32 (PyTorch NCHW input)
    conv1_w: (C, Cin, 3, 3) float32 (PyTorch Conv2d weight layout, bias=False)
    conv2_w: (C, C, 3, 3)   float32
    Returns  (B, C, H, W)   float32 (NCHW, like the PyTorch module).
    """
    b, cin, h, w = x_nchw.shape
    c = conv1_w.shape[0]
    if conv1_w.shape != (c, cin, 3, 3) or conv2_w.shape != (c, c, 3, 3):
        raise ValueError("unexpected conv weight shapes")
    if cin != c:
        # TODO(synk): downsample branch (1x1 strided conv + norm3) not implemented.
        raise NotImplementedError("only the identity-skip path (in_planes == planes, stride=1)")
    d = int(dilation)

    # NCHW -> NHWC so channels are on the lane axis inside the kernel.
    x_nhwc = jnp.transpose(x_nchw, (0, 2, 3, 1)).astype(jnp.float32)
    # (Cout, Cin, kh, kw) -> (kh*kw, Cin, Cout) for in-kernel (Cin, Cout) matmuls.
    w1k = jnp.transpose(conv1_w, (2, 3, 1, 0)).reshape(9, cin, c).astype(jnp.float32)
    w2k = jnp.transpose(conv2_w, (2, 3, 1, 0)).reshape(9, c, c).astype(jnp.float32)

    kernel = _make_resblock_kernel(h, w, cin, c, d)

    out_nhwc = pl.pallas_call(
        kernel,
        out_shape=jax.ShapeDtypeStruct((b, h, w, c), jnp.float32),
        grid=(b,),
        in_specs=[
            pl.BlockSpec((1, h, w, cin), lambda bi: (bi, 0, 0, 0)),
            pl.BlockSpec((9, cin, c), lambda bi: (0, 0, 0)),
            pl.BlockSpec((9, c, c), lambda bi: (0, 0, 0)),
        ],
        out_specs=pl.BlockSpec((1, h, w, c), lambda bi: (bi, 0, 0, 0)),
        scratch_shapes=[
            pltpu.VMEM((h + 2 * d, w + 2 * d, cin), jnp.float32),
            pltpu.VMEM((h + 2 * d, w + 2 * d, c), jnp.float32),
        ],
        compiler_params=pltpu.CompilerParams(
            dimension_semantics=("parallel",)),
    )(x_nhwc, w1k, w2k)

    # NHWC -> NCHW to match the PyTorch output layout. In a real pipeline keep
    # NHWC end-to-end to avoid this extra HBM round trip.
    return jnp.transpose(out_nhwc, (0, 3, 1, 2))


def _reference_numpy(x, w1, w2, dilation=1, eps=1e-5):
    """float64 numpy transliteration of the PyTorch forward, for verification."""
    d = dilation

    def conv3x3(x, w):
        B, Cin, H, W = x.shape
        Cout = w.shape[0]
        xp = np.zeros((B, Cin, H + 2 * d, W + 2 * d), dtype=np.float64)
        xp[:, :, d:d + H, d:d + W] = x
        out = np.zeros((B, Cout, H, W), dtype=np.float64)
        for ky in range(3):
            for kx in range(3):
                patch = xp[:, :, ky * d:ky * d + H, kx * d:kx * d + W]
                out += np.einsum("bihw,oi->bohw", patch, w[:, :, ky, kx])
        return out

    def inorm_relu(y):
        mean = y.mean(axis=(2, 3), keepdims=True)
        var = y.var(axis=(2, 3), keepdims=True)  # biased, like InstanceNorm2d
        return np.maximum((y - mean) / np.sqrt(var + eps), 0.0)

    y = inorm_relu(conv3x3(x, w1))
    y = inorm_relu(conv3x3(y, w2))
    return np.maximum(x + y, 0.0)


if __name__ == "__main__":
    key = jax.random.PRNGKey(0)
    k1, k2, k3 = jax.random.split(key, 3)

    B, C, H, W = 2, 32, 16, 16          # in_planes == planes, stride=1, dilation=1
    x = jax.random.normal(k1, (B, C, H, W), dtype=jnp.float32)
    scale = 1.0 / math.sqrt(9 * C)
    w1 = jax.random.normal(k2, (C, C, 3, 3), dtype=jnp.float32) * scale
    w2 = jax.random.normal(k3, (C, C, 3, 3), dtype=jnp.float32) * scale

    out = residual_block(x, w1, w2, dilation=1)
    out = jax.block_until_ready(out)
    assert out.shape == (B, C, H, W), out.shape

    ref = _reference_numpy(np.asarray(x, np.float64),
                           np.asarray(w1, np.float64),
                           np.asarray(w2, np.float64))
    np.testing.assert_allclose(np.asarray(out), ref, rtol=1e-2, atol=1e-2)

    print("KERNEL_OK")
</pallas_src>

<mosaic_0001>
module attributes {stable_mosaic.version = 11 : i64} {
  func.func @kernel(%arg0: i32, %arg1: memref<1x16x16x32xf32, #tpu.memory_space<vmem>>, %arg2: memref<9x32x32xf32, #tpu.memory_space<vmem>>, %arg3: memref<9x32x32xf32, #tpu.memory_space<vmem>>, %arg4: memref<1x16x16x32xf32, #tpu.memory_space<vmem>>, %arg5: memref<18x18x32xf32, #tpu.memory_space<vmem>>, %arg6: memref<18x18x32xf32, #tpu.memory_space<vmem>>) attributes {dimension_semantics = [#tpu.dimension_semantics<parallel>], iteration_bounds = array<i64: 2>, scalar_prefetch = 0 : i64, scratch_operands = 2 : i64, tpu.core_type = #tpu.core_type<tc>, window_params = [{transform_indices = @transform_0, window_bounds = array<i64: 1, 16, 16, 32>}, {pipeline_mode = #tpu.pipeline_mode<synchronous>, transform_indices = @transform_1, window_bounds = array<i64: 9, 32, 32>}, {pipeline_mode = #tpu.pipeline_mode<synchronous>, transform_indices = @transform_2, window_bounds = array<i64: 9, 32, 32>}, {transform_indices = @transform_3, window_bounds = array<i64: 1, 16, 16, 32>}]} {
    %c0 = arith.constant 0 : index
    %c0_0 = arith.constant 0 : index
    %c0_1 = arith.constant 0 : index
    %c0_2 = arith.constant 0 : index
    %0 = vector.load %arg1[%c0, %c0_0, %c0_1, %c0_2] : memref<1x16x16x32xf32, #tpu.memory_space<vmem>>, vector<1x16x16x32xf32>
    %1 = vector.shape_cast %0 : vector<1x16x16x32xf32> to vector<16x16x32xf32>
    %cst = arith.constant 0.000000e+00 : f32
    %2 = vector.broadcast %cst : f32 to vector<18x18x32xf32>
    %c0_3 = arith.constant 0 : index
    %c0_4 = arith.constant 0 : index
    %c0_5 = arith.constant 0 : index
    %3 = vector.load %arg5[%c0_3, %c0_4, %c0_5] : memref<18x18x32xf32, #tpu.memory_space<vmem>>, vector<18x18x32xf32>
    tpu.vector_store %arg5[%c0_3, %c0_4, %c0_5], %2 {strides = array<i32>} : memref<18x18x32xf32, #tpu.memory_space<vmem>>, vector<18x18x32xf32>,
    %c1 = arith.constant 1 : index
    %c1_6 = arith.constant 1 : index
    %c0_7 = arith.constant 0 : index
    %4 = vector.load %arg5[%c1, %c1_6, %c0_7] : memref<18x18x32xf32, #tpu.memory_space<vmem>>, vector<16x16x32xf32>
    tpu.vector_store %arg5[%c1, %c1_6, %c0_7], %1 {strides = array<i32>} : memref<18x18x32xf32, #tpu.memory_space<vmem>>, vector<16x16x32xf32>,
    %cst_8 = arith.constant 0.000000e+00 : f32
    %5 = vector.broadcast %cst_8 : f32 to vector<256x32xf32>
    %c0_9 = arith.constant 0 : index
    %c0_10 = arith.constant 0 : index
    %c0_11 = arith.constant 0 : index
    %6 = vector.load %arg5[%c0_9, %c0_10, %c0_11] : memref<18x18x32xf32, #tpu.memory_space<vmem>>, vector<16x16x32xf32>
    %7 = vector.shape_cast %6 : vector<16x16x32xf32> to vector<256x32xf32>
    %c0_12 = arith.constant 0 : index
    %c0_13 = arith.constant 0 : index
    %c0_14 = arith.constant 0 : index
    %8 = vector.load %arg2[%c0_12, %c0_13, %c0_14] : memref<9x32x32xf32, #tpu.memory_space<vmem>>, vector<1x32x32xf32>
    %9 = vector.shape_cast %8 : vector<1x32x32xf32> to vector<32x32xf32>
    %cst_15 = arith.constant dense<0.000000e+00> : vector<256x32xf32>
    %10 = tpu.matmul %7, %9, %cst_15 {dimension_numbers = #tpu.dot_dimension_numbers<[1], [0], [0], [1], [0, 0, 1, 1], [], []>} : vector<256x32xf32>, vector<32x32xf32>, vector<256x32xf32> -> vector<256x32xf32>
    %11 = arith.addf %5, %10 : vector<256x32xf32>
    %c0_16 = arith.constant 0 : index
    %c1_17 = arith.constant 1 : index
    %c0_18 = arith.constant 0 : index
    %12 = vector.load %arg5[%c0_16, %c1_17, %c0_18] : memref<18x18x32xf32, #tpu.memory_space<vmem>>, vector<16x16x32xf32>
    %13 = vector.shape_cast %12 : vector<16x16x32xf32> to vector<256x32xf32>
    %c1_19 = arith.constant 1 : index
    %c0_20 = arith.constant 0 : index
    %c0_21 = arith.constant 0 : index
    %14 = vector.load %arg2[%c1_19, %c0_20, %c0_21] : memref<9x32x32xf32, #tpu.memory_space<vmem>>, vector<1x32x32xf32>
    %15 = vector.shape_cast %14 : vector<1x32x32xf32> to vector<32x32xf32>
    %cst_22 = arith.constant dense<0.000000e+00> : vector<256x32xf32>
    %16 = tpu.matmul %13, %15, %cst_22 {dimension_numbers = #tpu.dot_dimension_numbers<[1], [0], [0], [1], [0, 0, 1, 1], [], []>} : vector<256x32xf32>, vector<32x32xf32>, vector<256x32xf32> -> vector<256x32xf32>
    %17 = arith.addf %11, %16 : vector<256x32xf32>
    %c0_23 = arith.constant 0 : index
    %c2 = arith.constant 2 : index
    %c0_24 = arith.constant 0 : index
    %18 = vector.load %arg5[%c0_23, %c2, %c0_24] : memref<18x18x32xf32, #tpu.memory_space<vmem>>, vector<16x16x32xf32>
    %19 = vector.shape_cast %18 : vector<16x16x32xf32> to vector<256x32xf32>
    %c2_25 = arith.constant 2 : index
    %c0_26 = arith.constant 0 : index
    %c0_27 = arith.constant 0 : index
    %20 = vector.load %arg2[%c2_25, %c0_26, %c0_27] : memref<9x32x32xf32, #tpu.memory_space<vmem>>, vector<1x32x32xf32>
    %21 = vector.shape_cast %20 : vector<1x32x32xf32> to vector<32x32xf32>
    %cst_28 = arith.constant dense<0.000000e+00> : vector<256x32xf32>
    %22 = tpu.matmul %19, %21, %cst_28 {dimension_numbers = #tpu.dot_dimension_numbers<[1], [0], [0], [1], [0, 0, 1, 1], [], []>} : vector<256x32xf32>, vector<32x32xf32>, vector<256x32xf32> -> vector<256x32xf32>
    %23 = arith.addf %17, %22 : vector<256x32xf32>
    %c1_29 = arith.constant 1 : index
    %c0_30 = arith.constant 0 : index
    %c0_31 = arith.constant 0 : index
    %24 = vector.load %arg5[%c1_29, %c0_30, %c0_31] : memref<18x18x32xf32, #tpu.memory_space<vmem>>, vector<16x16x32xf32>
    %25 = vector.shape_cast %24 : vector<16x16x32xf32> to vector<256x32xf32>
    %c3 = arith.constant 3 : index
    %c0_32 = arith.constant 0 : index
    %c0_33 = arith.constant 0 : index
    %26 = vector.load %arg2[%c3, %c0_32, %c0_33] : memref<9x32x32xf32, #tpu.memory_space<vmem>>, vector<1x32x32xf32>
    %27 = vector.shape_cast %26 : vector<1x32x32xf32> to vector<32x32xf32>
    %cst_34 = arith.constant dense<0.000000e+00> : vector<256x32xf32>
    %28 = tpu.matmul %25, %27, %cst_34 {dimension_numbers = #tpu.dot_dimension_numbers<[1], [0], [0], [1], [0, 0, 1, 1], [], []>} : vector<256x32xf32>, vector<32x32xf32>, vector<256x32xf32> -> vector<256x32xf32>
    %29 = arith.addf %23, %28 : vector<256x32xf32>
    %c1_35 = arith.constant 1 : index
    %c1_36 = arith.constant 1 : index
    %c0_37 = arith.constant 0 : index
    %30 = vector.load %arg5[%c1_35, %c1_36, %c0_37] : memref<18x18x32xf32, #tpu.memory_space<vmem>>, vector<16x16x32xf32>
    %31 = vector.shape_cast %30 : vector<16x16x32xf32> to vector<256x32xf32>
    %c4 = arith.constant 4 : index
    %c0_38 = arith.constant 0 : index
    %c0_39 = arith.constant 0 : index
    %32 = vector.load %arg2[%c4, %c0_38, %c0_39] : memref<9x32x32xf32, #tpu.memory_space<vmem>>, vector<1x32x32xf32>
    %33 = vector.shape_cast %32 : vector<1x32x32xf32> to vector<32x32xf32>
    %cst_40 = arith.constant dense<0.000000e+00> : vector<256x32xf32>
    %34 = tpu.matmul %31, %33, %cst_40 {dimension_numbers = #tpu.dot_dimension_numbers<[1], [0], [0], [1], [0, 0, 1, 1], [], []>} : vector<256x32xf32>, vector<32x32xf32>, vector<256x32xf32> -> vector<256x32xf32>
    %35 = arith.addf %29, %34 : vector<256x32xf32>
    %c1_41 = arith.constant 1 : index
    %c2_42 = arith.constant 2 : index
    %c0_43 = arith.constant 0 : index
    %36 = vector.load %arg5[%c1_41, %c2_42, %c0_43] : memref<18x18x32xf32, #tpu.memory_space<vmem>>, vector<16x16x32xf32>
    %37 = vector.shape_cast %36 : vector<16x16x32xf32> to vector<256x32xf32>
    %c5 = arith.constant 5 : index
    %c0_44 = arith.constant 0 : index
    %c0_45 = arith.constant 0 : index
    %38 = vector.load %arg2[%c5, %c0_44, %c0_45] : memref<9x32x32xf32, #tpu.memory_space<vmem>>, vector<1x32x32xf32>
    %39 = vector.shape_cast %38 : vector<1x32x32xf32> to vector<32x32xf32>
    %cst_46 = arith.constant dense<0.000000e+00> : vector<256x32xf32>
    %40 = tpu.matmul %37, %39, %cst_46 {dimension_numbers = #tpu.dot_dimension_numbers<[1], [0], [0], [1], [0, 0, 1, 1], [], []>} : vector<256x32xf32>, vector<32x32xf32>, vector<256x32xf32> -> vector<256x32xf32>
    %41 = arith.addf %35, %40 : vector<256x32xf32>
    %c2_47 = arith.constant 2 : index
    %c0_48 = arith.constant 0 : index
    %c0_49 = arith.constant 0 : index
    %42 = vector.load %arg5[%c2_47, %c0_48, %c0_49] : memref<18x18x32xf32, #tpu.memory_space<vmem>>, vector<16x16x32xf32>
    %43 = vector.shape_cast %42 : vector<16x16x32xf32> to vector<256x32xf32>
    %c6 = arith.constant 6 : index
    %c0_50 = arith.constant 0 : index
    %c0_51 = arith.constant 0 : index
    %44 = vector.load %arg2[%c6, %c0_50, %c0_51] : memref<9x32x32xf32, #tpu.memory_space<vmem>>, vector<1x32x32xf32>
    %45 = vector.shape_cast %44 : vector<1x32x32xf32> to vector<32x32xf32>
    %cst_52 = arith.constant dense<0.000000e+00> : vector<256x32xf32>
    %46 = tpu.matmul %43, %45, %cst_52 {dimension_numbers = #tpu.dot_dimension_numbers<[1], [0], [0], [1], [0, 0, 1, 1], [], []>} : vector<256x32xf32>, vector<32x32xf32>, vector<256x32xf32> -> vector<256x32xf32>
    %47 = arith.addf %41, %46 : vector<256x32xf32>
    %c2_53 = arith.constant 2 : index
    %c1_54 = arith.constant 1 : index
    %c0_55 = arith.constant 0 : index
    %48 = vector.load %arg5[%c2_53, %c1_54, %c0_55] : memref<18x18x32xf32, #tpu.memory_space<vmem>>, vector<16x16x32xf32>
    %49 = vector.shape_cast %48 : vector<16x16x32xf32> to vector<256x32xf32>
    %c7 = arith.constant 7 : index
    %c0_56 = arith.constant 0 : index
    %c0_57 = arith.constant 0 : index
    %50 = vector.load %arg2[%c7, %c0_56, %c0_57] : memref<9x32x32xf32, #tpu.memory_space<vmem>>, vector<1x32x32xf32>
    %51 = vector.shape_cast %50 : vector<1x32x32xf32> to vector<32x32xf32>
    %cst_58 = arith.constant dense<0.000000e+00> : vector<256x32xf32>
    %52 = tpu.matmul %49, %51, %cst_58 {dimension_numbers = #tpu.dot_dimension_numbers<[1], [0], [0], [1], [0, 0, 1, 1], [], []>} : vector<256x32xf32>, vector<32x32xf32>, vector<256x32xf32> -> vector<256x32xf32>
    %53 = arith.addf %47, %52 : vector<256x32xf32>
    %c2_59 = arith.constant 2 : index
    %c2_60 = arith.constant 2 : index
    %c0_61 = arith.constant 0 : index
    %54 = vector.load %arg5[%c2_59, %c2_60, %c0_61] : memref<18x18x32xf32, #tpu.memory_space<vmem>>, vector<16x16x32xf32>
    %55 = vector.shape_cast %54 : vector<16x16x32xf32> to vector<256x32xf32>
    %c8 = arith.constant 8 : index
    %c0_62 = arith.constant 0 : index
    %c0_63 = arith.constant 0 : index
    %56 = vector.load %arg2[%c8, %c0_62, %c0_63] : memref<9x32x32xf32, #tpu.memory_space<vmem>>, vector<1x32x32xf32>
    %57 = vector.shape_cast %56 : vector<1x32x32xf32> to vector<32x32xf32>
    %cst_64 = arith.constant dense<0.000000e+00> : vector<256x32xf32>
    %58 = tpu.matmul %55, %57, %cst_64 {dimension_numbers = #tpu.dot_dimension_numbers<[1], [0], [0], [1], [0, 0, 1, 1], [], []>} : vector<256x32xf32>, vector<32x32xf32>, vector<256x32xf32> -> vector<256x32xf32>
    %59 = arith.addf %53, %58 : vector<256x32xf32>
    %cst_65 = arith.constant dense<0.000000e+00> : vector<32xf32>
    %60 = vector.multi_reduction <add>, %59, %cst_65 [0] : vector<256x32xf32> to vector<32xf32>
    %61 = vector.shape_cast %60 : vector<32xf32> to vector<1x32xf32>
    %cst_66 = arith.constant 2.560000e+02 : f32
    %62 = vector.broadcast %cst_66 : f32 to vector<1x32xf32>
    %63 = arith.divf %61, %62 : vector<1x32xf32>
    %64 = vector.broadcast %63 : vector<1x32xf32> to vector<256x32xf32>
    %65 = arith.subf %59, %64 : vector<256x32xf32>
    %66 = arith.mulf %65, %65 : vector<256x32xf32>
    %cst_67 = arith.constant dense<0.000000e+00> : vector<32xf32>
    %67 = vector.multi_reduction <add>, %66, %cst_67 [0] : vector<256x32xf32> to vector<32xf32>
    %68 = vector.shape_cast %67 : vector<32xf32> to vector<1x32xf32>
    %cst_68 = arith.constant 2.560000e+02 : f32
    %69 = vector.broadcast %cst_68 : f32 to vector<1x32xf32>
    %70 = arith.divf %68, %69 : vector<1x32xf32>
    %cst_69 = arith.constant 9.99999974E-6 : f32
    %71 = vector.broadcast %cst_69 : f32 to vector<1x32xf32>
    %72 = arith.addf %70, %71 : vector<1x32xf32>
    %73 = math.rsqrt %72 : vector<1x32xf32>
    %74 = vector.broadcast %73 : vector<1x32xf32> to vector<256x32xf32>
    %75 = arith.mulf %65, %74 : vector<256x32xf32>
    %cst_70 = arith.constant 0.000000e+00 : f32
    %76 = vector.broadcast %cst_70 : f32 to vector<256x32xf32>
    %77 = arith.maximumf %75, %76 : vector<256x32xf32>
    %cst_71 = arith.constant 0.000000e+00 : f32
    %78 = vector.broadcast %cst_71 : f32 to vector<18x18x32xf32>
    %c0_72 = arith.constant 0 : index
    %c0_73 = arith.constant 0 : index
    %c0_74 = arith.constant 0 : index
    %79 = vector.load %arg6[%c0_72, %c0_73, %c0_74] : memref<18x18x32xf32, #tpu.memory_space<vmem>>, vector<18x18x32xf32>
    tpu.vector_store %arg6[%c0_72, %c0_73, %c0_74], %78 {strides = array<i32>} : memref<18x18x32xf32, #tpu.memory_space<vmem>>, vector<18x18x32xf32>,
    %80 = vector.shape_cast %77 : vector<256x32xf32> to vector<16x16x32xf32>
    %c1_75 = arith.constant 1 : index
    %c1_76 = arith.constant 1 : index
    %c0_77 = arith.constant 0 : index
    %81 = vector.load %arg6[%c1_75, %c1_76, %c0_77] : memref<18x18x32xf32, #tpu.memory_space<vmem>>, vector<16x16x32xf32>
    tpu.vector_store %arg6[%c1_75, %c1_76, %c0_77], %80 {strides = array<i32>} : memref<18x18x32xf32, #tpu.memory_space<vmem>>, vector<16x16x32xf32>,
    %cst_78 = arith.constant 0.000000e+00 : f32
    %82 = vector.broadcast %cst_78 : f32 to vector<256x32xf32>
    %c0_79 = arith.constant 0 : index
    %c0_80 = arith.constant 0 : index
    %c0_81 = arith.constant 0 : index
    %83 = vector.load %arg6[%c0_79, %c0_80, %c0_81] : memref<18x18x32xf32, #tpu.memory_space<vmem>>, vector<16x16x32xf32>
    %84 = vector.shape_cast %83 : vector<16x16x32xf32> to vector<256x32xf32>
    %c0_82 = arith.constant 0 : index
    %c0_83 = arith.constant 0 : index
    %c0_84 = arith.constant 0 : index
    %85 = vector.load %arg3[%c0_82, %c0_83, %c0_84] : memref<9x32x32xf32, #tpu.memory_space<vmem>>, vector<1x32x32xf32>
    %86 = vector.shape_cast %85 : vector<1x32x32xf32> to vector<32x32xf32>
    %cst_85 = arith.constant dense<0.000000e+00> : vector<256x32xf32>
    %87 = tpu.matmul %84, %86, %cst_85 {dimension_numbers = #tpu.dot_dimension_numbers<[1], [0], [0], [1], [0, 0, 1, 1], [], []>} : vector<256x32xf32>, vector<32x32xf32>, vector<256x32xf32> -> vector<256x32xf32>
    %88 = arith.addf %82, %87 : vector<256x32xf32>
    %c0_86 = arith.constant 0 : index
    %c1_87 = arith.constant 1 : index
    %c0_88 = arith.constant 0 : index
    %89 = vector.load %arg6[%c0_86, %c1_87, %c0_88] : memref<18x18x32xf32, #tpu.memory_space<vmem>>, vector<16x16x32xf32>
    %90 = vector.shape_cast %89 : vector<16x16x32xf32> to vector<256x32xf32>
    %c1_89 = arith.constant 1 : index
    %c0_90 = arith.constant 0 : index
    %c0_91 = arith.constant 0 : index
    %91 = vector.load %arg3[%c1_89, %c0_90, %c0_91] : memref<9x32x32xf32, #tpu.memory_space<vmem>>, vector<1x32x32xf32>
    %92 = vector.shape_cast %91 : vector<1x32x32xf32> to vector<32x32xf32>
    %cst_92 = arith.constant dense<0.000000e+00> : vector<256x32xf32>
    %93 = tpu.matmul %90, %92, %cst_92 {dimension_numbers = #tpu.dot_dimension_numbers<[1], [0], [0], [1], [0, 0, 1, 1], [], []>} : vector<256x32xf32>, vector<32x32xf32>, vector<256x32xf32> -> vector<256x32xf32>
    %94 = arith.addf %88, %93 : vector<256x32xf32>
    %c0_93 = arith.constant 0 : index
    %c2_94 = arith.constant 2 : index
    %c0_95 = arith.constant 0 : index
    %95 = vector.load %arg6[%c0_93, %c2_94, %c0_95] : memref<18x18x32xf32, #tpu.memory_space<vmem>>, vector<16x16x32xf32>
    %96 = vector.shape_cast %95 : vector<16x16x32xf32> to vector<256x32xf32>
    %c2_96 = arith.constant 2 : index
    %c0_97 = arith.constant 0 : index
    %c0_98 = arith.constant 0 : index
    %97 = vector.load %arg3[%c2_96, %c0_97, %c0_98] : memref<9x32x32xf32, #tpu.memory_space<vmem>>, vector<1x32x32xf32>
    %98 = vector.shape_cast %97 : vector<1x32x32xf32> to vector<32x32xf32>
    %cst_99 = arith.constant dense<0.000000e+00> : vector<256x32xf32>
    %99 = tpu.matmul %96, %98, %cst_99 {dimension_numbers = #tpu.dot_dimension_numbers<[1], [0], [0], [1], [0, 0, 1, 1], [], []>} : vector<256x32xf32>, vector<32x32xf32>, vector<256x32xf32> -> vector<256x32xf32>
    %100 = arith.addf %94, %99 : vector<256x32xf32>
    %c1_100 = arith.constant 1 : index
    %c0_101 = arith.constant 0 : index
    %c0_102 = arith.constant 0 : index
    %101 = vector.load %arg6[%c1_100, %c0_101, %c0_102] : memref<18x18x32xf32, #tpu.memory_space<vmem>>, vector<16x16x32xf32>
    %102 = vector.shape_cast %101 : vector<16x16x32xf32> to vector<256x32xf32>
    %c3_103 = arith.constant 3 : index
    %c0_104 = arith.constant 0 : index
    %c0_105 = arith.constant 0 : index
    %103 = vector.load %arg3[%c3_103, %c0_104, %c0_105] : memref<9x32x32xf32, #tpu.memory_space<vmem>>, vector<1x32x32xf32>
    %104 = vector.shape_cast %103 : vector<1x32x32xf32> to vector<32x32xf32>
    %cst_106 = arith.constant dense<0.000000e+00> : vector<256x32xf32>
    %105 = tpu.matmul %102, %104, %cst_106 {dimension_numbers = #tpu.dot_dimension_numbers<[1], [0], [0], [1], [0, 0, 1, 1], [], []>} : vector<256x32xf32>, vector<32x32xf32>, vector<256x32xf32> -> vector<256x32xf32>
    %106 = arith.addf %100, %105 : vector<256x32xf32>
    %c1_107 = arith.constant 1 : index
    %c1_108 = arith.constant 1 : index
    %c0_109 = arith.constant 0 : index
    %107 = vector.load %arg6[%c1_107, %c1_108, %c0_109] : memref<18x18x32xf32, #tpu.memory_space<vmem>>, vector<16x16x32xf32>
    %108 = vector.shape_cast %107 : vector<16x16x32xf32> to vector<256x32xf32>
    %c4_110 = arith.constant 4 : index
    %c0_111 = arith.constant 0 : index
    %c0_112 = arith.constant 0 : index
    %109 = vector.load %arg3[%c4_110, %c0_111, %c0_112] : memref<9x32x32xf32, #tpu.memory_space<vmem>>, vector<1x32x32xf32>
    %110 = vector.shape_cast %109 : vector<1x32x32xf32> to vector<32x32xf32>
    %cst_113 = arith.constant dense<0.000000e+00> : vector<256x32xf32>
    %111 = tpu.matmul %108, %110, %cst_113 {dimension_numbers = #tpu.dot_dimension_numbers<[1], [0], [0], [1], [0, 0, 1, 1], [], []>} : vector<256x32xf32>, vector<32x32xf32>, vector<256x32xf32> -> vector<256x32xf32>
    %112 = arith.addf %106, %111 : vector<256x32xf32>
    %c1_114 = arith.constant 1 : index
    %c2_115 = arith.constant 2 : index
    %c0_116 = arith.constant 0 : index
    %113 = vector.load %arg6[%c1_114, %c2_115, %c0_116] : memref<18x18x32xf32, #tpu.memory_space<vmem>>, vector<16x16x32xf32>
    %114 = vector.shape_cast %113 : vector<16x16x32xf32> to vector<256x32xf32>
    %c5_117 = arith.constant 5 : index
    %c0_118 = arith.constant 0 : index
    %c0_119 = arith.constant 0 : index
    %115 = vector.load %arg3[%c5_117, %c0_118, %c0_119] : memref<9x32x32xf32, #tpu.memory_space<vmem>>, vector<1x32x32xf32>
    %116 = vector.shape_cast %115 : vector<1x32x32xf32> to vector<32x32xf32>
    %cst_120 = arith.constant dense<0.000000e+00> : vector<256x32xf32>
    %117 = tpu.matmul %114, %116, %cst_120 {dimension_numbers = #tpu.dot_dimension_numbers<[1], [0], [0], [1], [0, 0, 1, 1], [], []>} : vector<256x32xf32>, vector<32x32xf32>, vector<256x32xf32> -> vector<256x32xf32>
    %118 = arith.addf %112, %117 : vector<256x32xf32>
    %c2_121 = arith.constant 2 : index
    %c0_122 = arith.constant 0 : index
    %c0_123 = arith.constant 0 : index
    %119 = vector.load %arg6[%c2_121, %c0_122, %c0_123] : memref<18x18x32xf32, #tpu.memory_space<vmem>>, vector<16x16x32xf32>
    %120 = vector.shape_cast %119 : vector<16x16x32xf32> to vector<256x32xf32>
    %c6_124 = arith.constant 6 : index
    %c0_125 = arith.constant 0 : index
    %c0_126 = arith.constant 0 : index
    %121 = vector.load %arg3[%c6_124, %c0_125, %c0_126] : memref<9x32x32xf32, #tpu.memory_space<vmem>>, vector<1x32x32xf32>
    %122 = vector.shape_cast %121 : vector<1x32x32xf32> to vector<32x32xf32>
    %cst_127 = arith.constant dense<0.000000e+00> : vector<256x32xf32>
    %123 = tpu.matmul %120, %122, %cst_127 {dimension_numbers = #tpu.dot_dimension_numbers<[1], [0], [0], [1], [0, 0, 1, 1], [], []>} : vector<256x32xf32>, vector<32x32xf32>, vector<256x32xf32> -> vector<256x32xf32>
    %124 = arith.addf %118, %123 : vector<256x32xf32>
    %c2_128 = arith.constant 2 : index
    %c1_129 = arith.constant 1 : index
    %c0_130 = arith.constant 0 : index
    %125 = vector.load %arg6[%c2_128, %c1_129, %c0_130] : memref<18x18x32xf32, #tpu.memory_space<vmem>>, vector<16x16x32xf32>
    %126 = vector.shape_cast %125 : vector<16x16x32xf32> to vector<256x32xf32>
    %c7_131 = arith.constant 7 : index
    %c0_132 = arith.constant 0 : index
    %c0_133 = arith.constant 0 : index
    %127 = vector.load %arg3[%c7_131, %c0_132, %c0_133] : memref<9x32x32xf32, #tpu.memory_space<vmem>>, vector<1x32x32xf32>
    %128 = vector.shape_cast %127 : vector<1x32x32xf32> to vector<32x32xf32>
    %cst_134 = arith.constant dense<0.000000e+00> : vector<256x32xf32>
    %129 = tpu.matmul %126, %128, %cst_134 {dimension_numbers = #tpu.dot_dimension_numbers<[1], [0], [0], [1], [0, 0, 1, 1], [], []>} : vector<256x32xf32>, vector<32x32xf32>, vector<256x32xf32> -> vector<256x32xf32>
    %130 = arith.addf %124, %129 : vector<256x32xf32>
    %c2_135 = arith.constant 2 : index
    %c2_136 = arith.constant 2 : index
    %c0_137 = arith.constant 0 : index
    %131 = vector.load %arg6[%c2_135, %c2_136, %c0_137] : memref<18x18x32xf32, #tpu.memory_space<vmem>>, vector<16x16x32xf32>
    %132 = vector.shape_cast %131 : vector<16x16x32xf32> to vector<256x32xf32>
    %c8_138 = arith.constant 8 : index
    %c0_139 = arith.constant 0 : index
    %c0_140 = arith.constant 0 : index
    %133 = vector.load %arg3[%c8_138, %c0_139, %c0_140] : memref<9x32x32xf32, #tpu.memory_space<vmem>>, vector<1x32x32xf32>
    %134 = vector.shape_cast %133 : vector<1x32x32xf32> to vector<32x32xf32>
    %cst_141 = arith.constant dense<0.000000e+00> : vector<256x32xf32>
    %135 = tpu.matmul %132, %134, %cst_141 {dimension_numbers = #tpu.dot_dimension_numbers<[1], [0], [0], [1], [0, 0, 1, 1], [], []>} : vector<256x32xf32>, vector<32x32xf32>, vector<256x32xf32> -> vector<256x32xf32>
    %136 = arith.addf %130, %135 : vector<256x32xf32>
    %cst_142 = arith.constant dense<0.000000e+00> : vector<32xf32>
    %137 = vector.multi_reduction <add>, %136, %cst_142 [0] : vector<256x32xf32> to vector<32xf32>
    %138 = vector.shape_cast %137 : vector<32xf32> to vector<1x32xf32>
    %cst_143 = arith.constant 2.560000e+02 : f32
    %139 = vector.broadcast %cst_143 : f32 to vector<1x32xf32>
    %140 = arith.divf %138, %139 : vector<1x32xf32>
    %141 = vector.broadcast %140 : vector<1x32xf32> to vector<256x32xf32>
    %142 = arith.subf %136, %141 : vector<256x32xf32>
    %143 = arith.mulf %142, %142 : vector<256x32xf32>
    %cst_144 = arith.constant dense<0.000000e+00> : vector<32xf32>
    %144 = vector.multi_reduction <add>, %143, %cst_144 [0] : vector<256x32xf32> to vector<32xf32>
    %145 = vector.shape_cast %144 : vector<32xf32> to vector<1x32xf32>
    %cst_145 = arith.constant 2.560000e+02 : f32
    %146 = vector.broadcast %cst_145 : f32 to vector<1x32xf32>
    %147 = arith.divf %145, %146 : vector<1x32xf32>
    %cst_146 = arith.constant 9.99999974E-6 : f32
    %148 = vector.broadcast %cst_146 : f32 to vector<1x32xf32>
    %149 = arith.addf %147, %148 : vector<1x32xf32>
    %150 = math.rsqrt %149 : vector<1x32xf32>
    %151 = vector.broadcast %150 : vector<1x32xf32> to vector<256x32xf32>
    %152 = arith.mulf %142, %151 : vector<256x32xf32>
    %cst_147 = arith.constant 0.000000e+00 : f32
    %153 = vector.broadcast %cst_147 : f32 to vector<256x32xf32>
    %154 = arith.maximumf %152, %153 : vector<256x32xf32>
    %155 = vector.shape_cast %154 : vector<256x32xf32> to vector<16x16x32xf32>
    %156 = arith.addf %1, %155 : vector<16x16x32xf32>
    %cst_148 = arith.constant 0.000000e+00 : f32
    %157 = vector.broadcast %cst_148 : f32 to vector<16x16x32xf32>
    %158 = arith.maximumf %156, %157 : vector<16x16x32xf32>
    %c0_149 = arith.constant 0 : index
    %c0_150 = arith.constant 0 : index
    %c0_151 = arith.constant 0 : index
    %c0_152 = arith.constant 0 : index
    %159 = vector.load %arg4[%c0_149, %c0_150, %c0_151, %c0_152] : memref<1x16x16x32xf32, #tpu.memory_space<vmem>>, vector<1x16x16x32xf32>
    %160 = vector.shape_cast %159 : vector<1x16x16x32xf32> to vector<16x16x32xf32>
    %161 = vector.shape_cast %158 : vector<16x16x32xf32> to vector<1x16x16x32xf32>
    tpu.vector_store %arg4[%c0_149, %c0_150, %c0_151, %c0_152], %161 {strides = array<i32>} : memref<1x16x16x32xf32, #tpu.memory_space<vmem>>, vector<1x16x16x32xf32>,
    return
  }
  func.func @transform_0(%arg0: i32) -> (i32, i32, i32, i32) {
    %c0_i32 = arith.constant 0 : i32
    %c0_i32_0 = arith.constant 0 : i32
    %c0_i32_1 = arith.constant 0 : i32
    %c0_i32_2 = arith.constant 0 : i32
    return %arg0, %c0_i32, %c0_i32_0, %c0_i32_1 : i32, i32, i32, i32
  }
  func.func @transform_1(%arg0: i32) -> (i32, i32, i32) {
    %c0_i32 = arith.constant 0 : i32
    %c0_i32_0 = arith.constant 0 : i32
    %c0_i32_1 = arith.constant 0 : i32
    %c0_i32_2 = arith.constant 0 : i32
    return %c0_i32, %c0_i32_0, %c0_i32_1 : i32, i32, i32
  }
  func.func @transform_2(%arg0: i32) -> (i32, i32, i32) {
    %c0_i32 = arith.constant 0 : i32
    %c0_i32_0 = arith.constant 0 : i32
    %c0_i32_1 = arith.constant 0 : i32
    %c0_i32_2 = arith.constant 0 : i32
    return %c0_i32, %c0_i32_0, %c0_i32_1 : i32, i32, i32
  }
  func.func @transform_3(%arg0: i32) -> (i32, i32, i32, i32) {
    %c0_i32 = arith.constant 0 : i32
    %c0_i32_0 = arith.constant 0 : i32
    %c0_i32_1 = arith.constant 0 : i32
    %c0_i32_2 = arith.constant 0 : i32
    return %arg0, %c0_i32, %c0_i32_0, %c0_i32_1 : i32, i32, i32, i32
  }
}

</mosaic_0001>

<bundles_post_ra>
// kernel: tpu_custom_call.1
= control target key start
LH: loop header
LB: loop body
LE: loop exit
PB: predicated region body
PF: predicated region fallthrough
CT: control target
= control target key end

     0   :  { %8 = vsyncpa [#allocation5], 0  ;;  %s14317_s0 = inlined_call_operand.hbm [shape: f32[2,16,16,32], index: 0, kind: input, shape index: {}]   ;;  %s14318_s1 = inlined_call_operand.hbm [shape: f32[9,32,32], index: 1, kind: input, shape index: {}]   ;;  %s14319_s2 = inlined_call_operand.hbm [shape: f32[9,32,32], index: 2, kind: input, shape index: {}]   ;;  %s14320_s3 = inlined_call_operand.hbm [shape: f32[2,16,16,32], index: 3, kind: output, shape index: {}]  }
   0x1   :  { %10 = vsyncpa [#allocation5 + $0x1], 0 }
   0x2   :  { %11 = vsyncpa [#allocation8], 0 }
   0x3   :  { %12 = vsyncpa [#allocation6], 0 }
   0x4   :  { %14 = vsyncpa [#allocation6 + $0x1], 0  ;;  %s11232_s12 = smov 0   ;;  %s11234_s13 = smov 0  }
   0x5   :  { %s11236_s14 = smov 0   ;;  %s11238_s15 = smov 0  }
   0x6 LB: > { %s11253_s16 = sadd.s32 4294967295, %s11201_s15   ;;  %s8061_s17 = sadd.s32 4294967294, %s11201_s15   ;;  %s11201_s15 = sphi %s11238_s15, %s14744_s15   ;;  %s11197_s14 = sphi %s11236_s14, %s14743_s14   ;;  %s11193_s13 = sphi %s11234_s13, %s14742_s13   ;;  %s11189_s12 = sphi %s11232_s12, %s14741_s12  }
   0x7   : > { %p40_p0 = scmp.ne.s32.totalorder %s11193_s13, %s11189_s12  ;;  %p14321_p1 = scmp.eq.s32.totalorder %s11253_s16, 0 }
   0x8   : > { %p112_p3 = scmp.eq.s32.totalorder %s8061_s17, 1  ;;  %p8062_p5 = scmp.ge.s32.totalorder %s11201_s15, 1 }
   0x9   : > { %p11262_p4 = por %p14321_p1, %p40_p0  ;;  %p119_p7 = scmp.lt.s32.totalorder %s11201_s15, 3 }
   0xa   : > { %p11267_p6 = por %p112_p3, %p40_p0  ;;  %s11203_s21 = smov [#allocation7]  }
   0xb   : > { %s14487_s18 = scalar_select %p11262_p4, 1, 0 }
   0xc   : > { %s14488_s19 = scalar_select %p11267_p6, 1, 0 }
   0xd   : > { %p11272_p8 = pnand %p8062_p5, %p119_p7  ;;  %s131_s22 = sshll.u32 %s11203_s21, 4  ;;  %s11276_s22 = int_to_ptr.vmem [resolvable:$true] %s131_s22 }
   0xe   : > { %s11204_s24 = smov [#allocation9]   ;;  %s11045_s28 = scalar_lea.hbm %s14318_s1, 4608 }
   0xf   : > { %p10981_p9 = pneg %p11272_p8  ;;  %s144_s25 = sshll.u32 %s11204_s24, 4  ;;  %s11287_s25 = int_to_ptr.vmem [resolvable:$true] %s144_s25 }
  0x10   : > { %p11046_p12 = scmp.ne.s32.totalorder %s14318_s1, %s11045_s28  ;;  %p11052_p5 = scmp.lt.u32.totalorder %s11045_s28, %s14318_s1 }
  0x11   : > { %p11283_p11 = pnand %p10981_p9, %p14321_p1 }
  0x13   : > { %p11047_p13 = pneg %p11283_p11 }
  0x15   : > { %p11048_p0 = pnand %p11047_p13, %p11046_p12 }
  0x17   : > { %p11049_p3 = pneg %p11048_p0 }
  0x19   : > { %p11054_p7 = pnand %p11052_p5, %p11049_p3 }
  0x1b   : > { %11057 = shalt.err (!%p11054_p7)
}
  0x1c   : > { %s11058_s6 = scalar_lea.vmem %s11276_s22, 4608  ;;  %p11066_p2 = scmp.lt.s32.totalorder %s11276_s22, %s11276_s22 }
  0x1d   : > { %p11059_p9 = scmp.ne.s32.totalorder %s11276_s22, %s11058_s6  ;;  %p11067_p12 = scmp.lt.s32.totalorder %s11058_s6, %s11058_s6 }
  0x1f   : > { %p11061_p10 = pnand %p11059_p9, %p11047_p13  ;;  %p11068_p0 = por %p11067_p12, %p11066_p2 }
  0x21   : > { %p11062_p1 = pneg %p11061_p10 }
  0x23   : > { %p11069_p6 = pnand %p11068_p0, %p11062_p1 }
  0x25   : > { %11072 = shalt.err (!%p11069_p6)
}
  0x26   : > { %s11205_s7 = smov 128   ;;  %s11206_s8 = smov 8  }
  0x27   : > { %10984 = dma.hbm_to_vmem [thread:$0]  (!%p11283_p11), %s14318_s1, 4608, %s11276_s22, [#allocation8], %s11205_s7, %s11205_s7, %s11206_s8  }
  0x28   : > { %s11073_s21 = scalar_lea.hbm %s14319_s2, 4608 }
  0x29   : > { %p11074_p1 = scmp.ne.s32.totalorder %s14319_s2, %s11073_s21  ;;  %p11080_p10 = scmp.lt.u32.totalorder %s11073_s21, %s14319_s2 }
  0x2b   : > { %p11076_p2 = pnand %p11074_p1, %p11047_p13 }
  0x2d   : > { %p11077_p6 = pneg %p11076_p2 }
  0x2f   : > { %p11082_p3 = pnand %p11080_p10, %p11077_p6 }
  0x31   : > { %11085 = shalt.err (!%p11082_p3)
}
  0x32   : > { %s11086_s22 = scalar_lea.vmem %s11287_s25, 4608  ;;  %p11094_p12 = scmp.lt.s32.totalorder %s11287_s25, %s11287_s25 }
  0x33   : > { %p11087_p5 = scmp.ne.s32.totalorder %s11287_s25, %s11086_s22  ;;  %p11095_p0 = scmp.lt.s32.totalorder %s11086_s22, %s11086_s22 }
  0x35   : > { %p11089_p7 = pnand %p11087_p5, %p11047_p13  ;;  %p11096_p1 = por %p11095_p0, %p11094_p12 }
  0x37   : > { %p11090_p9 = pneg %p11089_p7 }
  0x39   : > { %p11097_p2 = pnand %p11096_p1, %p11090_p9 }
  0x3b   : > { %11100 = shalt.err (!%p11097_p2)
}
  0x3c   : > { %10987 = dma.hbm_to_vmem [thread:$0]  (!%p11283_p11), %s14319_s2, 4608, %s11287_s25, [#allocation8], %s11205_s7, %s11205_s7, %s11206_s8  }
  0x3d   : > { %s11348_s23 = sadd.s32 1, %s11201_s15   ;;  %s27_s4 = sadd.s32 1, %s11197_s14 }
  0x3e   : > { %s24_s5 = ssub.s32 %s11201_s15, %s11348_s23  ;;  %p34_p13 = scmp.ne.s32.totalorder %s11197_s14, %s11193_s13 }
  0x3f   : > { %p25_p6 = scmp.eq.s32.totalorder %s24_s5, 0  ;;  %p35_p10 = scmp.eq.s32.totalorder %s11201_s15, 0 }
  0x40   : > { %p14491_p3 = scmp.eq.s32.totalorder %s11253_s16, 1  ;;  %p10998_p7 = scmp.lt.s32.totalorder %s11201_s15, 2 }
  0x41   : > { %s11364_s9 = scalar_select %p25_p6, %s11197_s14, %s27_s4  }
  0x42   : > { %p11358_p5 = por %p14491_p3, %p34_p13  ;;  %p36_p9 = por %p35_p10, %p34_p13 }
  0x43   : > { %s158_s10 = sand.u32 1, %s11197_s14   ;;  %s8655_s25 = sshll.u32 %s11201_s15, 12 }
  0x44   : > { %s14492_s6 = scalar_select %p11358_p5, 1, 0 }
  0x45   : > { %s8066_s11 = sshll.u32 %s158_s10, 8  ;;  %s11371_s24 = scalar_lea.hbm %s14317_s0, %s8655_s25 }
  0x46   : > { %s162_s26 = scalar_lea.vmem [#allocation4], %s8066_s11  ;;  %p11375_p11 = pnand %p10998_p7, %p36_p9 }
  0x47   : > { %s169_s27 = sshll.u32 %s162_s26, 4  ;;  %s11379_s22 = scalar_lea.sflag [#allocation5], %s158_s10  ;;  %s11373_s27 = int_to_ptr.vmem [resolvable:$true] %s169_s27 }
  0x48   : > { %s11101_s29 = scalar_lea.hbm %s11371_s24, 4096  ;;  %p11103_p0 = pneg %p11375_p11 }
  0x49   : > { %p11102_p12 = scmp.ne.s32.totalorder %s11371_s24, %s11101_s29  ;;  %s11106_s5 = scalar_lea.hbm %s14317_s0, 8192 }
  0x4a   : > { %p11107_p13 = scmp.lt.u32.totalorder %s11371_s24, %s14317_s0  ;;  %p11108_p6 = scmp.lt.u32.totalorder %s11106_s5, %s11101_s29 }
  0x4b   : > { %p11104_p1 = pnand %p11103_p0, %p11102_p12  ;;  %p11110_p3 = scmp.lt.u32.totalorder %s11101_s29, %s11371_s24 }
  0x4c   : > { %p11109_p10 = por %p11108_p6, %p11107_p13 }
  0x4d   : > { %p11105_p2 = pneg %p11104_p1 }
  0x4e   : > { %p11111_p7 = por %p11110_p3, %p11109_p10 }
  0x50   : > { %p11112_p9 = pnand %p11111_p7, %p11105_p2 }
  0x52   : > { %11115 = shalt.err (!%p11112_p9)
}
  0x53   : > { %s11116_s10 = scalar_lea.vmem %s11373_s27, 4096  ;;  %s11207_s17 = smov [#allocation4]  }
  0x54   : > { %p11117_p12 = scmp.ne.s32.totalorder %s11373_s27, %s11116_s10  ;;  %s11121_s21 = sshll.u32 %s11207_s17, 4  ;;  %s11122_s21 = int_to_ptr.vmem [resolvable:$false] %s11121_s21 }
  0x55   : > { %s11123_s26 = scalar_lea.vmem %s11122_s21, 8192  ;;  %p11124_p4 = scmp.lt.s32.totalorder %s11373_s27, %s11122_s21 }
  0x56   : > { %p11119_p1 = pnand %p11117_p12, %p11103_p0  ;;  %p11125_p13 = scmp.lt.s32.totalorder %s11123_s26, %s11116_s10 }
  0x58   : > { %p11120_p5 = pneg %p11119_p1  ;;  %p11126_p6 = por %p11125_p13, %p11124_p4 }
  0x5a   : > { %p11127_p10 = pnand %p11126_p6, %p11120_p5 }
  0x5c   : > { %11130 = shalt.err (!%p11127_p10)
}
  0x5d   : > { %10991 = dma.hbm_to_vmem [thread:$0]  (!%p11375_p11), %s11371_s24, 4096, %s11373_s27, %s11379_s22, %s11205_s7, %s11205_s7, %s11206_s8  }
  0x5e   : > { %181 = sbr.rel (%p11272_p8) target bundleno = 2049 (0x801), region = 32 }
  0x65   : > { %s11413_s29 = sand.u32 1, %s11193_s13   ;;  %p14494_p4 = scmp.ne.s32.totalorder %s14487_s18, 0 }
  0x66   : > { %s8070_s30 = sshll.u32 %s11413_s29, 8  ;;  %s184_s4 = scalar_lea.sflag [#allocation5], %s11413_s29 }
  0x67   : > { %s11419_s28 = scalar_lea.vmem [#allocation4], %s8070_s30 }
  0x68   : > { %11176 = dma.done.wait (%p14494_p4), %s184_s4, 4096  }
  0x69   : > { %11178 = vsyncadd (%p14494_p4), %s184_s4, 4294963200  ;;  %p14495_p5 = scmp.eq.s32.totalorder %s11253_s16, 0 }
  0x6b   : > { %11180 = dma.done.wait (%p14495_p5), [#allocation8], 9216   ;;  %p14496_p8 = pmov %p14495_p5 }
  0x6c   : > { %vm250_vm0 = vcmask 261120   ;;  %vm253_vm1 = vcmask 254976   ;;  %v11208_v0 = vmov 0.0   ;;  %v408_v1 = vld [vmem:[#allocation7 + $0x20] sm:$0xff]  ;;  %v409_v2 = vld [vmem:[#allocation7 + $0x28] sm:$0xff]  ;;  %v410_v3 = vld [vmem:[#allocation7 + $0x30] sm:$0xff] }
  0x6d   : > { %11182 = vsyncadd (%p14496_p8), [#allocation8], 4294958080  ;;  %251 = vst.msk [vmem:[#allocation2] sm:$0xff] %vm250_vm0, %v11208_v0  ;;  %v10313_v4 = vpack.c.bf16 %v409_v2, %v408_v1  ;;  %v411_v5 = vld [vmem:[#allocation7 + $0x38] sm:$0xff]  ;;  %v371_v8 = vld [vmem:[#allocation7] sm:$0xff]  ;;  %s14093_s18 = scalar_lea.vmem [#allocation10], %s8070_s30 }
  0x6e   : > { %252 = vst.msk [vmem:[#allocation2 + $0x8] sm:$0xff] %vm250_vm0, %v11208_v0  ;;  %255 = vst.msk [vmem:[#allocation2 + $0x18] sm:$0xff] %vm250_vm0, %v11208_v0  ;;  %v10317_v7 = vpack.c.bf16 %v411_v5, %v410_v3  ;;  %v372_v9 = vld [vmem:[#allocation7 + $0x8] sm:$0xff]  ;;  %v11647_v10 = vld [vmem:[%s11419_s28] sm:$0xff]  ;;  %s8656_s20 = sshll.u32 %s11253_s16, 12  ;;  %s7969_s7 = sshll.u32 %s14093_s18, 4  ;;  %s14245_s7 = int_to_ptr.vmem [resolvable:$true] %s7969_s7 }
  0x6f   : > { %256 = vst.msk [vmem:[#allocation2 + $0x20] sm:$0xff] %vm250_vm0, %v11208_v0  ;;  %258 = vst.msk [vmem:[#allocation2 + $0x30] sm:$0xff] %vm250_vm0, %v11208_v0  ;;  %10314 = vmatprep.subr.bf16.mxu0 %v10313_v4  ;;  %v11652_v11 = vld [vmem:[%s11419_s28 + $0x8] sm:$0xff]  ;;  %v11655_v12 = vld [vmem:[%s11419_s28 + $0x10] sm:$0xff]  ;;  %v10321_v17 = vpack.c.bf16 %v372_v9, %v371_v8  ;;  %s14243_s24 = scalar_lea.hbm %s14320_s3, %s8656_s20  ;;  %s7956_s27 = scalar_lea.sflag [#allocation6], %s11413_s29 }
  0x70   : > { %259 = vst.msk [vmem:[#allocation2 + $0x38] sm:$0xff] %vm250_vm0, %v11208_v0  ;;  %261 = vst.msk [vmem:[#allocation2 + $0x48] sm:$0xff] %vm250_vm0, %v11208_v0  ;;  %v11658_v13 = vld [vmem:[%s11419_s28 + $0x18] sm:$0xff]  ;;  %10316 = vmatpush3.bf16.msra.mxu0 %v10313_v4  ;;  %v11667_v14 = vld [vmem:[%s11419_s28 + $0x20] sm:$0xff]  ;;  %s11131_s22 = scalar_lea.vmem %s14245_s7, 4096  ;;  %p14738_p0 = scmp.ne.s32.totalorder %s14492_s6, 0 }
  0x71   : > { %262 = vst.msk [vmem:[#allocation2 + $0x50] sm:$0xff] %vm250_vm0, %v11208_v0  ;;  %264 = vst.msk [vmem:[#allocation2 + $0x60] sm:$0xff] %vm250_vm0, %v11208_v0  ;;  %v11670_v15 = vld [vmem:[%s11419_s28 + $0x28] sm:$0xff]  ;;  %v11673_v16 = vld [vmem:[%s11419_s28 + $0x30] sm:$0xff]  ;;  %10318 = vmatprep.subr.bf16.mxu0 %v10317_v7  ;;  %p11132_p11 = scmp.ne.s32.totalorder %s14245_s7, %s11131_s22  ;;  %s11209_s5 = smov [#allocation10]  }
  0x72   : > { %265 = vst.msk [vmem:[#allocation2 + $0x68] sm:$0xff] %vm250_vm0, %v11208_v0  ;;  %267 = vst.msk [vmem:[#allocation2 + $0x78] sm:$0xff] %vm250_vm0, %v11208_v0  ;;  %v11682_v18 = vld [vmem:[%s11419_s28 + $0x38] sm:$0xff]  ;;  %v11685_v19 = vld [vmem:[%s11419_s28 + $0x40] sm:$0xff]  ;;  %s11135_s11 = sshll.u32 %s11209_s5, 4  ;;  %s11136_s11 = int_to_ptr.vmem [resolvable:$false] %s11135_s11 }
  0x73   : > { %268 = vst.msk [vmem:[#allocation2 + $0x80] sm:$0xff] %vm250_vm0, %v11208_v0  ;;  %270 = vst.msk [vmem:[#allocation2 + $0x90] sm:$0xff] %vm250_vm0, %v11208_v0  ;;  %v11688_v20 = vld [vmem:[%s11419_s28 + $0x48] sm:$0xff]  ;;  %v11697_v22 = vld [vmem:[%s11419_s28 + $0x50] sm:$0xff]  ;;  %p11133_p2 = pnand %p11132_p11, %p14738_p0  ;;  %s11137_s25 = scalar_lea.vmem %s11136_s11, 8192 }
  0x74   : > { %271 = vst.msk [vmem:[#allocation2 + $0x98] sm:$0xff] %vm250_vm0, %v11208_v0  ;;  %273 = vst.msk [vmem:[#allocation2 + $0xa8] sm:$0xff] %vm250_vm0, %v11208_v0  ;;  %v11700_v23 = vld [vmem:[%s11419_s28 + $0x58] sm:$0xff]  ;;  %v11703_v24 = vld [vmem:[%s11419_s28 + $0x60] sm:$0xff]  ;;  %10320 = vmatpush3.bf16.msra.mxu0 %v10317_v7  ;;  %p11138_p7 = scmp.lt.s32.totalorder %s14245_s7, %s11136_s11  ;;  %p11139_p9 = scmp.lt.s32.totalorder %s11137_s25, %s11131_s22 }
  0x75   : > { %274 = vst.msk [vmem:[#allocation2 + $0xb0] sm:$0xff] %vm250_vm0, %v11208_v0  ;;  %276 = vst.msk [vmem:[#allocation2 + $0xc0] sm:$0xff] %vm250_vm0, %v11208_v0  ;;  %v375_v6 = vld [vmem:[#allocation2 + $0x1] sm:$0xff]  ;;  %v11715_v26 = vld [vmem:[%s11419_s28 + $0x70] sm:$0xff]  ;;  %10322 = vmatprep.subr.bf16.mxu0 %v10321_v17  ;;  %p11134_p3 = pneg %p11133_p2 }
  0x76   : > { %277 = vst.msk [vmem:[#allocation2 + $0xc8] sm:$0xff] %vm250_vm0, %v11208_v0  ;;  %279 = vst.msk [vmem:[#allocation2 + $0xd8] sm:$0xff] %vm250_vm0, %v11208_v0  ;;  %9313 = vmatprep.mubr.msk.f32.mxu0 %vm250_vm0, %v375_v6  ;;  %v11712_v25 = vld [vmem:[%s11419_s28 + $0x68] sm:$0xff]  ;;  %v11718_v27 = vld [vmem:[%s11419_s28 + $0x78] sm:$0xff]  ;;  %p11140_p12 = por %p11139_p9, %p11138_p7 }
  0x77   : > { %280 = vst.msk [vmem:[#allocation2 + $0xe0] sm:$0xff] %vm250_vm0, %v11208_v0  ;;  %282 = vst.msk [vmem:[#allocation2 + $0xf0] sm:$0xff] %vm250_vm0, %v11208_v0  ;;  %v373_v28 = vld [vmem:[#allocation7 + $0x10] sm:$0xff]  ;;  %v374_v29 = vld [vmem:[#allocation7 + $0x18] sm:$0xff] }
  0x78   : > { %283 = vst.msk [vmem:[#allocation2 + $0xf8] sm:$0xff] %vm250_vm0, %v11208_v0  ;;  %285 = vst.msk [vmem:[#allocation2 + $0x108] sm:$0xff] %vm250_vm0, %v11208_v0  ;;  %v11727_v30 = vld [vmem:[%s11419_s28 + $0x80] sm:$0xff]  ;;  %v10325_v31 = vpack.c.bf16 %v374_v29, %v373_v28  ;;  %v11732_v32 = vld [vmem:[%s11419_s28 + $0x88] sm:$0xff]  ;;  %p11141_p1 = pnand %p11140_p12, %p11134_p3 }
  0x79   : > { %286 = vst.msk [vmem:[#allocation2 + $0x110] sm:$0xff] %vm250_vm0, %v11208_v0  ;;  %288 = vst.msk [vmem:[#allocation2 + $0x120] sm:$0xff] %vm250_vm0, %v11208_v0  ;;  %v11735_v33 = vld [vmem:[%s11419_s28 + $0x90] sm:$0xff]  ;;  %v11738_v34 = vld [vmem:[%s11419_s28 + $0x98] sm:$0xff] }
  0x7a   : > { %289 = vst.msk [vmem:[#allocation2 + $0x128] sm:$0xff] %vm250_vm0, %v11208_v0  ;;  %291 = vst.msk [vmem:[#allocation2 + $0x138] sm:$0xff] %vm250_vm0, %v11208_v0  ;;  %v11749_v36 = vld [vmem:[%s11419_s28 + $0xa0] sm:$0xff]  ;;  %v11752_v37 = vld [vmem:[%s11419_s28 + $0xa8] sm:$0xff] }
  0x7b   : > { %292 = vst.msk [vmem:[#allocation2 + $0x140] sm:$0xff] %vm250_vm0, %v11208_v0  ;;  %294 = vst.msk [vmem:[#allocation2 + $0x150] sm:$0xff] %vm250_vm0, %v11208_v0  ;;  %v11772_v41 = vld [vmem:[%s11419_s28 + $0xb0] sm:$0xff]  ;;  %v11775_v42 = vld [vmem:[%s11419_s28 + $0xb8] sm:$0xff] }
  0x7c   : > { %295 = vst.msk [vmem:[#allocation2 + $0x158] sm:$0xff] %vm250_vm0, %v11208_v0  ;;  %297 = vst.msk [vmem:[#allocation2 + $0x168] sm:$0xff] %vm250_vm0, %v11208_v0  ;;  %v11784_v44 = vld [vmem:[%s11419_s28 + $0xc0] sm:$0xff]  ;;  %v11791_v45 = vld [vmem:[%s11419_s28 + $0xc8] sm:$0xff] }
  0x7d   : > { %298 = vst.msk [vmem:[#allocation2 + $0x170] sm:$0xff] %vm250_vm0, %v11208_v0  ;;  %300 = vst.msk [vmem:[#allocation2 + $0x180] sm:$0xff] %vm250_vm0, %v11208_v0  ;;  %v11794_v46 = vld [vmem:[%s11419_s28 + $0xd0] sm:$0xff]  ;;  %v11797_v47 = vld [vmem:[%s11419_s28 + $0xd8] sm:$0xff] }
  0x7e   : > { %301 = vst.msk [vmem:[#allocation2 + $0x188] sm:$0xff] %vm250_vm0, %v11208_v0  ;;  %303 = vst.msk [vmem:[#allocation2 + $0x198] sm:$0xff] %vm250_vm0, %v11208_v0  ;;  %v11810_v49 = vld [vmem:[%s11419_s28 + $0xe0] sm:$0xff]  ;;  %v11813_v50 = vld [vmem:[%s11419_s28 + $0xe8] sm:$0xff] }
  0x7f   : > { %304 = vst.msk [vmem:[#allocation2 + $0x1a0] sm:$0xff] %vm250_vm0, %v11208_v0  ;;  %4056 = vst.msk [vmem:[#allocation3] sm:$0xff] %vm250_vm0, %v11208_v0  ;;  %v1087_v52 = vld [vmem:[#allocation7 + $0x40] sm:$0xff]  ;;  %v1088_v53 = vld [vmem:[#allocation7 + $0x48] sm:$0xff] }
  0x80   : > { %4057 = vst.msk [vmem:[#allocation3 + $0x8] sm:$0xff] %vm250_vm0, %v11208_v0  ;;  %4059 = vst.msk [vmem:[#allocation3 + $0x18] sm:$0xff] %vm250_vm0, %v11208_v0  ;;  %v10329_v54 = vpack.c.bf16 %v1088_v53, %v1087_v52  ;;  %v1089_v52 = vld [vmem:[#allocation7 + $0x50] sm:$0xff]  ;;  %v1090_v53 = vld [vmem:[#allocation7 + $0x58] sm:$0xff] }
  0x81   : > { %4060 = vst.msk [vmem:[#allocation3 + $0x20] sm:$0xff] %vm250_vm0, %v11208_v0  ;;  %4062 = vst.msk [vmem:[#allocation3 + $0x30] sm:$0xff] %vm250_vm0, %v11208_v0 }
  0x82   : > { %4063 = vst.msk [vmem:[#allocation3 + $0x38] sm:$0xff] %vm250_vm0, %v11208_v0  ;;  %4065 = vst.msk [vmem:[#allocation3 + $0x48] sm:$0xff] %vm250_vm0, %v11208_v0 }
  0x83   : > { %4066 = vst.msk [vmem:[#allocation3 + $0x50] sm:$0xff] %vm250_vm0, %v11208_v0  ;;  %4068 = vst.msk [vmem:[#allocation3 + $0x60] sm:$0xff] %vm250_vm0, %v11208_v0 }
  0x84   : > { %4069 = vst.msk [vmem:[#allocation3 + $0x68] sm:$0xff] %vm250_vm0, %v11208_v0  ;;  %4071 = vst.msk [vmem:[#allocation3 + $0x78] sm:$0xff] %vm250_vm0, %v11208_v0 }
  0x85   : > { %4072 = vst.msk [vmem:[#allocation3 + $0x80] sm:$0xff] %vm250_vm0, %v11208_v0  ;;  %4074 = vst.msk [vmem:[#allocation3 + $0x90] sm:$0xff] %vm250_vm0, %v11208_v0 }
  0x86   : > { %4075 = vst.msk [vmem:[#allocation3 + $0x98] sm:$0xff] %vm250_vm0, %v11208_v0  ;;  %4077 = vst.msk [vmem:[#allocation3 + $0xa8] sm:$0xff] %vm250_vm0, %v11208_v0 }
  0x87   : > { %4078 = vst.msk [vmem:[#allocation3 + $0xb0] sm:$0xff] %vm250_vm0, %v11208_v0  ;;  %4080 = vst.msk [vmem:[#allocation3 + $0xc0] sm:$0xff] %vm250_vm0, %v11208_v0 }
  0x88   : > { %4081 = vst.msk [vmem:[#allocation3 + $0xc8] sm:$0xff] %vm250_vm0, %v11208_v0  ;;  %4083 = vst.msk [vmem:[#allocation3 + $0xd8] sm:$0xff] %vm250_vm0, %v11208_v0 }
  0x89   : > { %4084 = vst.msk [vmem:[#allocation3 + $0xe0] sm:$0xff] %vm250_vm0, %v11208_v0  ;;  %4086 = vst.msk [vmem:[#allocation3 + $0xf0] sm:$0xff] %vm250_vm0, %v11208_v0 }
  0x8a   : > { %4087 = vst.msk [vmem:[#allocation3 + $0xf8] sm:$0xff] %vm250_vm0, %v11208_v0  ;;  %4089 = vst.msk [vmem:[#allocation3 + $0x108] sm:$0xff] %vm250_vm0, %v11208_v0 }
  0x8b   : > { %4090 = vst.msk [vmem:[#allocation3 + $0x110] sm:$0xff] %vm250_vm0, %v11208_v0  ;;  %4092 = vst.msk [vmem:[#allocation3 + $0x120] sm:$0xff] %vm250_vm0, %v11208_v0 }
  0x8c   : > { %4093 = vst.msk [vmem:[#allocation3 + $0x128] sm:$0xff] %vm250_vm0, %v11208_v0  ;;  %4095 = vst.msk [vmem:[#allocation3 + $0x138] sm:$0xff] %vm250_vm0, %v11208_v0 }
  0x8d   : > { %4096 = vst.msk [vmem:[#allocation3 + $0x140] sm:$0xff] %vm250_vm0, %v11208_v0  ;;  %4098 = vst.msk [vmem:[#allocation3 + $0x150] sm:$0xff] %vm250_vm0, %v11208_v0 }
  0x8e   : > { %4099 = vst.msk [vmem:[#allocation3 + $0x158] sm:$0xff] %vm250_vm0, %v11208_v0  ;;  %4101 = vst.msk [vmem:[#allocation3 + $0x168] sm:$0xff] %vm250_vm0, %v11208_v0 }
  0x8f   : > { %4102 = vst.msk [vmem:[#allocation3 + $0x170] sm:$0xff] %vm250_vm0, %v11208_v0  ;;  %4104 = vst.msk [vmem:[#allocation3 + $0x180] sm:$0xff] %vm250_vm0, %v11208_v0 }
  0x90   : > { %4105 = vst.msk [vmem:[#allocation3 + $0x188] sm:$0xff] %vm250_vm0, %v11208_v0  ;;  %4107 = vst.msk [vmem:[#allocation3 + $0x198] sm:$0xff] %vm250_vm0, %v11208_v0 }
  0x91   : > { %4108 = vst.msk [vmem:[#allocation3 + $0x1a0] sm:$0xff] %vm250_vm0, %v11208_v0  ;;  %14497 = vst [vmem:[#allocation14_spill] sm:$0xff] %v11647_v10 }
  0x92   : > { %254 = vst.msk [vmem:[#allocation2 + $0x10] sm:$0x3] %vm253_vm1, %v11208_v0  ;;  %257 = vst.msk [vmem:[#allocation2 + $0x28] sm:$0x3] %vm253_vm1, %v11208_v0 }
  0x93   : > { %260 = vst.msk [vmem:[#allocation2 + $0x40] sm:$0x3] %vm253_vm1, %v11208_v0  ;;  %263 = vst.msk [vmem:[#allocation2 + $0x58] sm:$0x3] %vm253_vm1, %v11208_v0 }
  0x94   : > { %266 = vst.msk [vmem:[#allocation2 + $0x70] sm:$0x3] %vm253_vm1, %v11208_v0  ;;  %269 = vst.msk [vmem:[#allocation2 + $0x88] sm:$0x3] %vm253_vm1, %v11208_v0 }
  0x95   : > { %272 = vst.msk [vmem:[#allocation2 + $0xa0] sm:$0x3] %vm253_vm1, %v11208_v0  ;;  %275 = vst.msk [vmem:[#allocation2 + $0xb8] sm:$0x3] %vm253_vm1, %v11208_v0 }
  0x96   : > { %278 = vst.msk [vmem:[#allocation2 + $0xd0] sm:$0x3] %vm253_vm1, %v11208_v0  ;;  %281 = vst.msk [vmem:[#allocation2 + $0xe8] sm:$0x3] %vm253_vm1, %v11208_v0 }
  0x97   : > { %284 = vst.msk [vmem:[#allocation2 + $0x100] sm:$0x3] %vm253_vm1, %v11208_v0  ;;  %287 = vst.msk [vmem:[#allocation2 + $0x118] sm:$0x3] %vm253_vm1, %v11208_v0 }
  0x98   : > { %290 = vst.msk [vmem:[#allocation2 + $0x130] sm:$0x3] %vm253_vm1, %v11208_v0  ;;  %293 = vst.msk [vmem:[#allocation2 + $0x148] sm:$0x3] %vm253_vm1, %v11208_v0 }
  0x99   : > { %296 = vst.msk [vmem:[#allocation2 + $0x160] sm:$0x3] %vm253_vm1, %v11208_v0  ;;  %299 = vst.msk [vmem:[#allocation2 + $0x178] sm:$0x3] %vm253_vm1, %v11208_v0  ;;  %v376_v21 = vld [vmem:[#allocation2 + $0x9] sm:$0xff] }
  0x9a   : > { %302 = vst.msk [vmem:[#allocation2 + $0x190] sm:$0x3] %vm253_vm1, %v11208_v0  ;;  %305 = vst.msk [vmem:[#allocation2 + $0x1a8] sm:$0x3] %vm253_vm1, %v11208_v0  ;;  %9314 = vmatmul.mubr.msk.f32.vlgmr.msra.gmra.mrb[0].mxu0 %vm250_vm0, %v376_v21 }
  0x9b   : > { %4058 = vst.msk [vmem:[#allocation3 + $0x10] sm:$0x3] %vm253_vm1, %v11208_v0  ;;  %4061 = vst.msk [vmem:[#allocation3 + $0x28] sm:$0x3] %vm253_vm1, %v11208_v0  ;;  %10324 = vmatpush3.bf16.msra.mxu0 %v10321_v17 }
  0x9c   : > { %4064 = vst.msk [vmem:[#allocation3 + $0x40] sm:$0x3] %vm253_vm1, %v11208_v0  ;;  %4067 = vst.msk [vmem:[#allocation3 + $0x58] sm:$0x3] %vm253_vm1, %v11208_v0  ;;  %10326 = vmatprep.subr.bf16.mxu0 %v10325_v31 }
  0x9d   : > { %4070 = vst.msk [vmem:[#allocation3 + $0x70] sm:$0x3] %vm253_vm1, %v11208_v0  ;;  %4073 = vst.msk [vmem:[#allocation3 + $0x88] sm:$0x3] %vm253_vm1, %v11208_v0 }
  0x9e   : > { %4076 = vst.msk [vmem:[#allocation3 + $0xa0] sm:$0x3] %vm253_vm1, %v11208_v0  ;;  %4079 = vst.msk [vmem:[#allocation3 + $0xb8] sm:$0x3] %vm253_vm1, %v11208_v0 }
  0x9f   : > { %4082 = vst.msk [vmem:[#allocation3 + $0xd0] sm:$0x3] %vm253_vm1, %v11208_v0  ;;  %4085 = vst.msk [vmem:[#allocation3 + $0xe8] sm:$0x3] %vm253_vm1, %v11208_v0  ;;  %10328 = vmatpush3.bf16.msra.mxu0 %v10325_v31  ;;  %v339_v31 = vld [vmem:[#allocation2] sm:$0xff] }
  0xa0   : > { %4088 = vst.msk [vmem:[#allocation3 + $0x100] sm:$0x3] %vm253_vm1, %v11208_v0  ;;  %4091 = vst.msk [vmem:[#allocation3 + $0x118] sm:$0x3] %vm253_vm1, %v11208_v0  ;;  %10330 = vmatprep.subr.bf16.mxu0 %v10329_v54 }
  0xa1   : > { %4094 = vst.msk [vmem:[#allocation3 + $0x130] sm:$0x3] %vm253_vm1, %v11208_v0  ;;  %4097 = vst.msk [vmem:[#allocation3 + $0x148] sm:$0x3] %vm253_vm1, %v11208_v0 }
  0xa2   : > { %4100 = vst.msk [vmem:[#allocation3 + $0x160] sm:$0x3] %vm253_vm1, %v11208_v0  ;;  %4103 = vst.msk [vmem:[#allocation3 + $0x178] sm:$0x3] %vm253_vm1, %v11208_v0 }
  0xa3   : > { %4106 = vst.msk [vmem:[#allocation3 + $0x190] sm:$0x3] %vm253_vm1, %v11208_v0  ;;  %4109 = vst.msk [vmem:[#allocation3 + $0x1a8] sm:$0x3] %vm253_vm1, %v11208_v0 }
  0xa4   : > { %307 = vst.msk [vmem:[#allocation2 + $0x19] sm:$0xff] %vm250_vm0, %v11647_v10  ;;  %14498 = vst [vmem:[#allocation15_spill] sm:$0xff] %v11652_v11  ;;  %v1054_v10 = vld [vmem:[#allocation2 + $0x2] sm:$0xff] }
  0xa5   : > { %14499 = vst [vmem:[#allocation16_spill] sm:$0xff] %v11655_v12  ;;  %14500 = vst [vmem:[#allocation17_spill] sm:$0xff] %v11658_v13 }
  0xa6   : > { %308 = vst.msk [vmem:[#allocation2 + $0x21] sm:$0xff] %vm250_vm0, %v11652_v11  ;;  %309 = vst.msk [vmem:[#allocation2 + $0x31] sm:$0xff] %vm250_vm0, %v11655_v12 }
  0xa7   : > { %310 = vst.msk [vmem:[#allocation2 + $0x39] sm:$0xff] %vm250_vm0, %v11658_v13  ;;  %14501 = vst [vmem:[#allocation18_spill] sm:$0xff] %v11667_v14 }
  0xa8   : > { %14502 = vst [vmem:[#allocation19_spill] sm:$0xff] %v11670_v15  ;;  %14503 = vst [vmem:[#allocation20_spill] sm:$0xff] %v11673_v16 }
  0xa9   : > { %311 = vst.msk [vmem:[#allocation2 + $0x49] sm:$0xff] %vm250_vm0, %v11667_v14  ;;  %312 = vst.msk [vmem:[#allocation2 + $0x51] sm:$0xff] %vm250_vm0, %v11670_v15  ;;  %v12027_v15 = vld [vmem:[%s11419_s28 + $0xf0] sm:$0xff]  ;;  %v12032_v14 = vld [vmem:[%s11419_s28 + $0xf8] sm:$0xff] }
  0xaa   : > { %313 = vst.msk [vmem:[#allocation2 + $0x61] sm:$0xff] %vm250_vm0, %v11673_v16  ;;  %14504 = vst [vmem:[#allocation21_spill] sm:$0xff] %v11682_v18 }
  0xab   : > { %14505 = vst [vmem:[#allocation22_spill] sm:$0xff] %v11685_v19  ;;  %14506 = vst [vmem:[#allocation23_spill] sm:$0xff] %v11688_v20  ;;  %v11740_v35 = vld [vmem:[#allocation2 + $0x19] sm:$0xff] }
  0xac   : > { %314 = vst.msk [vmem:[#allocation2 + $0x69] sm:$0xff] %vm250_vm0, %v11682_v18  ;;  %315 = vst.msk [vmem:[#allocation2 + $0x79] sm:$0xff] %vm250_vm0, %v11685_v19  ;;  %9316 = vmatprep.mubr.msk.f32.mxu0 %vm250_vm0, %v11740_v35 }
  0xad   : > { %316 = vst.msk [vmem:[#allocation2 + $0x81] sm:$0xff] %vm250_vm0, %v11688_v20  ;;  %14507 = vst [vmem:[#allocation24_spill] sm:$0xff] %v11697_v22  ;;  %v11761_v38 = vld [vmem:[#allocation2 + $0x21] sm:$0xff]  ;;  %v11763_v39 = vld [vmem:[#allocation2 + $0x31] sm:$0xff] }
  0xae   : > { %14508 = vst [vmem:[#allocation25_spill] sm:$0xff] %v11700_v23  ;;  %14509 = vst [vmem:[#allocation26_spill] sm:$0xff] %v11703_v24  ;;  %9317 = vmatmul.mubr.msk.f32.gmra.mrb[2].mxu0 %vm250_vm0, %v11761_v38  ;;  %v11769_v40 = vld [vmem:[#allocation2 + $0x39] sm:$0xff] }
  0xaf   : > { %317 = vst.msk [vmem:[#allocation2 + $0x91] sm:$0xff] %vm250_vm0, %v11697_v22  ;;  %318 = vst.msk [vmem:[#allocation2 + $0x99] sm:$0xff] %vm250_vm0, %v11700_v23  ;;  %9319 = vmatprep.mubr.msk.f32.mxu0 %vm250_vm0, %v11763_v39 }
  0xb0   : > { %319 = vst.msk [vmem:[#allocation2 + $0xa9] sm:$0xff] %vm250_vm0, %v11703_v24  ;;  %14510 = vst [vmem:[#allocation27_spill] sm:$0xff] %v11712_v25  ;;  %v11777_v43 = vld [vmem:[#allocation2 + $0x49] sm:$0xff]  ;;  %v11801_v48 = vld [vmem:[#allocation2 + $0x51] sm:$0xff] }
  0xb1   : > { %14511 = vst [vmem:[#allocation28_spill] sm:$0xff] %v11715_v26  ;;  %14512 = vst [vmem:[#allocation29_spill] sm:$0xff] %v11718_v27  ;;  %v11815_v51 = vld [vmem:[#allocation2 + $0x61] sm:$0xff] }
  0xb2   : > { %320 = vst.msk [vmem:[#allocation2 + $0xb1] sm:$0xff] %vm250_vm0, %v11712_v25  ;;  %321 = vst.msk [vmem:[#allocation2 + $0xc1] sm:$0xff] %vm250_vm0, %v11715_v26  ;;  %9320 = vmatmul.mubr.msk.f32.gmra.mrb[4].mxu0 %vm250_vm0, %v11769_v40 }
  0xb3   : > { %322 = vst.msk [vmem:[#allocation2 + $0xc9] sm:$0xff] %vm250_vm0, %v11718_v27  ;;  %14513 = vst [vmem:[#allocation30_spill] sm:$0xff] %v11727_v30  ;;  %9322 = vmatprep.mubr.msk.f32.mxu0 %vm250_vm0, %v11777_v43  ;;  %v11825_v55 = vld [vmem:[#allocation2 + $0x69] sm:$0xff]  ;;  %v11827_v56 = vld [vmem:[#allocation2 + $0x79] sm:$0xff] }
  0xb4   : > { %323 = vst.msk [vmem:[#allocation2 + $0xd9] sm:$0xff] %vm250_vm0, %v11727_v30  ;;  %14514 = vst [vmem:[#allocation31_spill] sm:$0xff] %v11732_v32  ;;  %v11833_v57 = vld [vmem:[#allocation2 + $0x81] sm:$0xff] }
  0xb5   : > { %14515 = vst [vmem:[#allocation32_spill] sm:$0xff] %v11735_v33  ;;  %14516 = vst [vmem:[#allocation33_spill] sm:$0xff] %v11738_v34 }
  0xb6   : > { %324 = vst.msk [vmem:[#allocation2 + $0xe1] sm:$0xff] %vm250_vm0, %v11732_v32  ;;  %325 = vst.msk [vmem:[#allocation2 + $0xf1] sm:$0xff] %vm250_vm0, %v11735_v33  ;;  %9323 = vmatmul.mubr.msk.f32.gmra.mrb[6].mxu0 %vm250_vm0, %v11801_v48  ;;  %v11835_v58 = vld [vmem:[#allocation2 + $0x91] sm:$0xff]  ;;  %v11841_v59 = vld [vmem:[#allocation2 + $0x99] sm:$0xff] }
  0xb7   : > { %326 = vst.msk [vmem:[#allocation2 + $0xf9] sm:$0xff] %vm250_vm0, %v11738_v34  ;;  %14517 = vst [vmem:[#allocation34_spill] sm:$0xff] %v11749_v36  ;;  %9325 = vmatprep.mubr.msk.f32.mxu0 %vm250_vm0, %v11815_v51  ;;  %v11843_v60 = vld [vmem:[#allocation2 + $0xa9] sm:$0xff] }
  0xb8   : > { %14518 = vst [vmem:[#allocation35_spill] sm:$0xff] %v11752_v37  ;;  %327 = vst.msk [vmem:[#allocation2 + $0x109] sm:$0xff] %vm250_vm0, %v11749_v36  ;;  %v11968_v36 = vld [vmem:[#allocation2 + $0xa8] sm:$0xff] }
  0xb9   : > { %328 = vst.msk [vmem:[#allocation2 + $0x111] sm:$0xff] %vm250_vm0, %v11752_v37  ;;  %14519 = vst [vmem:[#allocation36_spill] sm:$0xff] %v11772_v41  ;;  %v11849_v61 = vld [vmem:[#allocation2 + $0xb1] sm:$0xff]  ;;  %v11851_v62 = vld [vmem:[#allocation2 + $0xc1] sm:$0xff] }
  0xba   : > { %14520 = vst [vmem:[#allocation37_spill] sm:$0xff] %v11775_v42  ;;  %329 = vst.msk [vmem:[#allocation2 + $0x121] sm:$0xff] %vm250_vm0, %v11772_v41  ;;  %9326 = vmatmul.mubr.msk.f32.gmra.mrb[8].mxu0 %vm250_vm0, %v11825_v55  ;;  %v11857_v63 = vld [vmem:[#allocation2 + $0xc9] sm:$0xff]  ;;  %v11966_v37 = vld [vmem:[#allocation2 + $0x98] sm:$0xff] }
  0xbb   : > { %330 = vst.msk [vmem:[#allocation2 + $0x129] sm:$0xff] %vm250_vm0, %v11775_v42  ;;  %14521 = vst [vmem:[#allocation38_spill] sm:$0xff] %v11784_v44  ;;  %9328 = vmatprep.mubr.msk.f32.mxu0 %vm250_vm0, %v11827_v56  ;;  %v11859_v0 = vld [vmem:[#allocation2 + $0xd9] sm:$0xff]  ;;  %v11925_v42 = vld [vmem:[#allocation2 + $0x30] sm:$0xff] }
  0xbc   : > { %331 = vst.msk [vmem:[#allocation2 + $0x139] sm:$0xff] %vm250_vm0, %v11784_v44  ;;  %14522 = vst [vmem:[#allocation39_spill] sm:$0xff] %v11791_v45  ;;  %v11923_v44 = vld [vmem:[#allocation2 + $0x20] sm:$0xff]  ;;  %v11974_v34 = vld [vmem:[#allocation2 + $0xb0] sm:$0xff] }
  0xbd   : > { %14523 = vst [vmem:[#allocation40_spill] sm:$0xff] %v11794_v46  ;;  %14524 = vst [vmem:[#allocation41_spill] sm:$0xff] %v11797_v47  ;;  %v11865_v1 = vld [vmem:[#allocation2 + $0xe1] sm:$0xff]  ;;  %v11867_v2 = vld [vmem:[#allocation2 + $0xf1] sm:$0xff] }
  0xbe   : > { %332 = vst.msk [vmem:[#allocation2 + $0x141] sm:$0xff] %vm250_vm0, %v11791_v45  ;;  %333 = vst.msk [vmem:[#allocation2 + $0x151] sm:$0xff] %vm250_vm0, %v11794_v46  ;;  %9329 = vmatmul.mubr.msk.f32.gmra.mrb[10].mxu0 %vm250_vm0, %v11833_v57  ;;  %v11873_v3 = vld [vmem:[#allocation2 + $0xf9] sm:$0xff]  ;;  %v1478_v45 = vld [vmem:[#allocation7 + $0x68] sm:$0xff] }
  0xbf   : > { %334 = vst.msk [vmem:[#allocation2 + $0x159] sm:$0xff] %vm250_vm0, %v11797_v47  ;;  %14525 = vst [vmem:[#allocation42_spill] sm:$0xff] %v11810_v49  ;;  %9331 = vmatprep.mubr.msk.f32.mxu0 %vm250_vm0, %v11835_v58  ;;  %v11875_v4 = vld [vmem:[#allocation2 + $0x109] sm:$0xff]  ;;  %v10333_v47 = vpack.c.bf16 %v1090_v53, %v1089_v52  ;;  %v1477_v46 = vld [vmem:[#allocation7 + $0x60] sm:$0xff] }
  0xc0   : > { %14526 = vst [vmem:[#allocation43_spill] sm:$0xff] %v11813_v50  ;;  %335 = vst.msk [vmem:[#allocation2 + $0x169] sm:$0xff] %vm250_vm0, %v11810_v49  ;;  %v11881_v5 = vld [vmem:[#allocation2 + $0x111] sm:$0xff]  ;;  %v11927_v41 = vpack.c.bf16 %v1478_v45, %v1477_v46  ;;  %v11944_v46 = vld [vmem:[#allocation2 + $0x60] sm:$0xff] }
  0xc1   : > { %336 = vst.msk [vmem:[#allocation2 + $0x171] sm:$0xff] %vm250_vm0, %v11813_v50  ;;  %v11883_v6 = vld [vmem:[#allocation2 + $0x121] sm:$0xff]  ;;  %v11918_v49 = vld [vmem:[#allocation2 + $0x18] sm:$0xff]  ;;  %v11942_v45 = vld [vmem:[#allocation2 + $0x50] sm:$0xff] }
  0xc2   : > { %9332 = vmatmul.mubr.msk.f32.gmra.mrb[12].mxu0 %vm250_vm0, %v11841_v59  ;;  %14527 = vst [vmem:[#allocation44_spill] sm:$0xff] %v11883_v6  ;;  %v11889_v7 = vld [vmem:[#allocation2 + $0x129] sm:$0xff]  ;;  %v11958_v52 = vld [vmem:[#allocation2 + $0x80] sm:$0xff]  ;;  %v11984_v30 = vld [vmem:[#allocation2 + $0xd8] sm:$0xff] }
  0xc3   : > { %9334 = vmatprep.mubr.msk.f32.mxu0 %vm250_vm0, %v11843_v60  ;;  %14528 = vst [vmem:[#allocation45_spill] sm:$0xff] %v11889_v7  ;;  %v11891_v8 = vld [vmem:[#allocation2 + $0x139] sm:$0xff]  ;;  %v340_v50 = vld [vmem:[#allocation2 + $0x8] sm:$0xff]  ;;  %v11960_v53 = vld [vmem:[#allocation2 + $0x90] sm:$0xff] }
  0xc4   : > { %14529 = vst [vmem:[#allocation46_spill] sm:$0xff] %v11891_v8  ;;  %v11976_v33 = vld [vmem:[#allocation2 + $0xc0] sm:$0xff]  ;;  %v11982_v32 = vld [vmem:[#allocation2 + $0xc8] sm:$0xff]  ;;  %v11992_v26 = vld [vmem:[#allocation2 + $0xf0] sm:$0xff] }
  0xc5   : > { %v11897_v9 = vld [vmem:[#allocation2 + $0x141] sm:$0xff]  ;;  %v11899_v17 = vld [vmem:[#allocation2 + $0x151] sm:$0xff]  ;;  %14535 = vst [vmem:[#allocation52_spill] sm:$0xff] %v12027_v15  ;;  %337 = vst.msk [vmem:[#allocation2 + $0x181] sm:$0xff] %vm250_vm0, %v12027_v15 }
  0xc6   : > { %9335 = vmatmul.mubr.msk.f32.gmra.mrb[14].mxu0 %vm250_vm0, %v11849_v61  ;;  %14530 = vst [vmem:[#allocation47_spill] sm:$0xff] %v11897_v9  ;;  %14531 = vst [vmem:[#allocation48_spill] sm:$0xff] %v11899_v17  ;;  %v11905_v21 = vld [vmem:[#allocation2 + $0x159] sm:$0xff]  ;;  %v12000_v24 = vld [vmem:[#allocation2 + $0x108] sm:$0xff] }
  0xc7   : > { %9337 = vmatprep.mubr.msk.f32.mxu0 %vm250_vm0, %v11851_v62  ;;  %14532 = vst [vmem:[#allocation49_spill] sm:$0xff] %v11905_v21  ;;  %v11907_v28 = vld [vmem:[#allocation2 + $0x169] sm:$0xff]  ;;  %v11990_v27 = vld [vmem:[#allocation2 + $0xe0] sm:$0xff]  ;;  %v11998_v25 = vld [vmem:[#allocation2 + $0xf8] sm:$0xff] }
  0xc8   : > { %14533 = vst [vmem:[#allocation50_spill] sm:$0xff] %v11907_v28  ;;  %v11913_v29 = vld [vmem:[#allocation2 + $0x171] sm:$0xff]  ;;  %v12008_v22 = vld [vmem:[#allocation2 + $0x120] sm:$0xff]  ;;  %v12014_v20 = vld [vmem:[#allocation2 + $0x128] sm:$0xff] }
  0xc9   : > { %14534 = vst [vmem:[#allocation51_spill] sm:$0xff] %v11913_v29  ;;  %v12006_v23 = vld [vmem:[#allocation2 + $0x110] sm:$0xff]  ;;  %v12016_v19 = vld [vmem:[#allocation2 + $0x138] sm:$0xff]  ;;  %v12022_v18 = vld [vmem:[#allocation2 + $0x140] sm:$0xff] }
  0xca   : > { %9338 = vmatmul.mubr.msk.f32.gmra.mrb[16].mxu0 %vm250_vm0, %v11857_v63  ;;  %v12024_v16 = vld [vmem:[#allocation2 + $0x150] sm:$0xff]  ;;  %14536 = vst [vmem:[#allocation53_spill] sm:$0xff] %v12032_v14  ;;  %338 = vst.msk [vmem:[#allocation2 + $0x189] sm:$0xff] %vm250_vm0, %v12032_v14  ;;  %v12040_v13 = vld [vmem:[#allocation2 + $0x158] sm:$0xff] }
  0xcb   : > { %9340 = vmatprep.mubr.msk.f32.mxu0 %vm250_vm0, %v11859_v0  ;;  %v12042_v12 = vld [vmem:[#allocation2 + $0x168] sm:$0xff]  ;;  %v12048_v11 = vld [vmem:[#allocation2 + $0x170] sm:$0xff] }
  0xcc   : > { %v1479_v15 = vld [vmem:[#allocation7 + $0x70] sm:$0xff] }
  0xcd   : > { %v1055_v14 = vld [vmem:[#allocation2 + $0xa] sm:$0xff] }
  0xce   : > { %9341 = vmatmul.mubr.msk.f32.gmra.mrb[18].mxu0 %vm250_vm0, %v11865_v1 }
  0xcf   : > { %9343 = vmatprep.mubr.msk.f32.mxu0 %vm250_vm0, %v11867_v2 }
  0xd2   : > { %9344 = vmatmul.mubr.msk.f32.gmra.mrb[20].mxu0 %vm250_vm0, %v11873_v3 }
  0xd3   : > { %9346 = vmatprep.mubr.msk.f32.mxu0 %vm250_vm0, %v11875_v4 }
  0xd6   : > { %9347 = vmatmul.mubr.msk.f32.gmra.mrb[22].mxu0 %vm250_vm0, %v11881_v5 }
  0xd7   : > { %9349 = vmatprep.mubr.msk.f32.mxu0 %vm250_vm0, %v11883_v6 }
  0xda   : > { %9350 = vmatmul.mubr.msk.f32.gmra.mrb[24].mxu0 %vm250_vm0, %v11889_v7  ;;  %v12061_v7 = vld [vmem:[#allocation2 + $0x32] sm:$0xff] }
  0xdb   : > { %9352 = vmatprep.mubr.msk.f32.mxu0 %vm250_vm0, %v11891_v8  ;;  %v12059_v8 = vld [vmem:[#allocation2 + $0x22] sm:$0xff] }
  0xde   : > { %9353 = vmatmul.mubr.msk.f32.gmra.mrb[26].mxu0 %vm250_vm0, %v11897_v9  ;;  %v1868_v9 = vld [vmem:[#allocation7 + $0x88] sm:$0xff] }
  0xdf   : > { %9355 = vmatprep.mubr.msk.f32.mxu0 %vm250_vm0, %v11899_v17  ;;  %v1867_v17 = vld [vmem:[#allocation7 + $0x80] sm:$0xff] }
  0xe0   : > { %v12063_v6 = vpack.c.bf16 %v1868_v9, %v1867_v17  ;;  %v12086_v9 = vld [vmem:[#allocation2 + $0x6a] sm:$0xff]  ;;  %v12088_v17 = vld [vmem:[#allocation2 + $0x7a] sm:$0xff] }
  0xe1   : > { %14541 = vst [vmem:[#allocation58_spill] sm:$0xff] %v12086_v9  ;;  %14542 = vst [vmem:[#allocation59_spill] sm:$0xff] %v12088_v17 }
  0xe2   : > { %9356 = vmatmul.mubr.msk.f32.gmra.mrb[28].mxu0 %vm250_vm0, %v11905_v21 }
  0xe3   : > { %9358 = vmatprep.mubr.msk.f32.mxu0 %vm250_vm0, %v11907_v28  ;;  %v12053_v28 = vld [vmem:[#allocation2 + $0x1a] sm:$0xff] }
  0xe6   : > { %9359 = vmatmul.mubr.msk.f32.gmra.mrb[30].mxu0 %vm250_vm0, %v11913_v29  ;;  %v1480_v29 = vld [vmem:[#allocation7 + $0x78] sm:$0xff] }
  0xe7   : > { %9369 = vmatprep.mubr.msk.f32.mxu0 %vm250_vm0, %v339_v31  ;;  %v11933_v31 = vld [vmem:[#allocation2 + $0x38] sm:$0xff]  ;;  %v10341_v21 = vpack.c.bf16 %v1480_v29, %v1479_v15 }
  0xe8   : > { %v12078_v15 = vld [vmem:[#allocation2 + $0x52] sm:$0xff] }
  0xe9   : > { %14539 = vst [vmem:[#allocation56_spill] sm:$0xff] %v12078_v15  ;;  %v12096_v29 = vld [vmem:[#allocation2 + $0x92] sm:$0xff] }
  0xea   : > { %9370 = vmatmul.mubr.msk.f32.vlgmr.msra.gmra.mrb[0].mxu0 %vm250_vm0, %v340_v50  ;;  %v11935_v50 = vld [vmem:[#allocation2 + $0x48] sm:$0xff]  ;;  %14544 = vst [vmem:[#allocation61_spill] sm:$0xff] %v12096_v29 }
  0xeb   : > { %10332 = vmatpush3.bf16.msra.mxu0 %v10329_v54  ;;  %9372 = vmatprep.mubr.msk.f32.mxu0 %vm250_vm0, %v11918_v49  ;;  %v11952_v54 = vld [vmem:[#allocation2 + $0x78] sm:$0xff] }
  0xec   : > { %10334 = vmatprep.subr.bf16.mxu0 %v10333_v47 }
  0xee   : > { %9373 = vmatmul.mubr.msk.f32.gmra.mrb[2].mxu0 %vm250_vm0, %v11923_v44 }
  0xef   : > { %9375 = vmatprep.mubr.msk.f32.mxu0 %vm250_vm0, %v11925_v42  ;;  %10336 = vmatpush3.bf16.msra.mxu0 %v10333_v47  ;;  %v11950_v47 = vld [vmem:[#allocation2 + $0x68] sm:$0xff] }
  0xf0   : > { %10338 = vmatprep.subr.bf16.mxu0 %v11927_v41 }
  0xf2   : > { %9376 = vmatmul.mubr.msk.f32.gmra.mrb[4].mxu0 %vm250_vm0, %v11933_v31 }
  0xf3   : > { %9378 = vmatprep.mubr.msk.f32.mxu0 %vm250_vm0, %v11935_v50 }
  0xf6   : > { %9379 = vmatmul.mubr.msk.f32.gmra.mrb[6].mxu0 %vm250_vm0, %v11942_v45 }
  0xf7   : > { %9381 = vmatprep.mubr.msk.f32.mxu0 %vm250_vm0, %v11944_v46 }
  0xfa   : > { %9382 = vmatmul.mubr.msk.f32.gmra.mrb[8].mxu0 %vm250_vm0, %v11950_v47 }
  0xfb   : > { %9384 = vmatprep.mubr.msk.f32.mxu0 %vm250_vm0, %v11952_v54 }
  0xfe   : > { %9385 = vmatmul.mubr.msk.f32.gmra.mrb[10].mxu0 %vm250_vm0, %v11958_v52 }
  0xff   : > { %9387 = vmatprep.mubr.msk.f32.mxu0 %vm250_vm0, %v11960_v53 }
 0x102   : > { %9388 = vmatmul.mubr.msk.f32.gmra.mrb[12].mxu0 %vm250_vm0, %v11966_v37 }
 0x103   : > { %9390 = vmatprep.mubr.msk.f32.mxu0 %vm250_vm0, %v11968_v36 }
 0x106   : > { %9391 = vmatmul.mubr.msk.f32.gmra.mrb[14].mxu0 %vm250_vm0, %v11974_v34 }
 0x107   : > { %9393 = vmatprep.mubr.msk.f32.mxu0 %vm250_vm0, %v11976_v33 }
 0x10a   : > { %9394 = vmatmul.mubr.msk.f32.gmra.mrb[16].mxu0 %vm250_vm0, %v11982_v32 }
 0x10b   : > { %9396 = vmatprep.mubr.msk.f32.mxu0 %vm250_vm0, %v11984_v30 }
 0x10e   : > { %9397 = vmatmul.mubr.msk.f32.gmra.mrb[18].mxu0 %vm250_vm0, %v11990_v27 }
 0x10f   : > { %9399 = vmatprep.mubr.msk.f32.mxu0 %vm250_vm0, %v11992_v26 }
 0x112   : > { %9400 = vmatmul.mubr.msk.f32.gmra.mrb[20].mxu0 %vm250_vm0, %v11998_v25 }
 0x113   : > { %9402 = vmatprep.mubr.msk.f32.mxu0 %vm250_vm0, %v12000_v24 }
 0x116   : > { %9403 = vmatmul.mubr.msk.f32.gmra.mrb[22].mxu0 %vm250_vm0, %v12006_v23 }
 0x117   : > { %9405 = vmatprep.mubr.msk.f32.mxu0 %vm250_vm0, %v12008_v22 }
 0x11a   : > { %9406 = vmatmul.mubr.msk.f32.gmra.mrb[24].mxu0 %vm250_vm0, %v12014_v20 }
 0x11b   : > { %9408 = vmatprep.mubr.msk.f32.mxu0 %vm250_vm0, %v12016_v19 }
 0x11e   : > { %9409 = vmatmul.mubr.msk.f32.gmra.mrb[26].mxu0 %vm250_vm0, %v12022_v18 }
 0x11f   : > { %9411 = vmatprep.mubr.msk.f32.mxu0 %vm250_vm0, %v12024_v16 }
 0x122   : > { %9412 = vmatmul.mubr.msk.f32.gmra.mrb[28].mxu0 %vm250_vm0, %v12040_v13 }
 0x123   : > { %9414 = vmatprep.mubr.msk.f32.mxu0 %vm250_vm0, %v12042_v12 }
 0x126   : > { %9415 = vmatmul.mubr.msk.f32.gmra.mrb[30].mxu0 %vm250_vm0, %v12048_v11 }
 0x127   : > { %9425 = vmatprep.mubr.msk.f32.mxu0 %vm250_vm0, %v1054_v10  ;;  %v12069_v10 = vld [vmem:[#allocation2 + $0x3a] sm:$0xff] }
 0x128   : > { %14537 = vst [vmem:[#allocation54_spill] sm:$0xff] %v12069_v10 }
 0x12a   : > { %9426 = vmatmul.mubr.msk.f32.vlgmr.msra.gmra.mrb[0].mxu0 %vm250_vm0, %v1055_v14  ;;  %v12071_v14 = vld [vmem:[#allocation2 + $0x4a] sm:$0xff] }
 0x12b   : > { %10340 = vmatpush3.bf16.msra.mxu0 %v11927_v41  ;;  %9428 = vmatprep.mubr.msk.f32.mxu0 %vm250_vm0, %v12053_v28  ;;  %14538 = vst [vmem:[#allocation55_spill] sm:$0xff] %v12071_v14  ;;  %v12080_v41 = vld [vmem:[#allocation2 + $0x62] sm:$0xff] }
 0x12c   : > { %10342 = vmatprep.subr.bf16.mxu0 %v10341_v21  ;;  %14540 = vst [vmem:[#allocation57_spill] sm:$0xff] %v12080_v41 }
 0x12e   : > { %9429 = vmatmul.mubr.msk.f32.gmra.mrb[2].mxu0 %vm250_vm0, %v12059_v8 }
 0x12f   : > { %9431 = vmatprep.mubr.msk.f32.mxu0 %vm250_vm0, %v12061_v7  ;;  %10344 = vmatpush3.bf16.msra.mxu0 %v10341_v21  ;;  %v12094_v21 = vld [vmem:[#allocation2 + $0x82] sm:$0xff] }
 0x130   : > { %10346 = vmatprep.subr.bf16.mxu0 %v12063_v6  ;;  %14543 = vst [vmem:[#allocation60_spill] sm:$0xff] %v12094_v21 }
 0x132   : > { %9432 = vmatmul.mubr.msk.f32.gmra.mrb[4].mxu0 %vm250_vm0, %v12069_v10  ;;  %v2258_v10 = vld [vmem:[#allocation7 + $0xa8] sm:$0xff] }
 0x133   : > { %9434 = vmatprep.mubr.msk.f32.mxu0 %vm250_vm0, %v12071_v14  ;;  %v1870_v14 = vld [vmem:[#allocation7 + $0x98] sm:$0xff] }
 0x136   : > { %9435 = vmatmul.mubr.msk.f32.gmra.mrb[6].mxu0 %vm250_vm0, %v12078_v15  ;;  %v12104_v15 = vld [vmem:[#allocation2 + $0xaa] sm:$0xff] }
 0x137   : > { %9437 = vmatprep.mubr.msk.f32.mxu0 %vm250_vm0, %v12080_v41  ;;  %v12102_v41 = vld [vmem:[#allocation2 + $0x9a] sm:$0xff]  ;;  %14546 = vst [vmem:[#allocation63_spill] sm:$0xff] %v12104_v15 }
 0x138   : > { %14545 = vst [vmem:[#allocation62_spill] sm:$0xff] %v12102_v41 }
 0x13a   : > { %9438 = vmatmul.mubr.msk.f32.gmra.mrb[8].mxu0 %vm250_vm0, %v12086_v9  ;;  %v12112_v9 = vld [vmem:[#allocation2 + $0xc2] sm:$0xff] }
 0x13b   : > { %9440 = vmatprep.mubr.msk.f32.mxu0 %vm250_vm0, %v12088_v17  ;;  %v12110_v17 = vld [vmem:[#allocation2 + $0xb2] sm:$0xff]  ;;  %14548 = vst [vmem:[#allocation65_spill] sm:$0xff] %v12112_v9 }
 0x13c   : > { %14547 = vst [vmem:[#allocation64_spill] sm:$0xff] %v12110_v17 }
 0x13e   : > { %9441 = vmatmul.mubr.msk.f32.gmra.mrb[10].mxu0 %vm250_vm0, %v12094_v21  ;;  %v12120_v21 = vld [vmem:[#allocation2 + $0xda] sm:$0xff] }
 0x13f   : > { %9443 = vmatprep.mubr.msk.f32.mxu0 %vm250_vm0, %v12096_v29  ;;  %v12118_v29 = vld [vmem:[#allocation2 + $0xca] sm:$0xff]  ;;  %14550 = vst [vmem:[#allocation67_spill] sm:$0xff] %v12120_v21 }
 0x140   : > { %14549 = vst [vmem:[#allocation66_spill] sm:$0xff] %v12118_v29 }
 0x142   : > { %9444 = vmatmul.mubr.msk.f32.gmra.mrb[12].mxu0 %vm250_vm0, %v12102_v41  ;;  %v12128_v41 = vld [vmem:[#allocation2 + $0xf2] sm:$0xff] }
 0x143   : > { %9446 = vmatprep.mubr.msk.f32.mxu0 %vm250_vm0, %v12104_v15  ;;  %v12126_v15 = vld [vmem:[#allocation2 + $0xe2] sm:$0xff]  ;;  %14552 = vst [vmem:[#allocation69_spill] sm:$0xff] %v12128_v41 }
 0x144   : > { %14551 = vst [vmem:[#allocation68_spill] sm:$0xff] %v12126_v15 }
 0x146   : > { %9447 = vmatmul.mubr.msk.f32.gmra.mrb[14].mxu0 %vm250_vm0, %v12110_v17  ;;  %v12136_v17 = vld [vmem:[#allocation2 + $0x10a] sm:$0xff] }
 0x147   : > { %9449 = vmatprep.mubr.msk.f32.mxu0 %vm250_vm0, %v12112_v9  ;;  %v12134_v9 = vld [vmem:[#allocation2 + $0xfa] sm:$0xff]  ;;  %14554 = vst [vmem:[#allocation71_spill] sm:$0xff] %v12136_v17 }
 0x148   : > { %14553 = vst [vmem:[#allocation70_spill] sm:$0xff] %v12134_v9 }
 0x14a   : > { %9450 = vmatmul.mubr.msk.f32.gmra.mrb[16].mxu0 %vm250_vm0, %v12118_v29  ;;  %v12144_v29 = vld [vmem:[#allocation2 + $0x122] sm:$0xff] }
 0x14b   : > { %9452 = vmatprep.mubr.msk.f32.mxu0 %vm250_vm0, %v12120_v21  ;;  %v12142_v21 = vld [vmem:[#allocation2 + $0x112] sm:$0xff]  ;;  %14556 = vst [vmem:[#allocation73_spill] sm:$0xff] %v12144_v29 }
 0x14c   : > { %14555 = vst [vmem:[#allocation72_spill] sm:$0xff] %v12142_v21 }
 0x14e   : > { %9453 = vmatmul.mubr.msk.f32.gmra.mrb[18].mxu0 %vm250_vm0, %v12126_v15  ;;  %v12152_v15 = vld [vmem:[#allocation2 + $0x13a] sm:$0xff] }
 0x14f   : > { %9455 = vmatprep.mubr.msk.f32.mxu0 %vm250_vm0, %v12128_v41  ;;  %v12150_v41 = vld [vmem:[#allocation2 + $0x12a] sm:$0xff]  ;;  %14558 = vst [vmem:[#allocation75_spill] sm:$0xff] %v12152_v15 }
 0x150   : > { %14557 = vst [vmem:[#allocation74_spill] sm:$0xff] %v12150_v41 }
 0x152   : > { %9456 = vmatmul.mubr.msk.f32.gmra.mrb[20].mxu0 %vm250_vm0, %v12134_v9  ;;  %v12160_v9 = vld [vmem:[#allocation2 + $0x152] sm:$0xff] }
 0x153   : > { %9458 = vmatprep.mubr.msk.f32.mxu0 %vm250_vm0, %v12136_v17  ;;  %v12158_v17 = vld [vmem:[#allocation2 + $0x142] sm:$0xff]  ;;  %14560 = vst [vmem:[#allocation77_spill] sm:$0xff] %v12160_v9 }
 0x154   : > { %14559 = vst [vmem:[#allocation76_spill] sm:$0xff] %v12158_v17 }
 0x156   : > { %9459 = vmatmul.mubr.msk.f32.gmra.mrb[22].mxu0 %vm250_vm0, %v12142_v21  ;;  %v12168_v21 = vld [vmem:[#allocation2 + $0x16a] sm:$0xff] }
 0x157   : > { %9461 = vmatprep.mubr.msk.f32.mxu0 %vm250_vm0, %v12144_v29  ;;  %v12166_v29 = vld [vmem:[#allocation2 + $0x15a] sm:$0xff]  ;;  %14562 = vst [vmem:[#allocation79_spill] sm:$0xff] %v12168_v21 }
 0x158   : > { %14561 = vst [vmem:[#allocation78_spill] sm:$0xff] %v12166_v29 }
 0x15a   : > { %9462 = vmatmul.mubr.msk.f32.gmra.mrb[24].mxu0 %vm250_vm0, %v12150_v41  ;;  %v1869_v41 = vld [vmem:[#allocation7 + $0x90] sm:$0xff] }
 0x15b   : > { %9464 = vmatprep.mubr.msk.f32.mxu0 %vm250_vm0, %v12152_v15  ;;  %v12174_v15 = vld [vmem:[#allocation2 + $0x172] sm:$0xff] }
 0x15e   : > { %9465 = vmatmul.mubr.msk.f32.gmra.mrb[26].mxu0 %vm250_vm0, %v12158_v17  ;;  %v2257_v17 = vld [vmem:[#allocation7 + $0xa0] sm:$0xff] }
 0x15f   : > { %9467 = vmatprep.mubr.msk.f32.mxu0 %vm250_vm0, %v12160_v9  ;;  %v10349_v9 = vpack.c.bf16 %v1870_v14, %v1869_v41  ;;  %v2648_v41 = vld [vmem:[#allocation7 + $0xc0] sm:$0xff] }
 0x162   : > { %9468 = vmatmul.mubr.msk.f32.gmra.mrb[28].mxu0 %vm250_vm0, %v12166_v29 }
 0x163   : > { %9470 = vmatprep.mubr.msk.f32.mxu0 %vm250_vm0, %v12168_v21  ;;  %v10353_v21 = vpack.c.bf16 %v2258_v10, %v2257_v17  ;;  %v2260_v10 = vld [vmem:[#allocation7 + $0xb8] sm:$0xff] }
 0x166   : > { %9471 = vmatmul.mubr.msk.f32.gmra.mrb[30].mxu0 %vm250_vm0, %v12174_v15 }
 0x167   : > { %9481 = vmatprep.mubr.msk.f32.mxu0 %vm250_vm0, %v11918_v49  ;;  %v12243_v49 = vld [vmem:[#allocation2 + $0x188] sm:$0xff] }
 0x16a   : > { %9482 = vmatmul.mubr.msk.f32.vlgmr.msra.gmra.mrb[0].mxu0 %vm250_vm0, %v11923_v44  ;;  %v12237_v44 = vld [vmem:[#allocation2 + $0x180] sm:$0xff] }
 0x16b   : > { %10348 = vmatpush3.bf16.msra.mxu0 %v12063_v6  ;;  %9484 = vmatprep.mubr.msk.f32.mxu0 %vm250_vm0, %v11925_v42  ;;  %v2259_v6 = vld [vmem:[#allocation7 + $0xb0] sm:$0xff] }
 0x16c   : > { %10350 = vmatprep.subr.bf16.mxu0 %v10349_v9  ;;  %v10357_v14 = vpack.c.bf16 %v2260_v10, %v2259_v6  ;;  %v14580_v6 = vld [vmem:[#allocation63_spill] sm:$0xff]  ;;  %v14581_v10 = vld [vmem:[#allocation64_spill] sm:$0xff] }
 0x16e   : > { %9485 = vmatmul.mubr.msk.f32.gmra.mrb[2].mxu0 %vm250_vm0, %v11933_v31 }
 0x16f   : > { %9487 = vmatprep.mubr.msk.f32.mxu0 %vm250_vm0, %v11935_v50  ;;  %10352 = vmatpush3.bf16.msra.mxu0 %v10349_v9  ;;  %v2649_v9 = vld [vmem:[#allocation7 + $0xc8] sm:$0xff] }
 0x170   : > { %10354 = vmatprep.subr.bf16.mxu0 %v10353_v21  ;;  %v10361_v17 = vpack.c.bf16 %v2649_v9, %v2648_v41  ;;  %v14583_v41 = vld [vmem:[#allocation66_spill] sm:$0xff]  ;;  %v14584_v9 = vld [vmem:[#allocation67_spill] sm:$0xff] }
 0x172   : > { %9488 = vmatmul.mubr.msk.f32.gmra.mrb[4].mxu0 %vm250_vm0, %v11942_v45 }
 0x173   : > { %9490 = vmatprep.mubr.msk.f32.mxu0 %vm250_vm0, %v11944_v46 }
 0x176   : > { %9491 = vmatmul.mubr.msk.f32.gmra.mrb[6].mxu0 %vm250_vm0, %v11950_v47 }
 0x177   : > { %9493 = vmatprep.mubr.msk.f32.mxu0 %vm250_vm0, %v11952_v54 }
 0x17a   : > { %9494 = vmatmul.mubr.msk.f32.gmra.mrb[8].mxu0 %vm250_vm0, %v11958_v52 }
 0x17b   : > { %9496 = vmatprep.mubr.msk.f32.mxu0 %vm250_vm0, %v11960_v53 }
 0x17e   : > { %9497 = vmatmul.mubr.msk.f32.gmra.mrb[10].mxu0 %vm250_vm0, %v11966_v37 }
 0x17f   : > { %9499 = vmatprep.mubr.msk.f32.mxu0 %vm250_vm0, %v11968_v36 }
 0x182   : > { %9500 = vmatmul.mubr.msk.f32.gmra.mrb[12].mxu0 %vm250_vm0, %v11974_v34 }
 0x183   : > { %9502 = vmatprep.mubr.msk.f32.mxu0 %vm250_vm0, %v11976_v33 }
 0x186   : > { %9503 = vmatmul.mubr.msk.f32.gmra.mrb[14].mxu0 %vm250_vm0, %v11982_v32 }
 0x187   : > { %9505 = vmatprep.mubr.msk.f32.mxu0 %vm250_vm0, %v11984_v30 }
 0x18a   : > { %9506 = vmatmul.mubr.msk.f32.gmra.mrb[16].mxu0 %vm250_vm0, %v11990_v27 }
 0x18b   : > { %9508 = vmatprep.mubr.msk.f32.mxu0 %vm250_vm0, %v11992_v26 }
 0x18e   : > { %9509 = vmatmul.mubr.msk.f32.gmra.mrb[18].mxu0 %vm250_vm0, %v11998_v25 }
 0x18f   : > { %9511 = vmatprep.mubr.msk.f32.mxu0 %vm250_vm0, %v12000_v24 }
 0x192   : > { %9512 = vmatmul.mubr.msk.f32.gmra.mrb[20].mxu0 %vm250_vm0, %v12006_v23 }
 0x193   : > { %9514 = vmatprep.mubr.msk.f32.mxu0 %vm250_vm0, %v12008_v22 }
 0x196   : > { %9515 = vmatmul.mubr.msk.f32.gmra.mrb[22].mxu0 %vm250_vm0, %v12014_v20 }
 0x197   : > { %9517 = vmatprep.mubr.msk.f32.mxu0 %vm250_vm0, %v12016_v19 }
 0x19a   : > { %9518 = vmatmul.mubr.msk.f32.gmra.mrb[24].mxu0 %vm250_vm0, %v12022_v18 }
 0x19b   : > { %9520 = vmatprep.mubr.msk.f32.mxu0 %vm250_vm0, %v12024_v16 }
 0x19e   : > { %9521 = vmatmul.mubr.msk.f32.gmra.mrb[26].mxu0 %vm250_vm0, %v12040_v13 }
 0x19f   : > { %9523 = vmatprep.mubr.msk.f32.mxu0 %vm250_vm0, %v12042_v12 }
 0x1a2   : > { %9524 = vmatmul.mubr.msk.f32.gmra.mrb[28].mxu0 %vm250_vm0, %v12048_v11 }
 0x1a3   : > { %9526 = vmatprep.mubr.msk.f32.mxu0 %vm250_vm0, %v12237_v44 }
 0x1a6   : > { %9527 = vmatmul.mubr.msk.f32.gmra.mrb[30].mxu0 %vm250_vm0, %v12243_v49 }
 0x1a7   : > { %9537 = vmatprep.mubr.msk.f32.mxu0 %vm250_vm0, %v11740_v35  ;;  %v14563_v35 = vld [vmem:[#allocation44_spill] sm:$0xff] }
 0x1aa   : > { %9538 = vmatmul.mubr.msk.f32.vlgmr.msra.gmra.mrb[0].mxu0 %vm250_vm0, %v11761_v38  ;;  %v14564_v38 = vld [vmem:[#allocation45_spill] sm:$0xff] }
 0x1ab   : > { %10356 = vmatpush3.bf16.msra.mxu0 %v10353_v21  ;;  %9540 = vmatprep.mubr.msk.f32.mxu0 %vm250_vm0, %v11763_v39  ;;  %v14565_v39 = vld [vmem:[#allocation46_spill] sm:$0xff] }
 0x1ac   : > { %10358 = vmatprep.subr.bf16.mxu0 %v10357_v14  ;;  %v14579_v21 = vld [vmem:[#allocation62_spill] sm:$0xff] }
 0x1ae   : > { %9541 = vmatmul.mubr.msk.f32.gmra.mrb[2].mxu0 %vm250_vm0, %v11769_v40  ;;  %v14566_v40 = vld [vmem:[#allocation47_spill] sm:$0xff] }
 0x1af   : > { %9543 = vmatprep.mubr.msk.f32.mxu0 %vm250_vm0, %v11777_v43  ;;  %10360 = vmatpush3.bf16.msra.mxu0 %v10357_v14  ;;  %v14567_v43 = vld [vmem:[#allocation48_spill] sm:$0xff]  ;;  %v14582_v14 = vld [vmem:[#allocation65_spill] sm:$0xff] }
 0x1b0   : > { %10362 = vmatprep.subr.bf16.mxu0 %v10361_v17 }
 0x1b2   : > { %9544 = vmatmul.mubr.msk.f32.gmra.mrb[4].mxu0 %vm250_vm0, %v11801_v48  ;;  %v14568_v48 = vld [vmem:[#allocation49_spill] sm:$0xff] }
 0x1b3   : > { %9546 = vmatprep.mubr.msk.f32.mxu0 %vm250_vm0, %v11815_v51  ;;  %v14569_v51 = vld [vmem:[#allocation50_spill] sm:$0xff] }
 0x1b6   : > { %9547 = vmatmul.mubr.msk.f32.gmra.mrb[6].mxu0 %vm250_vm0, %v11825_v55  ;;  %v12305_v55 = vld [vmem:[#allocation2 + $0x181] sm:$0xff] }
 0x1b7   : > { %9549 = vmatprep.mubr.msk.f32.mxu0 %vm250_vm0, %v11827_v56  ;;  %v14570_v56 = vld [vmem:[#allocation51_spill] sm:$0xff] }
 0x1ba   : > { %9550 = vmatmul.mubr.msk.f32.gmra.mrb[8].mxu0 %vm250_vm0, %v11833_v57  ;;  %v12311_v57 = vld [vmem:[#allocation2 + $0x189] sm:$0xff] }
 0x1bb   : > { %9552 = vmatprep.mubr.msk.f32.mxu0 %vm250_vm0, %v11835_v58  ;;  %v2650_v58 = vld [vmem:[#allocation7 + $0xd0] sm:$0xff] }
 0x1be   : > { %9553 = vmatmul.mubr.msk.f32.gmra.mrb[10].mxu0 %vm250_vm0, %v11841_v59  ;;  %v2651_v59 = vld [vmem:[#allocation7 + $0xd8] sm:$0xff] }
 0x1bf   : > { %9555 = vmatprep.mubr.msk.f32.mxu0 %vm250_vm0, %v11843_v60  ;;  %v10365_v60 = vpack.c.bf16 %v2651_v59, %v2650_v58  ;;  %v14594_v58 = vld [vmem:[#allocation77_spill] sm:$0xff]  ;;  %v14595_v59 = vld [vmem:[#allocation79_spill] sm:$0xff] }
 0x1c2   : > { %9556 = vmatmul.mubr.msk.f32.gmra.mrb[12].mxu0 %vm250_vm0, %v11849_v61  ;;  %v3038_v61 = vld [vmem:[#allocation7 + $0xe0] sm:$0xff] }
 0x1c3   : > { %9558 = vmatprep.mubr.msk.f32.mxu0 %vm250_vm0, %v11851_v62  ;;  %v3039_v62 = vld [vmem:[#allocation7 + $0xe8] sm:$0xff] }
 0x1c6   : > { %9559 = vmatmul.mubr.msk.f32.gmra.mrb[14].mxu0 %vm250_vm0, %v11857_v63  ;;  %v10369_v63 = vpack.c.bf16 %v3039_v62, %v3038_v61  ;;  %v12379_v61 = vld [vmem:[#allocation2 + $0x18a] sm:$0xff] }
 0x1c7   : > { %9561 = vmatprep.mubr.msk.f32.mxu0 %vm250_vm0, %v11859_v0  ;;  %v14571_v0 = vld [vmem:[#allocation54_spill] sm:$0xff]  ;;  %v3040_v62 = vld [vmem:[#allocation7 + $0xf0] sm:$0xff] }
 0x1ca   : > { %9562 = vmatmul.mubr.msk.f32.gmra.mrb[16].mxu0 %vm250_vm0, %v11865_v1  ;;  %v14572_v1 = vld [vmem:[#allocation55_spill] sm:$0xff] }
 0x1cb   : > { %9564 = vmatprep.mubr.msk.f32.mxu0 %vm250_vm0, %v11867_v2  ;;  %v14573_v2 = vld [vmem:[#allocation56_spill] sm:$0xff] }
 0x1ce   : > { %9565 = vmatmul.mubr.msk.f32.gmra.mrb[18].mxu0 %vm250_vm0, %v11873_v3  ;;  %v14574_v3 = vld [vmem:[#allocation57_spill] sm:$0xff] }
 0x1cf   : > { %9567 = vmatprep.mubr.msk.f32.mxu0 %vm250_vm0, %v11875_v4  ;;  %v14575_v4 = vld [vmem:[#allocation58_spill] sm:$0xff] }
 0x1d2   : > { %9568 = vmatmul.mubr.msk.f32.gmra.mrb[20].mxu0 %vm250_vm0, %v11881_v5  ;;  %v14576_v5 = vld [vmem:[#allocation59_spill] sm:$0xff] }
 0x1d3   : > { %9570 = vmatprep.mubr.msk.f32.mxu0 %vm250_vm0, %v14563_v35  ;;  %v14586_v35 = vld [vmem:[#allocation69_spill] sm:$0xff] }
 0x1d6   : > { %9571 = vmatmul.mubr.msk.f32.gmra.mrb[22].mxu0 %vm250_vm0, %v14564_v38  ;;  %v14587_v38 = vld [vmem:[#allocation70_spill] sm:$0xff] }
 0x1d7   : > { %9573 = vmatprep.mubr.msk.f32.mxu0 %vm250_vm0, %v14565_v39  ;;  %v14588_v39 = vld [vmem:[#allocation71_spill] sm:$0xff] }
 0x1da   : > { %9574 = vmatmul.mubr.msk.f32.gmra.mrb[24].mxu0 %vm250_vm0, %v14566_v40  ;;  %v14589_v40 = vld [vmem:[#allocation72_spill] sm:$0xff] }
 0x1db   : > { %9576 = vmatprep.mubr.msk.f32.mxu0 %vm250_vm0, %v14567_v43  ;;  %v14590_v43 = vld [vmem:[#allocation73_spill] sm:$0xff] }
 0x1de   : > { %9577 = vmatmul.mubr.msk.f32.gmra.mrb[26].mxu0 %vm250_vm0, %v14568_v48  ;;  %v14591_v48 = vld [vmem:[#allocation74_spill] sm:$0xff] }
 0x1df   : > { %9579 = vmatprep.mubr.msk.f32.mxu0 %vm250_vm0, %v14569_v51  ;;  %v14592_v51 = vld [vmem:[#allocation75_spill] sm:$0xff] }
 0x1e2   : > { %9580 = vmatmul.mubr.msk.f32.gmra.mrb[28].mxu0 %vm250_vm0, %v14570_v56  ;;  %v14593_v56 = vld [vmem:[#allocation76_spill] sm:$0xff] }
 0x1e3   : > { %9582 = vmatprep.mubr.msk.f32.mxu0 %vm250_vm0, %v12305_v55 }
 0x1e6   : > { %9583 = vmatmul.mubr.msk.f32.gmra.mrb[30].mxu0 %vm250_vm0, %v12311_v57 }
 0x1e7   : > { %9593 = vmatprep.mubr.msk.f32.mxu0 %vm250_vm0, %v12053_v28  ;;  %v14578_v28 = vld [vmem:[#allocation61_spill] sm:$0xff] }
 0x1ea   : > { %9594 = vmatmul.mubr.msk.f32.vlgmr.msra.gmra.mrb[0].mxu0 %vm250_vm0, %v12059_v8  ;;  %v14577_v8 = vld [vmem:[#allocation60_spill] sm:$0xff] }
 0x1eb   : > { %10364 = vmatpush3.bf16.msra.mxu0 %v10361_v17  ;;  %9596 = vmatprep.mubr.msk.f32.mxu0 %vm250_vm0, %v12061_v7  ;;  %v14585_v17 = vld [vmem:[#allocation68_spill] sm:$0xff] }
 0x1ec   : > { %10366 = vmatprep.subr.bf16.mxu0 %v10365_v60 }
 0x1ee   : > { %9597 = vmatmul.mubr.msk.f32.gmra.mrb[2].mxu0 %vm250_vm0, %v14571_v0 }
 0x1ef   : > { %9599 = vmatprep.mubr.msk.f32.mxu0 %vm250_vm0, %v14572_v1  ;;  %10368 = vmatpush3.bf16.msra.mxu0 %v10365_v60  ;;  %v12373_v60 = vld [vmem:[#allocation2 + $0x182] sm:$0xff] }
 0x1f0   : > { %10370 = vmatprep.subr.bf16.mxu0 %v10369_v63  ;;  %14596 = vst [vmem:[#allocation44_spill] sm:$0xff] %v12373_v60 }
 0x1f2   : > { %9600 = vmatmul.mubr.msk.f32.gmra.mrb[4].mxu0 %vm250_vm0, %v14573_v2 }
 0x1f3   : > { %9602 = vmatprep.mubr.msk.f32.mxu0 %vm250_vm0, %v14574_v3 }
 0x1f6   : > { %9603 = vmatmul.mubr.msk.f32.gmra.mrb[6].mxu0 %vm250_vm0, %v14575_v4 }
 0x1f7   : > { %9605 = vmatprep.mubr.msk.f32.mxu0 %vm250_vm0, %v14576_v5 }
 0x1fa   : > { %9606 = vmatmul.mubr.msk.f32.gmra.mrb[8].mxu0 %vm250_vm0, %v14577_v8 }
 0x1fb   : > { %9608 = vmatprep.mubr.msk.f32.mxu0 %vm250_vm0, %v14578_v28 }
 0x1fe   : > { %9609 = vmatmul.mubr.msk.f32.gmra.mrb[10].mxu0 %vm250_vm0, %v14579_v21 }
 0x1ff   : > { %9611 = vmatprep.mubr.msk.f32.mxu0 %vm250_vm0, %v14580_v6 }
 0x202   : > { %9612 = vmatmul.mubr.msk.f32.gmra.mrb[12].mxu0 %vm250_vm0, %v14581_v10 }
 0x203   : > { %9614 = vmatprep.mubr.msk.f32.mxu0 %vm250_vm0, %v14582_v14 }
 0x206   : > { %9615 = vmatmul.mubr.msk.f32.gmra.mrb[14].mxu0 %vm250_vm0, %v14583_v41 }
 0x207   : > { %9617 = vmatprep.mubr.msk.f32.mxu0 %vm250_vm0, %v14584_v9 }
 0x20a   : > { %9618 = vmatmul.mubr.msk.f32.gmra.mrb[16].mxu0 %vm250_vm0, %v14585_v17 }
 0x20b   : > { %9620 = vmatprep.mubr.msk.f32.mxu0 %vm250_vm0, %v14586_v35 }
 0x20e   : > { %9621 = vmatmul.mubr.msk.f32.gmra.mrb[18].mxu0 %vm250_vm0, %v14587_v38 }
 0x20f   : > { %9623 = vmatprep.mubr.msk.f32.mxu0 %vm250_vm0, %v14588_v39 }
 0x212   : > { %9624 = vmatmul.mubr.msk.f32.gmra.mrb[20].mxu0 %vm250_vm0, %v14589_v40 }
 0x213   : > { %9626 = vmatprep.mubr.msk.f32.mxu0 %vm250_vm0, %v14590_v43 }
 0x216   : > { %9627 = vmatmul.mubr.msk.f32.gmra.mrb[22].mxu0 %vm250_vm0, %v14591_v48 }
 0x217   : > { %9629 = vmatprep.mubr.msk.f32.mxu0 %vm250_vm0, %v14592_v51 }
 0x21a   : > { %9630 = vmatmul.mubr.msk.f32.gmra.mrb[24].mxu0 %vm250_vm0, %v14593_v56  ;;  %v3041_v56 = vld [vmem:[#allocation7 + $0xf8] sm:$0xff] }
 0x21b   : > { %9632 = vmatprep.mubr.msk.f32.mxu0 %vm250_vm0, %v14594_v58  ;;  %v3429_v58 = vld [vmem:[#allocation7 + $0x108] sm:$0xff] }
 0x21e   : > { %9633 = vmatmul.mubr.msk.f32.gmra.mrb[26].mxu0 %vm250_vm0, %v12166_v29  ;;  %v10373_v29 = vpack.c.bf16 %v3041_v56, %v3040_v62  ;;  %v3032_v56 = vld [vmem:[#allocation2 + $0x171] sm:$0xff] }
 0x21f   : > { %9635 = vmatprep.mubr.msk.f32.mxu0 %vm250_vm0, %v14595_v59  ;;  %v3428_v59 = vld [vmem:[#allocation7 + $0x100] sm:$0xff] }
 0x222   : > { %9636 = vmatmul.mubr.msk.f32.gmra.mrb[28].mxu0 %vm250_vm0, %v12174_v15 }
 0x223   : > { %9638 = vmatprep.mubr.msk.f32.mxu0 %vm250_vm0, %v12373_v60  ;;  %v10377_v60 = vpack.c.bf16 %v3429_v58, %v3428_v59  ;;  %v3035_v58 = vld [vmem:[#allocation2 + $0x199] sm:$0xff]  ;;  %v3036_v59 = vld [vmem:[#allocation2 + $0x1a1] sm:$0xff] }
 0x226   : > { %9639 = vmatmul.mubr.msk.f32.gmra.mrb[30].mxu0 %vm250_vm0, %v12379_v61 }
 0x227   : > { %9649 = vmatprep.mubr.msk.f32.mxu0 %vm250_vm0, %v11925_v42  ;;  %v3019_v42 = vld [vmem:[#allocation2 + $0xd9] sm:$0xff] }
 0x22a   : > { %9650 = vmatmul.mubr.msk.f32.vlgmr.msra.gmra.mrb[0].mxu0 %vm250_vm0, %v11933_v31  ;;  %v3020_v31 = vld [vmem:[#allocation2 + $0xe1] sm:$0xff] }
 0x22b   : > { %10372 = vmatpush3.bf16.msra.mxu0 %v10369_v63  ;;  %9652 = vmatprep.mubr.msk.f32.mxu0 %vm250_vm0, %v11935_v50  ;;  %v3021_v50 = vld [vmem:[#allocation2 + $0xf1] sm:$0xff]  ;;  %v3031_v63 = vld [vmem:[#allocation2 + $0x169] sm:$0xff] }
 0x22c   : > { %10374 = vmatprep.subr.bf16.mxu0 %v10373_v29 }
 0x22e   : > { %9653 = vmatmul.mubr.msk.f32.gmra.mrb[2].mxu0 %vm250_vm0, %v11942_v45  ;;  %v3022_v45 = vld [vmem:[#allocation2 + $0xf9] sm:$0xff] }
 0x22f   : > { %9655 = vmatprep.mubr.msk.f32.mxu0 %vm250_vm0, %v11944_v46  ;;  %10376 = vmatpush3.bf16.msra.mxu0 %v10373_v29  ;;  %v3023_v46 = vld [vmem:[#allocation2 + $0x109] sm:$0xff]  ;;  %v3028_v29 = vld [vmem:[#allocation2 + $0x141] sm:$0xff] }
 0x230   : > { %10378 = vmatprep.subr.bf16.mxu0 %v10377_v60 }
 0x232   : > { %9656 = vmatmul.mubr.msk.f32.gmra.mrb[4].mxu0 %vm250_vm0, %v11950_v47  ;;  %v3024_v47 = vld [vmem:[#allocation2 + $0x111] sm:$0xff] }
 0x233   : > { %9658 = vmatprep.mubr.msk.f32.mxu0 %vm250_vm0, %v11952_v54  ;;  %v3025_v54 = vld [vmem:[#allocation2 + $0x121] sm:$0xff] }
 0x236   : > { %9659 = vmatmul.mubr.msk.f32.gmra.mrb[6].mxu0 %vm250_vm0, %v11958_v52  ;;  %v3026_v52 = vld [vmem:[#allocation2 + $0x129] sm:$0xff] }
 0x237   : > { %9661 = vmatprep.mubr.msk.f32.mxu0 %vm250_vm0, %v11960_v53  ;;  %v3027_v53 = vld [vmem:[#allocation2 + $0x139] sm:$0xff] }
 0x23a   : > { %9662 = vmatmul.mubr.msk.f32.gmra.mrb[8].mxu0 %vm250_vm0, %v11966_v37  ;;  %v3018_v37 = vld [vmem:[#allocation2 + $0xc9] sm:$0xff] }
 0x23b   : > { %9664 = vmatprep.mubr.msk.f32.mxu0 %vm250_vm0, %v11968_v36  ;;  %v3017_v36 = vld [vmem:[#allocation2 + $0xc1] sm:$0xff] }
 0x23e   : > { %9665 = vmatmul.mubr.msk.f32.gmra.mrb[10].mxu0 %vm250_vm0, %v11974_v34  ;;  %v3016_v34 = vld [vmem:[#allocation2 + $0xb1] sm:$0xff] }
 0x23f   : > { %9667 = vmatprep.mubr.msk.f32.mxu0 %vm250_vm0, %v11976_v33  ;;  %v3015_v33 = vld [vmem:[#allocation2 + $0xa9] sm:$0xff] }
 0x242   : > { %9668 = vmatmul.mubr.msk.f32.gmra.mrb[12].mxu0 %vm250_vm0, %v11982_v32  ;;  %v3014_v32 = vld [vmem:[#allocation2 + $0x99] sm:$0xff] }
 0x243   : > { %9670 = vmatprep.mubr.msk.f32.mxu0 %vm250_vm0, %v11984_v30  ;;  %v3013_v30 = vld [vmem:[#allocation2 + $0x91] sm:$0xff] }
 0x246   : > { %9671 = vmatmul.mubr.msk.f32.gmra.mrb[14].mxu0 %vm250_vm0, %v11990_v27  ;;  %v3012_v27 = vld [vmem:[#allocation2 + $0x81] sm:$0xff] }
 0x247   : > { %9673 = vmatprep.mubr.msk.f32.mxu0 %vm250_vm0, %v11992_v26  ;;  %v3011_v26 = vld [vmem:[#allocation2 + $0x79] sm:$0xff] }
 0x24a   : > { %9674 = vmatmul.mubr.msk.f32.gmra.mrb[16].mxu0 %vm250_vm0, %v11998_v25  ;;  %v3010_v25 = vld [vmem:[#allocation2 + $0x69] sm:$0xff] }
 0x24b   : > { %9676 = vmatprep.mubr.msk.f32.mxu0 %vm250_vm0, %v12000_v24  ;;  %v3009_v24 = vld [vmem:[#allocation2 + $0x61] sm:$0xff] }
 0x24e   : > { %9677 = vmatmul.mubr.msk.f32.gmra.mrb[18].mxu0 %vm250_vm0, %v12006_v23  ;;  %v3008_v23 = vld [vmem:[#allocation2 + $0x51] sm:$0xff] }
 0x24f   : > { %9679 = vmatprep.mubr.msk.f32.mxu0 %vm250_vm0, %v12008_v22  ;;  %v3431_v22 = vld [vmem:[#allocation7 + $0x118] sm:$0xff] }
 0x252   : > { %9680 = vmatmul.mubr.msk.f32.gmra.mrb[20].mxu0 %vm250_vm0, %v12014_v20  ;;  %v2645_v20 = vld [vmem:[#allocation2 + $0x198] sm:$0xff] }
 0x253   : > { %9682 = vmatprep.mubr.msk.f32.mxu0 %vm250_vm0, %v12016_v19  ;;  %v3430_v19 = vld [vmem:[#allocation7 + $0x110] sm:$0xff] }
 0x256   : > { %9683 = vmatmul.mubr.msk.f32.gmra.mrb[22].mxu0 %vm250_vm0, %v12022_v18  ;;  %v2646_v18 = vld [vmem:[#allocation2 + $0x1a0] sm:$0xff] }
 0x257   : > { %9685 = vmatprep.mubr.msk.f32.mxu0 %vm250_vm0, %v12024_v16  ;;  %v3005_v16 = vld [vmem:[#allocation2 + $0x31] sm:$0xff] }
 0x25a   : > { %9686 = vmatmul.mubr.msk.f32.gmra.mrb[24].mxu0 %vm250_vm0, %v12040_v13  ;;  %v3007_v13 = vld [vmem:[#allocation2 + $0x49] sm:$0xff] }
 0x25b   : > { %9688 = vmatprep.mubr.msk.f32.mxu0 %vm250_vm0, %v12042_v12  ;;  %v3006_v12 = vld [vmem:[#allocation2 + $0x39] sm:$0xff] }
 0x25e   : > { %9689 = vmatmul.mubr.msk.f32.gmra.mrb[26].mxu0 %vm250_vm0, %v12048_v11  ;;  %v10381_v11 = vpack.c.bf16 %v3431_v22, %v3430_v19 }
 0x25f   : > { %9691 = vmatprep.mubr.msk.f32.mxu0 %vm250_vm0, %v12237_v44  ;;  %v3029_v44 = vld [vmem:[#allocation2 + $0x151] sm:$0xff] }
 0x262   : > { %9692 = vmatmul.mubr.msk.f32.gmra.mrb[28].mxu0 %vm250_vm0, %v12243_v49  ;;  %v3030_v49 = vld [vmem:[#allocation2 + $0x159] sm:$0xff] }
 0x263   : > { %9694 = vmatprep.mubr.msk.f32.mxu0 %vm250_vm0, %v2645_v20 }
 0x266   : > { %9695 = vmatmul.mubr.msk.f32.gmra.mrb[30].mxu0 %vm250_vm0, %v2646_v18 }
 0x267   : > { %9705 = vmatprep.mubr.msk.f32.mxu0 %vm250_vm0, %v3005_v16 }
 0x26a   : > { %9706 = vmatmul.mubr.msk.f32.vlgmr.msra.gmra.mrb[0].mxu0 %vm250_vm0, %v3006_v12 }
 0x26b   : > { %10380 = vmatpush3.bf16.msra.mxu0 %v10377_v60  ;;  %9708 = vmatprep.mubr.msk.f32.mxu0 %vm250_vm0, %v3007_v13 }
 0x26c   : > { %10382 = vmatprep.subr.bf16.mxu0 %v10381_v11 }
 0x26e   : > { %9709 = vmatmul.mubr.msk.f32.gmra.mrb[2].mxu0 %vm250_vm0, %v3008_v23 }
 0x26f   : > { %9711 = vmatprep.mubr.msk.f32.mxu0 %vm250_vm0, %v3009_v24  ;;  %10384 = vmatpush3.bf16.msra.mxu0 %v10381_v11 }
 0x272   : > { %9712 = vmatmul.mubr.msk.f32.gmra.mrb[4].mxu0 %vm250_vm0, %v3010_v25 }
 0x273   : > { %9714 = vmatprep.mubr.msk.f32.mxu0 %vm250_vm0, %v3011_v26 }
 0x276   : > { %9715 = vmatmul.mubr.msk.f32.gmra.mrb[6].mxu0 %vm250_vm0, %v3012_v27 }
 0x277   : > { %9717 = vmatprep.mubr.msk.f32.mxu0 %vm250_vm0, %v3013_v30 }
 0x27a   : > { %9718 = vmatmul.mubr.msk.f32.gmra.mrb[8].mxu0 %vm250_vm0, %v3014_v32 }
 0x27b   : > { %9720 = vmatprep.mubr.msk.f32.mxu0 %vm250_vm0, %v3015_v33 }
 0x27e   : > { %9721 = vmatmul.mubr.msk.f32.gmra.mrb[10].mxu0 %vm250_vm0, %v3016_v34 }
 0x27f   : > { %9723 = vmatprep.mubr.msk.f32.mxu0 %vm250_vm0, %v3017_v36 }
 0x282   : > { %9724 = vmatmul.mubr.msk.f32.gmra.mrb[12].mxu0 %vm250_vm0, %v3018_v37 }
 0x283   : > { %9726 = vmatprep.mubr.msk.f32.mxu0 %vm250_vm0, %v3019_v42 }
 0x286   : > { %9727 = vmatmul.mubr.msk.f32.gmra.mrb[14].mxu0 %vm250_vm0, %v3020_v31 }
 0x287   : > { %9729 = vmatprep.mubr.msk.f32.mxu0 %vm250_vm0, %v3021_v50 }
 0x28a   : > { %9730 = vmatmul.mubr.msk.f32.gmra.mrb[16].mxu0 %vm250_vm0, %v3022_v45 }
 0x28b   : > { %9732 = vmatprep.mubr.msk.f32.mxu0 %vm250_vm0, %v3023_v46 }
 0x28e   : > { %9733 = vmatmul.mubr.msk.f32.gmra.mrb[18].mxu0 %vm250_vm0, %v3024_v47 }
 0x28f   : > { %9735 = vmatprep.mubr.msk.f32.mxu0 %vm250_vm0, %v3025_v54 }
 0x292   : > { %9736 = vmatmul.mubr.msk.f32.gmra.mrb[20].mxu0 %vm250_vm0, %v3026_v52 }
 0x293   : > { %9738 = vmatprep.mubr.msk.f32.mxu0 %vm250_vm0, %v3027_v53 }
 0x296   : > { %9739 = vmatmul.mubr.msk.f32.gmra.mrb[22].mxu0 %vm250_vm0, %v3028_v29 }
 0x297   : > { %9741 = vmatprep.mubr.msk.f32.mxu0 %vm250_vm0, %v3029_v44 }
 0x29a   : > { %9742 = vmatmul.mubr.msk.f32.gmra.mrb[24].mxu0 %vm250_vm0, %v3030_v49 }
 0x29b   : > { %9744 = vmatprep.mubr.msk.f32.mxu0 %vm250_vm0, %v3031_v63 }
 0x29e   : > { %9745 = vmatmul.mubr.msk.f32.gmra.mrb[26].mxu0 %vm250_vm0, %v3032_v56 }
 0x29f   : > { %9747 = vmatprep.mubr.msk.f32.mxu0 %vm250_vm0, %v12305_v55  ;;  %v14598_v55 = vld [vmem:[#allocation77_spill] sm:$0xff] }
 0x2a2   : > { %9748 = vmatmul.mubr.msk.f32.gmra.mrb[28].mxu0 %vm250_vm0, %v12311_v57  ;;  %v14599_v57 = vld [vmem:[#allocation78_spill] sm:$0xff] }
 0x2a3   : > { %9750 = vmatprep.mubr.msk.f32.mxu0 %vm250_vm0, %v3035_v58 }
 0x2a6   : > { %9751 = vmatmul.mubr.msk.f32.gmra.mrb[30].mxu0 %vm250_vm0, %v3036_v59 }
 0x2a7   : > { %9761 = vmatprep.mubr.msk.f32.mxu0 %vm250_vm0, %v12061_v7  ;;  %v14597_v7 = vld [vmem:[#allocation76_spill] sm:$0xff] }
 0x2aa   : > { %9762 = vmatmul.mubr.msk.f32.vlgmr.msra.gmra.mrb[0].mxu0 %vm250_vm0, %v14571_v0  ;;  %v14600_v0 = vld [vmem:[#allocation79_spill] sm:$0xff] }
 0x2ab   : > { %9764 = vmatprep.mubr.msk.f32.mxu0 %vm250_vm0, %v14572_v1  ;;  %v14601_v1 = vld [vmem:[#allocation44_spill] sm:$0xff] }
 0x2ae   : > { %9765 = vmatmul.mubr.msk.f32.gmra.mrb[2].mxu0 %vm250_vm0, %v14573_v2  ;;  %v3425_v2 = vld [vmem:[#allocation2 + $0x19a] sm:$0xff] }
 0x2af   : > { %9767 = vmatprep.mubr.msk.f32.mxu0 %vm250_vm0, %v14574_v3  ;;  %v3426_v3 = vld [vmem:[#allocation2 + $0x1a2] sm:$0xff] }
 0x2b2   : > { %9768 = vmatmul.mubr.msk.f32.gmra.mrb[4].mxu0 %vm250_vm0, %v14575_v4 }
 0x2b3   : > { %9770 = vmatprep.mubr.msk.f32.mxu0 %vm250_vm0, %v14576_v5 }
 0x2b6   : > { %9771 = vmatmul.mubr.msk.f32.gmra.mrb[6].mxu0 %vm250_vm0, %v14577_v8 }
 0x2b7   : > { %9773 = vmatprep.mubr.msk.f32.mxu0 %vm250_vm0, %v14578_v28 }
 0x2ba   : > { %9774 = vmatmul.mubr.msk.f32.gmra.mrb[8].mxu0 %vm250_vm0, %v14579_v21 }
 0x2bb   : > { %9776 = vmatprep.mubr.msk.f32.mxu0 %vm250_vm0, %v14580_v6 }
 0x2be   : > { %9777 = vmatmul.mubr.msk.f32.gmra.mrb[10].mxu0 %vm250_vm0, %v14581_v10 }
 0x2bf   : > { %9779 = vmatprep.mubr.msk.f32.mxu0 %vm250_vm0, %v14582_v14 }
 0x2c2   : > { %9780 = vmatmul.mubr.msk.f32.gmra.mrb[12].mxu0 %vm250_vm0, %v14583_v41 }
 0x2c3   : > { %9782 = vmatprep.mubr.msk.f32.mxu0 %vm250_vm0, %v14584_v9 }
 0x2c6   : > { %9783 = vmatmul.mubr.msk.f32.gmra.mrb[14].mxu0 %vm250_vm0, %v14585_v17 }
 0x2c7   : > { %9785 = vmatprep.mubr.msk.f32.mxu0 %vm250_vm0, %v14586_v35 }
 0x2ca   : > { %9786 = vmatmul.mubr.msk.f32.gmra.mrb[16].mxu0 %vm250_vm0, %v14587_v38 }
 0x2cb   : > { %9788 = vmatprep.mubr.msk.f32.mxu0 %vm250_vm0, %v14588_v39 }
 0x2ce   : > { %9789 = vmatmul.mubr.msk.f32.gmra.mrb[18].mxu0 %vm250_vm0, %v14589_v40 }
 0x2cf   : > { %9791 = vmatprep.mubr.msk.f32.mxu0 %vm250_vm0, %v14590_v43 }
 0x2d2   : > { %9792 = vmatmul.mubr.msk.f32.gmra.mrb[20].mxu0 %vm250_vm0, %v14591_v48 }
 0x2d3   : > { %9794 = vmatprep.mubr.msk.f32.mxu0 %vm250_vm0, %v14592_v51 }
 0x2d6   : > { %9795 = vmatmul.mubr.msk.f32.gmra.mrb[22].mxu0 %vm250_vm0, %v14597_v7 }
 0x2d7   : > { %9797 = vmatprep.mubr.msk.f32.mxu0 %vm250_vm0, %v14598_v55 }
 0x2da   : > { %9798 = vmatmul.mubr.msk.f32.gmra.mrb[24].mxu0 %vm250_vm0, %v14599_v57 }
 0x2db   : > { %9800 = vmatprep.mubr.msk.f32.mxu0 %vm250_vm0, %v14600_v0 }
 0x2de   : > { %9801 = vmatmul.mubr.msk.f32.gmra.mrb[26].mxu0 %vm250_vm0, %v12174_v15 }
 0x2df   : > { %9803 = vmatprep.mubr.msk.f32.mxu0 %vm250_vm0, %v14601_v1 }
 0x2e2   : > { %9804 = vmatmul.mubr.msk.f32.gmra.mrb[28].mxu0 %vm250_vm0, %v12379_v61 }
 0x2e3   : > { %9806 = vmatprep.mubr.msk.f32.mxu0 %vm250_vm0, %v3425_v2 }
 0x2e6   : > { %9807 = vmatmul.mubr.msk.f32.gmra.mrb[30].mxu0 %vm250_vm0, %v3426_v3 }
 0x37d   : > { %v12541_v4 = vpop.f32.mrb[0].mxu0 }
 0x37e   : > { %v3786_v5 = vsel %vm250_vm0, %v12541_v4, 0.0  ;;  %v12545_v8 = vpop.f32.mrb[1].mxu0 }
 0x37f   : > { %v3785_v15 = vsel %vm250_vm0, %v12545_v8, 0.0 }
 0x380   : > { %v3787_v28 = vadd.f32 %v3786_v5, %v3785_v15 }
 0x381   : > { %v12549_v21 = vpop.f32.mrb[2].mxu0 }
 0x382   : > { %v12551_v6 = vpop.f32.mrb[3].mxu0  ;;  %v3790_v41 = vsel %vm250_vm0, %v12549_v21, 0.0 }
 0x383   : > { %v3788_v10 = vsel %vm250_vm0, %v12551_v6, 0.0 }
 0x384   : > { %v3789_v14 = vadd.f32 %v3788_v10, %v3787_v28 }
 0x385   : > { %v12557_v9 = vpop.f32.mrb[4].mxu0 }
 0x386   : > { %v12559_v17 = vpop.f32.mrb[5].mxu0  ;;  %v3791_v35 = vadd.f32 %v3790_v41, %v3789_v14  ;;  %v3794_v40 = vsel %vm250_vm0, %v12557_v9, 0.0 }
 0x387   : > { %v3792_v38 = vsel %vm250_vm0, %v12559_v17, 0.0 }
 0x388   : > { %v3793_v39 = vadd.f32 %v3792_v38, %v3791_v35 }
 0x389   : > { %v12565_v43 = vpop.f32.mrb[6].mxu0 }
 0x38a   : > { %v12567_v48 = vpop.f32.mrb[7].mxu0  ;;  %v3795_v51 = vadd.f32 %v3794_v40, %v3793_v39  ;;  %v3798_v62 = vsel %vm250_vm0, %v12565_v43, 0.0 }
 0x38b   : > { %v3796_v60 = vsel %vm250_vm0, %v12567_v48, 0.0 }
 0x38c   : > { %v3797_v61 = vadd.f32 %v3796_v60, %v3795_v51 }
 0x38d   : > { %v12573_v20 = vpop.f32.mrb[8].mxu0 }
 0x38e   : > { %v12575_v18 = vpop.f32.mrb[9].mxu0  ;;  %v3799_v16 = vadd.f32 %v3798_v62, %v3797_v61  ;;  %v3802_v12 = vsel %vm250_vm0, %v12573_v20, 0.0 }
 0x38f   : > { %v3800_v19 = vsel %vm250_vm0, %v12575_v18, 0.0 }
 0x390   : > { %v3801_v22 = vadd.f32 %v3800_v19, %v3799_v16 }
 0x391   : > { %v12581_v13 = vpop.f32.mrb[10].mxu0 }
 0x392   : > { %v12583_v11 = vpop.f32.mrb[11].mxu0  ;;  %v3803_v23 = vadd.f32 %v3802_v12, %v3801_v22  ;;  %v3806_v26 = vsel %vm250_vm0, %v12581_v13, 0.0 }
 0x393   : > { %v3804_v24 = vsel %vm250_vm0, %v12583_v11, 0.0 }
 0x394   : > { %v3805_v25 = vadd.f32 %v3804_v24, %v3803_v23 }
 0x395   : > { %v12589_v27 = vpop.f32.mrb[12].mxu0 }
 0x396   : > { %v12591_v30 = vpop.f32.mrb[13].mxu0  ;;  %v3807_v32 = vadd.f32 %v3806_v26, %v3805_v25  ;;  %v3810_v36 = vsel %vm250_vm0, %v12589_v27, 0.0 }
 0x397   : > { %v3808_v33 = vsel %vm250_vm0, %v12591_v30, 0.0 }
 0x398   : > { %v3809_v34 = vadd.f32 %v3808_v33, %v3807_v32 }
 0x399   : > { %v12597_v37 = vpop.f32.mrb[14].mxu0 }
 0x39a   : > { %v12599_v42 = vpop.f32.mrb[15].mxu0  ;;  %v3811_v31 = vadd.f32 %v3810_v36, %v3809_v34  ;;  %v3814_v46 = vsel %vm250_vm0, %v12597_v37, 0.0 }
 0x39b   : > { %v3812_v50 = vsel %vm250_vm0, %v12599_v42, 0.0 }
 0x39c   : > { %v3813_v45 = vadd.f32 %v3812_v50, %v3811_v31 }
 0x39d   : > { %v12605_v47 = vpop.f32.mrb[16].mxu0 }
 0x39e   : > { %v12607_v54 = vpop.f32.mrb[17].mxu0  ;;  %v3815_v52 = vadd.f32 %v3814_v46, %v3813_v45  ;;  %v3818_v44 = vsel %vm250_vm0, %v12605_v47, 0.0 }
 0x39f   : > { %v3816_v53 = vsel %vm250_vm0, %v12607_v54, 0.0 }
 0x3a0   : > { %v3817_v29 = vadd.f32 %v3816_v53, %v3815_v52 }
 0x3a1   : > { %v12613_v49 = vpop.f32.mrb[18].mxu0 }
 0x3a2   : > { %v12615_v63 = vpop.f32.mrb[19].mxu0  ;;  %v3819_v56 = vadd.f32 %v3818_v44, %v3817_v29  ;;  %v3822_v7 = vsel %vm250_vm0, %v12613_v49, 0.0  ;;  %v4212_v44 = vld [vmem:[#allocation9 + $0x20] sm:$0xff] }
 0x3a3   : > { %v3820_v58 = vsel %vm250_vm0, %v12615_v63, 0.0 }
 0x3a4   : > { %v3821_v59 = vadd.f32 %v3820_v58, %v3819_v56  ;;  %v4213_v56 = vld [vmem:[#allocation9 + $0x28] sm:$0xff] }
 0x3a5   : > { %v12621_v55 = vpop.f32.mrb[20].mxu0 }
 0x3a6   : > { %v12623_v57 = vpop.f32.mrb[21].mxu0  ;;  %v3823_v0 = vadd.f32 %v3822_v7, %v3821_v59  ;;  %v3826_v3 = vsel %vm250_vm0, %v12621_v55, 0.0  ;;  %v10385_v59 = vpack.c.bf16 %v4213_v56, %v4212_v44 }
 0x3a7   : > { %v3824_v1 = vsel %vm250_vm0, %v12623_v57, 0.0 }
 0x3a8   : > { %v3825_v2 = vadd.f32 %v3824_v1, %v3823_v0  ;;  %10386 = vmatprep.subr.bf16.mxu1 %v10385_v59  ;;  %v4214_v0 = vld [vmem:[#allocation9 + $0x30] sm:$0xff]  ;;  %v4215_v1 = vld [vmem:[#allocation9 + $0x38] sm:$0xff] }
 0x3a9   : > { %v12629_v5 = vpop.f32.mrb[22].mxu0  ;;  %10388 = vmatpush3.bf16.msra.mxu1 %v10385_v59  ;;  %v4177_v59 = vld [vmem:[#allocation9 + $0x10] sm:$0xff] }
 0x3aa   : > { %v12631_v15 = vpop.f32.mrb[23].mxu0  ;;  %v3827_v28 = vadd.f32 %v3826_v3, %v3825_v2  ;;  %v3830_v41 = vsel %vm250_vm0, %v12629_v5, 0.0  ;;  %v10389_v3 = vpack.c.bf16 %v4215_v1, %v4214_v0 }
 0x3ab   : > { %v3828_v10 = vsel %vm250_vm0, %v12631_v15, 0.0 }
 0x3ac   : > { %v3829_v14 = vadd.f32 %v3828_v10, %v3827_v28  ;;  %v4179_v28 = vld [vmem:[#allocation3 + $0x1] sm:$0xff]  ;;  %v4175_v10 = vld [vmem:[#allocation9] sm:$0xff]  ;;  %10390 = vmatprep.subr.bf16.mxu1 %v10389_v3 }
 0x3ad   : > { %v12637_v35 = vpop.f32.mrb[24].mxu0  ;;  %9817 = vmatprep.mubr.msk.f32.mxu1 %vm250_vm0, %v4179_v28  ;;  %10392 = vmatpush3.bf16.msra.mxu1 %v10389_v3 }
 0x3ae   : > { %v12639_v38 = vpop.f32.mrb[25].mxu0  ;;  %v3831_v39 = vadd.f32 %v3830_v41, %v3829_v14  ;;  %v3834_v60 = vsel %vm250_vm0, %v12637_v35, 0.0  ;;  %v4176_v41 = vld [vmem:[#allocation9 + $0x8] sm:$0xff] }
 0x3af   : > { %v3832_v40 = vsel %vm250_vm0, %v12639_v38, 0.0 }
 0x3b0   : > { %v3833_v51 = vadd.f32 %v3832_v40, %v3831_v39  ;;  %v4180_v39 = vld [vmem:[#allocation3 + $0x9] sm:$0xff]  ;;  %v10393_v40 = vpack.c.bf16 %v4176_v41, %v4175_v10 }
 0x3b1   : > { %v12645_v61 = vpop.f32.mrb[26].mxu0  ;;  %9818 = vmatmul.mubr.msk.f32.vlgmr.msra.gmra.mrb[0].mxu1 %vm250_vm0, %v4180_v39 }
 0x3b2   : > { %v12647_v62 = vpop.f32.mrb[27].mxu0  ;;  %v3835_v16 = vadd.f32 %v3834_v60, %v3833_v51  ;;  %v3838_v12 = vsel %vm250_vm0, %v12645_v61, 0.0  ;;  %10394 = vmatprep.subr.bf16.mxu1 %v10393_v40 }
 0x3b3   : > { %v3836_v19 = vsel %vm250_vm0, %v12647_v62, 0.0  ;;  %10396 = vmatpush3.bf16.msra.mxu1 %v10393_v40 }
 0x3b4   : > { %v3837_v22 = vadd.f32 %v3836_v19, %v3835_v16 }
 0x3b5   : > { %v12653_v23 = vpop.f32.mrb[28].mxu0 }
 0x3b6   : > { %v12655_v24 = vpop.f32.mrb[29].mxu0  ;;  %v3839_v25 = vadd.f32 %v3838_v12, %v3837_v22  ;;  %v3842_v33 = vsel %vm250_vm0, %v12653_v23, 0.0 }
 0x3b7   : > { %v3840_v26 = vsel %vm250_vm0, %v12655_v24, 0.0 }
 0x3b8   : > { %v3841_v32 = vadd.f32 %v3840_v26, %v3839_v25 }
 0x3b9   : > { %v12661_v34 = vpop.f32.mrb[30].mxu0 }
 0x3ba   : > { %v3744_v36 = vpop.f32.mrb[31].mxu0  ;;  %v3843_v31 = vadd.f32 %v3842_v33, %v3841_v32  ;;  %v3846_v46 = vsel %vm250_vm0, %v12661_v34, 0.0 }
 0x3bb   : > { %v3844_v50 = vsel %vm250_vm0, %v3744_v36, 0.0 }
 0x3bc   : > { %v3845_v45 = vadd.f32 %v3844_v50, %v3843_v31 }
 0x3be   : > { %v3847_v52 = vadd.f32 %v3846_v46, %v3845_v45 }
 0x3c0   : > { %v3848_v53 = vrot.slane %v3847_v52, 4 }
 0x3c2   : > { %v3849_v29 = vadd.f32 %v3848_v53, %v3847_v52 }
 0x3c4   : > { %v3850_v58 = vrot.slane %v3849_v29, 2 }
 0x3c6   : > { %v3851_v7 = vadd.f32 %v3850_v58, %v3849_v29 }
 0x3c8   : > { %v3852_v2 = vrot.slane %v3851_v7, 1 }
 0x3ca   : > { %v3853_v14 = vadd.f32 %v3852_v2, %v3851_v7  ;;  %v4178_v7 = vld [vmem:[#allocation9 + $0x18] sm:$0xff] }
 0x3cb   : > { %v10397_v2 = vpack.c.bf16 %v4178_v7, %v4177_v59 }
 0x3cc   : > { %v3855_v51 = vmul.f32 0.00390625, %v3853_v14 }
 0x3cd   : > { %10398 = vmatprep.subr.bf16.mxu1 %v10397_v2 }
 0x3ce   : > { %v12668_v60 = vsub.f32 %v12545_v8, %v3855_v51  ;;  %v12671_v16 = vsub.f32 %v12541_v4, %v3855_v51  ;;  %v12674_v19 = vsub.f32 %v12551_v6, %v3855_v51  ;;  %v12677_v22 = vsub.f32 %v12549_v21, %v3855_v51  ;;  %10400 = vmatpush3.bf16.msra.mxu1 %v10397_v2 }
 0x3cf   : > { %v12681_v12 = vsub.f32 %v12559_v17, %v3855_v51  ;;  %v12684_v25 = vsub.f32 %v12557_v9, %v3855_v51  ;;  %v12687_v8 = vsub.f32 %v12567_v48, %v3855_v51  ;;  %v12690_v4 = vsub.f32 %v12565_v43, %v3855_v51 }
 0x3d0   : > { %v12693_v6 = vsub.f32 %v12575_v18, %v3855_v51  ;;  %v12696_v21 = vsub.f32 %v12573_v20, %v3855_v51  ;;  %v12699_v26 = vsub.f32 %v12583_v11, %v3855_v51  ;;  %v12702_v17 = vsub.f32 %v12581_v13, %v3855_v51 }
 0x3d1   : > { %v12705_v9 = vsub.f32 %v12591_v30, %v3855_v51  ;;  %v12708_v48 = vsub.f32 %v12589_v27, %v3855_v51  ;;  %v12711_v43 = vsub.f32 %v12599_v42, %v3855_v51  ;;  %v12714_v18 = vsub.f32 %v12597_v37, %v3855_v51 }
 0x3d2   : > { %v12717_v20 = vsub.f32 %v12607_v54, %v3855_v51  ;;  %v12720_v11 = vsub.f32 %v12605_v47, %v3855_v51  ;;  %v12723_v13 = vsub.f32 %v12615_v63, %v3855_v51  ;;  %v12726_v30 = vsub.f32 %v12613_v49, %v3855_v51 }
 0x3d3   : > { %v12729_v27 = vsub.f32 %v12623_v57, %v3855_v51  ;;  %v12732_v42 = vsub.f32 %v12621_v55, %v3855_v51  ;;  %v12735_v37 = vsub.f32 %v12631_v15, %v3855_v51  ;;  %v12738_v54 = vsub.f32 %v12629_v5, %v3855_v51 }
 0x3d4   : > { %v12741_v47 = vsub.f32 %v12639_v38, %v3855_v51  ;;  %v12744_v63 = vsub.f32 %v12637_v35, %v3855_v51  ;;  %v12747_v49 = vsub.f32 %v12647_v62, %v3855_v51  ;;  %v12750_v57 = vsub.f32 %v12645_v61, %v3855_v51 }
 0x3d5   : > { %v12753_v55 = vsub.f32 %v12655_v24, %v3855_v51  ;;  %v12756_v15 = vsub.f32 %v12653_v23, %v3855_v51  ;;  %v12758_v5 = vsub.f32 %v3744_v36, %v3855_v51  ;;  %v12761_v38 = vsub.f32 %v12661_v34, %v3855_v51 }
 0x3d6   : > { %v3888_v35 = vmul.f32 %v12668_v60, %v12668_v60  ;;  %v3889_v62 = vmul.f32 %v12671_v16, %v12671_v16  ;;  %v3890_v61 = vmul.f32 %v12674_v19, %v12674_v19  ;;  %v3891_v24 = vmul.f32 %v12677_v22, %v12677_v22 }
 0x3d7   : > { %v3892_v34 = vmul.f32 %v12681_v12, %v12681_v12  ;;  %v3893_v50 = vmul.f32 %v12684_v25, %v12684_v25  ;;  %v3894_v52 = vmul.f32 %v12687_v8, %v12687_v8  ;;  %v3895_v44 = vmul.f32 %v12690_v4, %v12690_v4 }
 0x3d8   : > { %v3920_v23 = vsel %vm250_vm0, %v3888_v35, 0.0  ;;  %v3921_v32 = vsel %vm250_vm0, %v3889_v62, 0.0  ;;  %v3923_v36 = vsel %vm250_vm0, %v3890_v61, 0.0  ;;  %v3925_v45 = vsel %vm250_vm0, %v3891_v24, 0.0 }
 0x3d9   : > { %v3922_v33 = vadd.f32 %v3921_v32, %v3920_v23  ;;  %v3927_v53 = vsel %vm250_vm0, %v3892_v34, 0.0  ;;  %v3929_v56 = vsel %vm250_vm0, %v3893_v50, 0.0  ;;  %v3896_v0 = vmul.f32 %v12693_v6, %v12693_v6 }
 0x3da   : > { %v3931_v1 = vsel %vm250_vm0, %v3894_v52, 0.0  ;;  %v3897_v28 = vmul.f32 %v12696_v21, %v12696_v21  ;;  %v3933_v10 = vsel %vm250_vm0, %v3895_v44, 0.0  ;;  %v3898_v41 = vmul.f32 %v12699_v26, %v12699_v26 }
 0x3db   : > { %v3924_v31 = vadd.f32 %v3923_v36, %v3922_v33  ;;  %v3935_v39 = vsel %vm250_vm0, %v3896_v0, 0.0  ;;  %v3899_v51 = vmul.f32 %v12702_v17, %v12702_v17  ;;  %v3900_v61 = vmul.f32 %v12705_v9, %v12705_v9 }
 0x3dc   : > { %v3937_v35 = vsel %vm250_vm0, %v3897_v28, 0.0  ;;  %v3939_v24 = vsel %vm250_vm0, %v3898_v41, 0.0  ;;  %v3901_v32 = vmul.f32 %v12708_v48, %v12708_v48  ;;  %v3902_v36 = vmul.f32 %v12711_v43, %v12711_v43 }
 0x3dd   : > { %v3926_v46 = vadd.f32 %v3925_v45, %v3924_v31  ;;  %v3941_v33 = vsel %vm250_vm0, %v3899_v51, 0.0  ;;  %v3943_v31 = vsel %vm250_vm0, %v3900_v61, 0.0  ;;  %v3903_v45 = vmul.f32 %v12714_v18, %v12714_v18 }
 0x3de   : > { %v3906_v7 = vmul.f32 %v12723_v13, %v12723_v13  ;;  %v3907_v2 = vmul.f32 %v12726_v30, %v12726_v30 }
 0x3df   : > { %v3928_v29 = vadd.f32 %v3927_v53, %v3926_v46  ;;  %v3945_v46 = vsel %vm250_vm0, %v3901_v32, 0.0  ;;  %v3904_v53 = vmul.f32 %v12717_v20, %v12717_v20 }
 0x3e1   : > { %v3930_v58 = vadd.f32 %v3929_v56, %v3928_v29  ;;  %v3947_v29 = vsel %vm250_vm0, %v3902_v36, 0.0  ;;  %v3905_v56 = vmul.f32 %v12720_v11, %v12720_v11  ;;  %v3951_v0 = vsel %vm250_vm0, %v3904_v53, 0.0 }
 0x3e2   : > { %v3912_v36 = vmul.f32 %v12741_v47, %v12741_v47 }
 0x3e3   : > { %v3932_v3 = vadd.f32 %v3931_v1, %v3930_v58  ;;  %v3949_v58 = vsel %vm250_vm0, %v3903_v45, 0.0 }
 0x3e5   : > { %v3934_v14 = vadd.f32 %v3933_v10, %v3932_v3  ;;  %v3953_v3 = vsel %vm250_vm0, %v3905_v56, 0.0  ;;  %v3908_v10 = vmul.f32 %v12729_v27, %v12729_v27 }
 0x3e7   : > { %v3936_v40 = vadd.f32 %v3935_v39, %v3934_v14  ;;  %v3955_v14 = vsel %vm250_vm0, %v3906_v7, 0.0  ;;  %v3909_v39 = vmul.f32 %v12732_v42, %v12732_v42 }
 0x3e9   : > { %v3938_v62 = vadd.f32 %v3937_v35, %v3936_v40  ;;  %v3957_v40 = vsel %vm250_vm0, %v3907_v2, 0.0  ;;  %v3910_v35 = vmul.f32 %v12735_v37, %v12735_v37 }
 0x3eb   : > { %v3940_v23 = vadd.f32 %v3939_v24, %v3938_v62  ;;  %v3959_v62 = vsel %vm250_vm0, %v3908_v10, 0.0  ;;  %v3911_v24 = vmul.f32 %v12738_v54, %v12738_v54 }
 0x3ed   : > { %v3942_v34 = vadd.f32 %v3941_v33, %v3940_v23  ;;  %v3961_v23 = vsel %vm250_vm0, %v3909_v39, 0.0  ;;  %v4891_v33 = vld [vmem:[#allocation9 + $0x40] sm:$0xff] }
 0x3ef   : > { %v3944_v50 = vadd.f32 %v3943_v31, %v3942_v34  ;;  %v4892_v34 = vld [vmem:[#allocation9 + $0x48] sm:$0xff]  ;;  %v3963_v31 = vsel %vm250_vm0, %v3910_v35, 0.0 }
 0x3f1   : > { %v3946_v52 = vadd.f32 %v3945_v46, %v3944_v50  ;;  %v12836_v50 = vpack.c.bf16 %v4892_v34, %v4891_v33  ;;  %v3913_v46 = vmul.f32 %v12744_v63, %v12744_v63 }
 0x3f3   : > { %v3948_v44 = vadd.f32 %v3947_v29, %v3946_v52  ;;  %v3965_v52 = vsel %vm250_vm0, %v3911_v24, 0.0  ;;  %10402 = vmatprep.subr.bf16.mxu1 %v12836_v50  ;;  %v3914_v29 = vmul.f32 %v12747_v49, %v12747_v49 }
 0x3f5   : > { %v3950_v59 = vadd.f32 %v3949_v58, %v3948_v44  ;;  %v3967_v44 = vsel %vm250_vm0, %v3912_v36, 0.0  ;;  %v3915_v58 = vmul.f32 %v12750_v57, %v12750_v57 }
 0x3f7   : > { %v3952_v1 = vadd.f32 %v3951_v0, %v3950_v59  ;;  %v3969_v59 = vsel %vm250_vm0, %v3913_v46, 0.0  ;;  %v3916_v0 = vmul.f32 %v12753_v55, %v12753_v55 }
 0x3f9   : > { %v3954_v28 = vadd.f32 %v3953_v3, %v3952_v1  ;;  %v3971_v1 = vsel %vm250_vm0, %v3914_v29, 0.0  ;;  %v3917_v3 = vmul.f32 %v12756_v15, %v12756_v15 }
 0x3fb   : > { %v3956_v41 = vadd.f32 %v3955_v14, %v3954_v28  ;;  %v3973_v28 = vsel %vm250_vm0, %v3915_v58, 0.0  ;;  %v3918_v14 = vmul.f32 %v12758_v5, %v12758_v5 }
 0x3fd   : > { %v3958_v51 = vadd.f32 %v3957_v40, %v3956_v41  ;;  %v3975_v41 = vsel %vm250_vm0, %v3916_v0, 0.0  ;;  %v3919_v40 = vmul.f32 %v12761_v38, %v12761_v38 }
 0x3ff   : > { %v3960_v61 = vadd.f32 %v3959_v62, %v3958_v51  ;;  %v3977_v51 = vsel %vm250_vm0, %v3917_v3, 0.0  ;;  %v3979_v62 = vsel %vm250_vm0, %v3918_v14, 0.0  ;;  %v3981_v24 = vsel %vm250_vm0, %v3919_v40, 0.0 }
 0x401   : > { %v3962_v32 = vadd.f32 %v3961_v23, %v3960_v61 }
 0x403   : > { %v3964_v45 = vadd.f32 %v3963_v31, %v3962_v32 }
 0x405   : > { %v3966_v53 = vadd.f32 %v3965_v52, %v3964_v45 }
 0x407   : > { %v3968_v56 = vadd.f32 %v3967_v44, %v3966_v53 }
 0x409   : > { %v3970_v7 = vadd.f32 %v3969_v59, %v3968_v56 }
 0x40b   : > { %v3972_v2 = vadd.f32 %v3971_v1, %v3970_v7 }
 0x40d   : > { %v3974_v10 = vadd.f32 %v3973_v28, %v3972_v2 }
 0x40f   : > { %v3976_v39 = vadd.f32 %v3975_v41, %v3974_v10 }
 0x411   : > { %v3978_v35 = vadd.f32 %v3977_v51, %v3976_v39 }
 0x413   : > { %v3980_v61 = vadd.f32 %v3979_v62, %v3978_v35 }
 0x415   : > { %v3982_v23 = vadd.f32 %v3981_v24, %v3980_v61 }
 0x417   : > { %v3983_v32 = vrot.slane %v3982_v23, 4 }
 0x419   : > { %v3984_v33 = vadd.f32 %v3983_v32, %v3982_v23 }
 0x41b   : > { %v3985_v34 = vrot.slane %v3984_v33, 2 }
 0x41d   : > { %v3986_v36 = vadd.f32 %v3985_v34, %v3984_v33 }
 0x41f   : > { %v3987_v31 = vrot.slane %v3986_v36, 1 }
 0x421   : > { %v3988_v45 = vadd.f32 %v3987_v31, %v3986_v36 }
 0x423   : > { %v3989_v46 = vmul.f32 0.00390625, %v3988_v45 }
 0x425   : > { %v3990_v52 = vadd.f32 1e-05, %v3989_v46 }
 0x427   : > { %11041 = vrsqrt.f32 %v3990_v52 }
 0x431   : > { %v11042_v53 = vpop.eup %11041 }
 0x432   : > { %v4022_v29 = vmul.f32 %v11042_v53, %v12758_v5  ;;  %v3992_v44 = vmul.f32 %v11042_v53, %v12668_v60  ;;  %v3993_v56 = vmul.f32 %v11042_v53, %v12671_v16  ;;  %v3994_v58 = vmul.f32 %v11042_v53, %v12674_v19 }
 0x433   : > { %v3995_v59 = vmul.f32 %v11042_v53, %v12677_v22  ;;  %v3996_v7 = vmul.f32 %v11042_v53, %v12681_v12  ;;  %v3997_v0 = vmul.f32 %v11042_v53, %v12684_v25  ;;  %v3998_v1 = vmul.f32 %v11042_v53, %v12687_v8 }
 0x434   : > { %v4054_v2 = vmax.f32 %v4022_v29, 0.0  ;;  %v3999_v3 = vmul.f32 %v11042_v53, %v12690_v4  ;;  %v4000_v28 = vmul.f32 %v11042_v53, %v12693_v6  ;;  %v4001_v5 = vmul.f32 %v11042_v53, %v12696_v21 }
 0x435   : > { %v4002_v60 = vmul.f32 %v11042_v53, %v12699_v26  ;;  %v4003_v16 = vmul.f32 %v11042_v53, %v12702_v17  ;;  %v4004_v19 = vmul.f32 %v11042_v53, %v12705_v9  ;;  %v4005_v22 = vmul.f32 %v11042_v53, %v12708_v48 }
 0x436   : > { %4141 = vst.msk [vmem:[#allocation3 + $0x181] sm:$0xff] %vm250_vm0, %v4054_v2  ;;  %v4006_v12 = vmul.f32 %v11042_v53, %v12711_v43  ;;  %v4007_v25 = vmul.f32 %v11042_v53, %v12714_v18  ;;  %v4008_v8 = vmul.f32 %v11042_v53, %v12717_v20  ;;  %v4009_v4 = vmul.f32 %v11042_v53, %v12720_v11 }
 0x437   : > { %v4010_v6 = vmul.f32 %v11042_v53, %v12723_v13  ;;  %v12884_v21 = vmul.f32 %v11042_v53, %v12726_v30  ;;  %v12887_v26 = vmul.f32 %v11042_v53, %v12729_v27  ;;  %v12890_v17 = vmul.f32 %v11042_v53, %v12732_v42 }
 0x438   : > { %v12893_v9 = vmul.f32 %v11042_v53, %v12735_v37  ;;  %v12896_v48 = vmul.f32 %v11042_v53, %v12738_v54  ;;  %v12899_v43 = vmul.f32 %v11042_v53, %v12741_v47  ;;  %v12902_v18 = vmul.f32 %v11042_v53, %v12744_v63 }
 0x439   : > { %v12905_v20 = vmul.f32 %v11042_v53, %v12747_v49  ;;  %v12908_v11 = vmul.f32 %v11042_v53, %v12750_v57  ;;  %v12911_v13 = vmul.f32 %v11042_v53, %v12753_v55  ;;  %v12914_v30 = vmul.f32 %v11042_v53, %v12756_v15 }
 0x43a   : > { %v12917_v27 = vmul.f32 %v11042_v53, %v12761_v38  ;;  %v4024_v42 = vmax.f32 %v3992_v44, 0.0  ;;  %v4025_v37 = vmax.f32 %v3993_v56, 0.0  ;;  %v4026_v54 = vmax.f32 %v3994_v58, 0.0 }
 0x43b   : > { %v4027_v47 = vmax.f32 %v3995_v59, 0.0  ;;  %v4028_v63 = vmax.f32 %v3996_v7, 0.0  ;;  %v4029_v10 = vmax.f32 %v3997_v0, 0.0  ;;  %v4030_v49 = vmax.f32 %v3998_v1, 0.0 }
 0x43c   : > { %v4031_v14 = vmax.f32 %v3999_v3, 0.0  ;;  %v4032_v41 = vmax.f32 %v4000_v28, 0.0  ;;  %v4033_v57 = vmax.f32 %v4001_v5, 0.0  ;;  %v4034_v39 = vmax.f32 %v4002_v60, 0.0  ;;  %4111 = vst.msk [vmem:[#allocation3 + $0x19] sm:$0xff] %vm250_vm0, %v4024_v42  ;;  %4112 = vst.msk [vmem:[#allocation3 + $0x21] sm:$0xff] %vm250_vm0, %v4025_v37 }
 0x43d   : > { %4113 = vst.msk [vmem:[#allocation3 + $0x31] sm:$0xff] %vm250_vm0, %v4026_v54  ;;  %v4035_v55 = vmax.f32 %v4003_v16, 0.0  ;;  %v4036_v15 = vmax.f32 %v4004_v19, 0.0  ;;  %v4037_v38 = vmax.f32 %v4005_v22, 0.0  ;;  %v4038_v40 = vmax.f32 %v4006_v12, 0.0  ;;  %4114 = vst.msk [vmem:[#allocation3 + $0x39] sm:$0xff] %vm250_vm0, %v4027_v47 }
 0x43e   : > { %4115 = vst.msk [vmem:[#allocation3 + $0x49] sm:$0xff] %vm250_vm0, %v4028_v63  ;;  %4116 = vst.msk [vmem:[#allocation3 + $0x51] sm:$0xff] %vm250_vm0, %v4029_v10  ;;  %v4039_v51 = vmax.f32 %v4007_v25, 0.0  ;;  %v4040_v35 = vmax.f32 %v4008_v8, 0.0  ;;  %v4041_v62 = vmax.f32 %v4009_v4, 0.0  ;;  %v4042_v61 = vmax.f32 %v4010_v6, 0.0 }
 0x43f   : > { %4117 = vst.msk [vmem:[#allocation3 + $0x61] sm:$0xff] %vm250_vm0, %v4030_v49  ;;  %4118 = vst.msk [vmem:[#allocation3 + $0x69] sm:$0xff] %vm250_vm0, %v4031_v14  ;;  %v4043_v24 = vmax.f32 %v12884_v21, 0.0  ;;  %v4044_v23 = vmax.f32 %v12887_v26, 0.0  ;;  %v4045_v32 = vmax.f32 %v12890_v17, 0.0  ;;  %v4046_v33 = vmax.f32 %v12893_v9, 0.0 }
 0x440   : > { %4119 = vst.msk [vmem:[#allocation3 + $0x79] sm:$0xff] %vm250_vm0, %v4032_v41  ;;  %4120 = vst.msk [vmem:[#allocation3 + $0x81] sm:$0xff] %vm250_vm0, %v4033_v57  ;;  %v4047_v34 = vmax.f32 %v12896_v48, 0.0  ;;  %v4048_v36 = vmax.f32 %v12899_v43, 0.0  ;;  %v4049_v31 = vmax.f32 %v12902_v18, 0.0  ;;  %v4050_v45 = vmax.f32 %v12905_v20, 0.0 }
 0x441   : > { %4121 = vst.msk [vmem:[#allocation3 + $0x91] sm:$0xff] %vm250_vm0, %v4034_v39  ;;  %4122 = vst.msk [vmem:[#allocation3 + $0x99] sm:$0xff] %vm250_vm0, %v4035_v55  ;;  %v4051_v46 = vmax.f32 %v12908_v11, 0.0  ;;  %v4052_v52 = vmax.f32 %v12911_v13, 0.0  ;;  %v4053_v53 = vmax.f32 %v12914_v30, 0.0  ;;  %v4055_v29 = vmax.f32 %v12917_v27, 0.0 }
 0x442   : > { %4123 = vst.msk [vmem:[#allocation3 + $0xa9] sm:$0xff] %vm250_vm0, %v4036_v15  ;;  %4124 = vst.msk [vmem:[#allocation3 + $0xb1] sm:$0xff] %vm250_vm0, %v4037_v38  ;;  %v4143_v13 = vld [vmem:[#allocation3] sm:$0xff]  ;;  %v4894_v42 = vld [vmem:[#allocation9 + $0x58] sm:$0xff] }
 0x443   : > { %4125 = vst.msk [vmem:[#allocation3 + $0xc1] sm:$0xff] %vm250_vm0, %v4038_v40  ;;  %4126 = vst.msk [vmem:[#allocation3 + $0xc9] sm:$0xff] %vm250_vm0, %v4039_v51  ;;  %v12962_v44 = vld [vmem:[#allocation3 + $0x19] sm:$0xff]  ;;  %v12964_v56 = vld [vmem:[#allocation3 + $0x21] sm:$0xff] }
 0x444   : > { %4127 = vst.msk [vmem:[#allocation3 + $0xd9] sm:$0xff] %vm250_vm0, %v4040_v35  ;;  %4128 = vst.msk [vmem:[#allocation3 + $0xe1] sm:$0xff] %vm250_vm0, %v4041_v62  ;;  %9820 = vmatprep.mubr.msk.f32.mxu1 %vm250_vm0, %v12962_v44  ;;  %v12970_v58 = vld [vmem:[#allocation3 + $0x31] sm:$0xff]  ;;  %v12974_v59 = vld [vmem:[#allocation3 + $0x39] sm:$0xff] }
 0x445   : > { %4129 = vst.msk [vmem:[#allocation3 + $0xf1] sm:$0xff] %vm250_vm0, %v4042_v61  ;;  %4130 = vst.msk [vmem:[#allocation3 + $0xf9] sm:$0xff] %vm250_vm0, %v4043_v24  ;;  %9821 = vmatmul.mubr.msk.f32.gmra.mrb[2].mxu1 %vm250_vm0, %v12964_v56  ;;  %v12978_v7 = vld [vmem:[#allocation3 + $0x49] sm:$0xff]  ;;  %v12982_v0 = vld [vmem:[#allocation3 + $0x51] sm:$0xff] }
 0x446   : > { %4131 = vst.msk [vmem:[#allocation3 + $0x109] sm:$0xff] %vm250_vm0, %v4044_v23  ;;  %4132 = vst.msk [vmem:[#allocation3 + $0x111] sm:$0xff] %vm250_vm0, %v4045_v32  ;;  %9823 = vmatprep.mubr.msk.f32.mxu1 %vm250_vm0, %v12970_v58  ;;  %v12986_v1 = vld [vmem:[#allocation3 + $0x61] sm:$0xff]  ;;  %v12990_v2 = vld [vmem:[#allocation3 + $0x69] sm:$0xff] }
 0x447   : > { %4133 = vst.msk [vmem:[#allocation3 + $0x121] sm:$0xff] %vm250_vm0, %v4046_v33  ;;  %4134 = vst.msk [vmem:[#allocation3 + $0x129] sm:$0xff] %vm250_vm0, %v4047_v34  ;;  %v12994_v3 = vld [vmem:[#allocation3 + $0x79] sm:$0xff]  ;;  %v12998_v28 = vld [vmem:[#allocation3 + $0x81] sm:$0xff] }
 0x448   : > { %4135 = vst.msk [vmem:[#allocation3 + $0x139] sm:$0xff] %vm250_vm0, %v4048_v36  ;;  %4136 = vst.msk [vmem:[#allocation3 + $0x141] sm:$0xff] %vm250_vm0, %v4049_v31  ;;  %v13002_v5 = vld [vmem:[#allocation3 + $0x91] sm:$0xff]  ;;  %v13006_v60 = vld [vmem:[#allocation3 + $0x99] sm:$0xff] }
 0x449   : > { %4137 = vst.msk [vmem:[#allocation3 + $0x151] sm:$0xff] %vm250_vm0, %v4050_v45  ;;  %4138 = vst.msk [vmem:[#allocation3 + $0x159] sm:$0xff] %vm250_vm0, %v4051_v46  ;;  %9824 = vmatmul.mubr.msk.f32.gmra.mrb[4].mxu1 %vm250_vm0, %v12974_v59  ;;  %v13010_v16 = vld [vmem:[#allocation3 + $0xa9] sm:$0xff]  ;;  %v13014_v19 = vld [vmem:[#allocation3 + $0xb1] sm:$0xff] }
 0x44a   : > { %4139 = vst.msk [vmem:[#allocation3 + $0x169] sm:$0xff] %vm250_vm0, %v4052_v52  ;;  %4140 = vst.msk [vmem:[#allocation3 + $0x171] sm:$0xff] %vm250_vm0, %v4053_v53  ;;  %9826 = vmatprep.mubr.msk.f32.mxu1 %vm250_vm0, %v12978_v7  ;;  %v13018_v22 = vld [vmem:[#allocation3 + $0xc1] sm:$0xff]  ;;  %v13022_v12 = vld [vmem:[#allocation3 + $0xc9] sm:$0xff] }
 0x44b   : > { %4142 = vst.msk [vmem:[#allocation3 + $0x189] sm:$0xff] %vm250_vm0, %v4055_v29  ;;  %v13026_v25 = vld [vmem:[#allocation3 + $0xd9] sm:$0xff]  ;;  %v13030_v8 = vld [vmem:[#allocation3 + $0xe1] sm:$0xff]  ;;  %v5281_v47 = vld [vmem:[#allocation9 + $0x60] sm:$0xff] }
 0x44c   : > { %v13034_v4 = vld [vmem:[#allocation3 + $0xf1] sm:$0xff]  ;;  %v13038_v6 = vld [vmem:[#allocation3 + $0xf9] sm:$0xff]  ;;  %v4144_v37 = vld [vmem:[#allocation3 + $0x8] sm:$0xff] }
 0x44d   : > { %9827 = vmatmul.mubr.msk.f32.gmra.mrb[6].mxu1 %vm250_vm0, %v12982_v0  ;;  %v13042_v21 = vld [vmem:[#allocation3 + $0x109] sm:$0xff]  ;;  %v13046_v26 = vld [vmem:[#allocation3 + $0x111] sm:$0xff]  ;;  %v4893_v27 = vld [vmem:[#allocation9 + $0x50] sm:$0xff] }
 0x44e   : > { %9829 = vmatprep.mubr.msk.f32.mxu1 %vm250_vm0, %v12986_v1  ;;  %14602 = vst [vmem:[#allocation45_spill] sm:$0xff] %v13046_v26  ;;  %v13050_v17 = vld [vmem:[#allocation3 + $0x121] sm:$0xff]  ;;  %v13054_v9 = vld [vmem:[#allocation3 + $0x129] sm:$0xff]  ;;  %v10405_v54 = vpack.c.bf16 %v4894_v42, %v4893_v27  ;;  %v5282_v63 = vld [vmem:[#allocation9 + $0x68] sm:$0xff] }
 0x44f   : > { %14603 = vst [vmem:[#allocation46_spill] sm:$0xff] %v13050_v17  ;;  %14604 = vst [vmem:[#allocation47_spill] sm:$0xff] %v13054_v9  ;;  %v13058_v48 = vld [vmem:[#allocation3 + $0x139] sm:$0xff]  ;;  %v13062_v43 = vld [vmem:[#allocation3 + $0x141] sm:$0xff]  ;;  %v13089_v49 = vpack.c.bf16 %v5282_v63, %v5281_v47 }
 0x450   : > { %14605 = vst [vmem:[#allocation48_spill] sm:$0xff] %v13058_v48  ;;  %14606 = vst [vmem:[#allocation49_spill] sm:$0xff] %v13062_v43  ;;  %v13066_v18 = vld [vmem:[#allocation3 + $0x151] sm:$0xff]  ;;  %v13070_v20 = vld [vmem:[#allocation3 + $0x159] sm:$0xff] }
 0x451   : > { %9830 = vmatmul.mubr.msk.f32.gmra.mrb[8].mxu1 %vm250_vm0, %v12990_v2  ;;  %14607 = vst [vmem:[#allocation50_spill] sm:$0xff] %v13066_v18  ;;  %14608 = vst [vmem:[#allocation51_spill] sm:$0xff] %v13070_v20  ;;  %v13074_v11 = vld [vmem:[#allocation3 + $0x169] sm:$0xff]  ;;  %v13078_v30 = vld [vmem:[#allocation3 + $0x171] sm:$0xff] }
 0x452   : > { %9832 = vmatprep.mubr.msk.f32.mxu1 %vm250_vm0, %v12994_v3  ;;  %14609 = vst [vmem:[#allocation54_spill] sm:$0xff] %v13074_v11  ;;  %14610 = vst [vmem:[#allocation55_spill] sm:$0xff] %v13078_v30  ;;  %v13084_v10 = vld [vmem:[#allocation3 + $0x18] sm:$0xff]  ;;  %v13091_v14 = vld [vmem:[#allocation3 + $0x20] sm:$0xff] }
 0x453   : > { %v13095_v41 = vld [vmem:[#allocation3 + $0x30] sm:$0xff]  ;;  %v13100_v57 = vld [vmem:[#allocation3 + $0x38] sm:$0xff]  ;;  %v13112_v55 = vld [vmem:[#allocation3 + $0x60] sm:$0xff] }
 0x454   : > { %v13108_v39 = vld [vmem:[#allocation3 + $0x50] sm:$0xff]  ;;  %v13116_v15 = vld [vmem:[#allocation3 + $0x68] sm:$0xff]  ;;  %v13120_v38 = vld [vmem:[#allocation3 + $0x78] sm:$0xff] }
 0x455   : > { %9833 = vmatmul.mubr.msk.f32.gmra.mrb[10].mxu1 %vm250_vm0, %v12998_v28  ;;  %v13124_v40 = vld [vmem:[#allocation3 + $0x80] sm:$0xff]  ;;  %v13128_v51 = vld [vmem:[#allocation3 + $0x90] sm:$0xff]  ;;  %v13132_v35 = vld [vmem:[#allocation3 + $0x98] sm:$0xff] }
 0x456   : > { %9835 = vmatprep.mubr.msk.f32.mxu1 %vm250_vm0, %v13002_v5  ;;  %v13136_v62 = vld [vmem:[#allocation3 + $0xa8] sm:$0xff]  ;;  %v13140_v61 = vld [vmem:[#allocation3 + $0xb0] sm:$0xff]  ;;  %v13144_v24 = vld [vmem:[#allocation3 + $0xc0] sm:$0xff] }
 0x457   : > { %v13148_v23 = vld [vmem:[#allocation3 + $0xc8] sm:$0xff]  ;;  %v13152_v32 = vld [vmem:[#allocation3 + $0xd8] sm:$0xff]  ;;  %v13156_v33 = vld [vmem:[#allocation3 + $0xe0] sm:$0xff] }
 0x458   : > { %v13160_v34 = vld [vmem:[#allocation3 + $0xf0] sm:$0xff]  ;;  %v13164_v36 = vld [vmem:[#allocation3 + $0xf8] sm:$0xff]  ;;  %v13168_v31 = vld [vmem:[#allocation3 + $0x108] sm:$0xff] }
 0x459   : > { %9836 = vmatmul.mubr.msk.f32.gmra.mrb[12].mxu1 %vm250_vm0, %v13006_v60  ;;  %v13172_v45 = vld [vmem:[#allocation3 + $0x110] sm:$0xff]  ;;  %v13176_v46 = vld [vmem:[#allocation3 + $0x120] sm:$0xff]  ;;  %v13180_v52 = vld [vmem:[#allocation3 + $0x128] sm:$0xff] }
 0x45a   : > { %9838 = vmatprep.mubr.msk.f32.mxu1 %vm250_vm0, %v13010_v16  ;;  %v13184_v53 = vld [vmem:[#allocation3 + $0x138] sm:$0xff]  ;;  %v13188_v29 = vld [vmem:[#allocation3 + $0x140] sm:$0xff]  ;;  %v13200_v42 = vld [vmem:[#allocation3 + $0x168] sm:$0xff] }
 0x45b   : > { %v13196_v27 = vld [vmem:[#allocation3 + $0x158] sm:$0xff]  ;;  %v5283_v47 = vld [vmem:[#allocation9 + $0x70] sm:$0xff]  ;;  %v5284_v63 = vld [vmem:[#allocation9 + $0x78] sm:$0xff] }
 0x45d   : > { %9839 = vmatmul.mubr.msk.f32.gmra.mrb[14].mxu1 %vm250_vm0, %v13014_v19 }
 0x45e   : > { %9841 = vmatprep.mubr.msk.f32.mxu1 %vm250_vm0, %v13018_v22 }
 0x461   : > { %9842 = vmatmul.mubr.msk.f32.gmra.mrb[16].mxu1 %vm250_vm0, %v13022_v12 }
 0x462   : > { %9844 = vmatprep.mubr.msk.f32.mxu1 %vm250_vm0, %v13026_v25 }
 0x465   : > { %9845 = vmatmul.mubr.msk.f32.gmra.mrb[18].mxu1 %vm250_vm0, %v13030_v8 }
 0x466   : > { %9847 = vmatprep.mubr.msk.f32.mxu1 %vm250_vm0, %v13034_v4 }
 0x469   : > { %9848 = vmatmul.mubr.msk.f32.gmra.mrb[20].mxu1 %vm250_vm0, %v13038_v6 }
 0x46a   : > { %9850 = vmatprep.mubr.msk.f32.mxu1 %vm250_vm0, %v13042_v21 }
 0x46d   : > { %9851 = vmatmul.mubr.msk.f32.gmra.mrb[22].mxu1 %vm250_vm0, %v13046_v26 }
 0x46e   : > { %9853 = vmatprep.mubr.msk.f32.mxu1 %vm250_vm0, %v13050_v17 }
 0x471   : > { %9854 = vmatmul.mubr.msk.f32.gmra.mrb[24].mxu1 %vm250_vm0, %v13054_v9  ;;  %v13217_v9 = vld [vmem:[#allocation3 + $0x22] sm:$0xff] }
 0x472   : > { %9856 = vmatprep.mubr.msk.f32.mxu1 %vm250_vm0, %v13058_v48 }
 0x475   : > { %9857 = vmatmul.mubr.msk.f32.gmra.mrb[26].mxu1 %vm250_vm0, %v13062_v43  ;;  %v13210_v43 = vld [vmem:[#allocation3 + $0x1a] sm:$0xff] }
 0x476   : > { %9859 = vmatprep.mubr.msk.f32.mxu1 %vm250_vm0, %v13066_v18  ;;  %v5672_v18 = vld [vmem:[#allocation9 + $0x88] sm:$0xff] }
 0x479   : > { %9860 = vmatmul.mubr.msk.f32.gmra.mrb[28].mxu1 %vm250_vm0, %v13070_v20  ;;  %v5671_v20 = vld [vmem:[#allocation9 + $0x80] sm:$0xff] }
 0x47a   : > { %9862 = vmatprep.mubr.msk.f32.mxu1 %vm250_vm0, %v13074_v11  ;;  %v10413_v11 = vpack.c.bf16 %v5284_v63, %v5283_v47  ;;  %v13215_v48 = vpack.c.bf16 %v5672_v18, %v5671_v20  ;;  %v13230_v18 = vld [vmem:[#allocation3 + $0x4a] sm:$0xff]  ;;  %v13234_v20 = vld [vmem:[#allocation3 + $0x52] sm:$0xff]  ;;  %v13246_v47 = vld [vmem:[#allocation3 + $0x7a] sm:$0xff] }
 0x47b   : > { %14613 = vst [vmem:[#allocation58_spill] sm:$0xff] %v13230_v18  ;;  %14614 = vst [vmem:[#allocation59_spill] sm:$0xff] %v13234_v20  ;;  %v13250_v63 = vld [vmem:[#allocation3 + $0x82] sm:$0xff] }
 0x47c   : > { %14617 = vst [vmem:[#allocation62_spill] sm:$0xff] %v13246_v47  ;;  %14618 = vst [vmem:[#allocation63_spill] sm:$0xff] %v13250_v63 }
 0x47d   : > { %9863 = vmatmul.mubr.msk.f32.gmra.mrb[30].mxu1 %vm250_vm0, %v13078_v30  ;;  %v4859_v30 = vld [vmem:[#allocation3 + $0xa] sm:$0xff] }
 0x47e   : > { %9873 = vmatprep.mubr.msk.f32.mxu1 %vm250_vm0, %v4143_v13  ;;  %v13192_v13 = vld [vmem:[#allocation3 + $0x150] sm:$0xff] }
 0x481   : > { %9874 = vmatmul.mubr.msk.f32.vlgmr.msra.gmra.mrb[0].mxu1 %vm250_vm0, %v4144_v37  ;;  %v4858_v37 = vld [vmem:[#allocation3 + $0x2] sm:$0xff] }
 0x482   : > { %9876 = vmatprep.mubr.msk.f32.mxu1 %vm250_vm0, %v13084_v10  ;;  %10404 = vmatpush3.bf16.msra.mxu1 %v12836_v50  ;;  %v13104_v50 = vld [vmem:[#allocation3 + $0x48] sm:$0xff] }
 0x483   : > { %10406 = vmatprep.subr.bf16.mxu1 %v10405_v54 }
 0x485   : > { %9877 = vmatmul.mubr.msk.f32.gmra.mrb[2].mxu1 %vm250_vm0, %v13091_v14 }
 0x486   : > { %9879 = vmatprep.mubr.msk.f32.mxu1 %vm250_vm0, %v13095_v41  ;;  %10408 = vmatpush3.bf16.msra.mxu1 %v10405_v54  ;;  %v13204_v54 = vld [vmem:[#allocation3 + $0x170] sm:$0xff] }
 0x487   : > { %10410 = vmatprep.subr.bf16.mxu1 %v13089_v49 }
 0x489   : > { %9880 = vmatmul.mubr.msk.f32.gmra.mrb[4].mxu1 %vm250_vm0, %v13100_v57 }
 0x48a   : > { %9882 = vmatprep.mubr.msk.f32.mxu1 %vm250_vm0, %v13104_v50 }
 0x48d   : > { %9883 = vmatmul.mubr.msk.f32.gmra.mrb[6].mxu1 %vm250_vm0, %v13108_v39 }
 0x48e   : > { %9885 = vmatprep.mubr.msk.f32.mxu1 %vm250_vm0, %v13112_v55 }
 0x491   : > { %9886 = vmatmul.mubr.msk.f32.gmra.mrb[8].mxu1 %vm250_vm0, %v13116_v15 }
 0x492   : > { %9888 = vmatprep.mubr.msk.f32.mxu1 %vm250_vm0, %v13120_v38 }
 0x495   : > { %9889 = vmatmul.mubr.msk.f32.gmra.mrb[10].mxu1 %vm250_vm0, %v13124_v40 }
 0x496   : > { %9891 = vmatprep.mubr.msk.f32.mxu1 %vm250_vm0, %v13128_v51 }
 0x499   : > { %9892 = vmatmul.mubr.msk.f32.gmra.mrb[12].mxu1 %vm250_vm0, %v13132_v35 }
 0x49a   : > { %9894 = vmatprep.mubr.msk.f32.mxu1 %vm250_vm0, %v13136_v62 }
 0x49d   : > { %9895 = vmatmul.mubr.msk.f32.gmra.mrb[14].mxu1 %vm250_vm0, %v13140_v61 }
 0x49e   : > { %9897 = vmatprep.mubr.msk.f32.mxu1 %vm250_vm0, %v13144_v24 }
 0x4a1   : > { %9898 = vmatmul.mubr.msk.f32.gmra.mrb[16].mxu1 %vm250_vm0, %v13148_v23 }
 0x4a2   : > { %9900 = vmatprep.mubr.msk.f32.mxu1 %vm250_vm0, %v13152_v32 }
 0x4a5   : > { %9901 = vmatmul.mubr.msk.f32.gmra.mrb[18].mxu1 %vm250_vm0, %v13156_v33 }
 0x4a6   : > { %9903 = vmatprep.mubr.msk.f32.mxu1 %vm250_vm0, %v13160_v34 }
 0x4a9   : > { %9904 = vmatmul.mubr.msk.f32.gmra.mrb[20].mxu1 %vm250_vm0, %v13164_v36 }
 0x4aa   : > { %9906 = vmatprep.mubr.msk.f32.mxu1 %vm250_vm0, %v13168_v31 }
 0x4ad   : > { %9907 = vmatmul.mubr.msk.f32.gmra.mrb[22].mxu1 %vm250_vm0, %v13172_v45 }
 0x4ae   : > { %9909 = vmatprep.mubr.msk.f32.mxu1 %vm250_vm0, %v13176_v46 }
 0x4b1   : > { %9910 = vmatmul.mubr.msk.f32.gmra.mrb[24].mxu1 %vm250_vm0, %v13180_v52 }
 0x4b2   : > { %9912 = vmatprep.mubr.msk.f32.mxu1 %vm250_vm0, %v13184_v53 }
 0x4b5   : > { %9913 = vmatmul.mubr.msk.f32.gmra.mrb[26].mxu1 %vm250_vm0, %v13188_v29 }
 0x4b6   : > { %9915 = vmatprep.mubr.msk.f32.mxu1 %vm250_vm0, %v13192_v13 }
 0x4b9   : > { %9916 = vmatmul.mubr.msk.f32.gmra.mrb[28].mxu1 %vm250_vm0, %v13196_v27 }
 0x4ba   : > { %9918 = vmatprep.mubr.msk.f32.mxu1 %vm250_vm0, %v13200_v42 }
 0x4bd   : > { %9919 = vmatmul.mubr.msk.f32.gmra.mrb[30].mxu1 %vm250_vm0, %v13204_v54 }
 0x4be   : > { %9929 = vmatprep.mubr.msk.f32.mxu1 %vm250_vm0, %v4858_v37  ;;  %v13221_v37 = vld [vmem:[#allocation3 + $0x32] sm:$0xff] }
 0x4bf   : > { %14611 = vst [vmem:[#allocation56_spill] sm:$0xff] %v13221_v37 }
 0x4c1   : > { %9930 = vmatmul.mubr.msk.f32.vlgmr.msra.gmra.mrb[0].mxu1 %vm250_vm0, %v4859_v30  ;;  %v13226_v30 = vld [vmem:[#allocation3 + $0x3a] sm:$0xff] }
 0x4c2   : > { %9932 = vmatprep.mubr.msk.f32.mxu1 %vm250_vm0, %v13210_v43  ;;  %10412 = vmatpush3.bf16.msra.mxu1 %v13089_v49  ;;  %14612 = vst [vmem:[#allocation57_spill] sm:$0xff] %v13226_v30  ;;  %v13238_v49 = vld [vmem:[#allocation3 + $0x62] sm:$0xff] }
 0x4c3   : > { %10414 = vmatprep.subr.bf16.mxu1 %v10413_v11  ;;  %14615 = vst [vmem:[#allocation60_spill] sm:$0xff] %v13238_v49 }
 0x4c5   : > { %9933 = vmatmul.mubr.msk.f32.gmra.mrb[2].mxu1 %vm250_vm0, %v13217_v9 }
 0x4c6   : > { %9935 = vmatprep.mubr.msk.f32.mxu1 %vm250_vm0, %v13221_v37  ;;  %10416 = vmatpush3.bf16.msra.mxu1 %v10413_v11  ;;  %v13242_v11 = vld [vmem:[#allocation3 + $0x6a] sm:$0xff]  ;;  %v6062_v37 = vld [vmem:[#allocation9 + $0xa8] sm:$0xff] }
 0x4c7   : > { %10418 = vmatprep.subr.bf16.mxu1 %v13215_v48  ;;  %14616 = vst [vmem:[#allocation61_spill] sm:$0xff] %v13242_v11 }
 0x4c9   : > { %9936 = vmatmul.mubr.msk.f32.gmra.mrb[4].mxu1 %vm250_vm0, %v13226_v30  ;;  %v5674_v30 = vld [vmem:[#allocation9 + $0x98] sm:$0xff] }
 0x4ca   : > { %9938 = vmatprep.mubr.msk.f32.mxu1 %vm250_vm0, %v13230_v18  ;;  %v5673_v18 = vld [vmem:[#allocation9 + $0x90] sm:$0xff] }
 0x4cd   : > { %9939 = vmatmul.mubr.msk.f32.gmra.mrb[6].mxu1 %vm250_vm0, %v13234_v20  ;;  %v13254_v20 = vld [vmem:[#allocation3 + $0x92] sm:$0xff] }
 0x4ce   : > { %9941 = vmatprep.mubr.msk.f32.mxu1 %vm250_vm0, %v13238_v49  ;;  %14619 = vst [vmem:[#allocation64_spill] sm:$0xff] %v13254_v20  ;;  %v13258_v49 = vld [vmem:[#allocation3 + $0x9a] sm:$0xff] }
 0x4cf   : > { %14620 = vst [vmem:[#allocation65_spill] sm:$0xff] %v13258_v49 }
 0x4d1   : > { %9942 = vmatmul.mubr.msk.f32.gmra.mrb[8].mxu1 %vm250_vm0, %v13242_v11  ;;  %v13262_v11 = vld [vmem:[#allocation3 + $0xaa] sm:$0xff] }
 0x4d2   : > { %9944 = vmatprep.mubr.msk.f32.mxu1 %vm250_vm0, %v13246_v47  ;;  %14621 = vst [vmem:[#allocation66_spill] sm:$0xff] %v13262_v11  ;;  %v13266_v47 = vld [vmem:[#allocation3 + $0xb2] sm:$0xff] }
 0x4d3   : > { %14622 = vst [vmem:[#allocation67_spill] sm:$0xff] %v13266_v47 }
 0x4d5   : > { %9945 = vmatmul.mubr.msk.f32.gmra.mrb[10].mxu1 %vm250_vm0, %v13250_v63  ;;  %v13270_v63 = vld [vmem:[#allocation3 + $0xc2] sm:$0xff] }
 0x4d6   : > { %9947 = vmatprep.mubr.msk.f32.mxu1 %vm250_vm0, %v13254_v20  ;;  %14623 = vst [vmem:[#allocation68_spill] sm:$0xff] %v13270_v63  ;;  %v13274_v20 = vld [vmem:[#allocation3 + $0xca] sm:$0xff] }
 0x4d7   : > { %14624 = vst [vmem:[#allocation69_spill] sm:$0xff] %v13274_v20 }
 0x4d9   : > { %9948 = vmatmul.mubr.msk.f32.gmra.mrb[12].mxu1 %vm250_vm0, %v13258_v49  ;;  %v13278_v49 = vld [vmem:[#allocation3 + $0xda] sm:$0xff] }
 0x4da   : > { %9950 = vmatprep.mubr.msk.f32.mxu1 %vm250_vm0, %v13262_v11  ;;  %14625 = vst [vmem:[#allocation70_spill] sm:$0xff] %v13278_v49  ;;  %v13282_v11 = vld [vmem:[#allocation3 + $0xe2] sm:$0xff] }
 0x4db   : > { %14626 = vst [vmem:[#allocation71_spill] sm:$0xff] %v13282_v11 }
 0x4dd   : > { %9951 = vmatmul.mubr.msk.f32.gmra.mrb[14].mxu1 %vm250_vm0, %v13266_v47  ;;  %v13286_v47 = vld [vmem:[#allocation3 + $0xf2] sm:$0xff] }
 0x4de   : > { %9953 = vmatprep.mubr.msk.f32.mxu1 %vm250_vm0, %v13270_v63  ;;  %14627 = vst [vmem:[#allocation72_spill] sm:$0xff] %v13286_v47  ;;  %v13290_v63 = vld [vmem:[#allocation3 + $0xfa] sm:$0xff] }
 0x4df   : > { %14628 = vst [vmem:[#allocation73_spill] sm:$0xff] %v13290_v63 }
 0x4e1   : > { %9954 = vmatmul.mubr.msk.f32.gmra.mrb[16].mxu1 %vm250_vm0, %v13274_v20  ;;  %v13294_v20 = vld [vmem:[#allocation3 + $0x10a] sm:$0xff] }
 0x4e2   : > { %9956 = vmatprep.mubr.msk.f32.mxu1 %vm250_vm0, %v13278_v49  ;;  %14629 = vst [vmem:[#allocation74_spill] sm:$0xff] %v13294_v20  ;;  %v13298_v49 = vld [vmem:[#allocation3 + $0x112] sm:$0xff] }
 0x4e3   : > { %14630 = vst [vmem:[#allocation75_spill] sm:$0xff] %v13298_v49 }
 0x4e5   : > { %9957 = vmatmul.mubr.msk.f32.gmra.mrb[18].mxu1 %vm250_vm0, %v13282_v11  ;;  %v13302_v11 = vld [vmem:[#allocation3 + $0x122] sm:$0xff] }
 0x4e6   : > { %9959 = vmatprep.mubr.msk.f32.mxu1 %vm250_vm0, %v13286_v47  ;;  %14631 = vst [vmem:[#allocation76_spill] sm:$0xff] %v13302_v11  ;;  %v13306_v47 = vld [vmem:[#allocation3 + $0x12a] sm:$0xff] }
 0x4e7   : > { %14632 = vst [vmem:[#allocation77_spill] sm:$0xff] %v13306_v47 }
 0x4e9   : > { %9960 = vmatmul.mubr.msk.f32.gmra.mrb[20].mxu1 %vm250_vm0, %v13290_v63  ;;  %v13310_v63 = vld [vmem:[#allocation3 + $0x13a] sm:$0xff] }
 0x4ea   : > { %9962 = vmatprep.mubr.msk.f32.mxu1 %vm250_vm0, %v13294_v20  ;;  %14633 = vst [vmem:[#allocation78_spill] sm:$0xff] %v13310_v63  ;;  %v13314_v20 = vld [vmem:[#allocation3 + $0x142] sm:$0xff] }
 0x4eb   : > { %14634 = vst [vmem:[#allocation79_spill] sm:$0xff] %v13314_v20 }
 0x4ed   : > { %9963 = vmatmul.mubr.msk.f32.gmra.mrb[22].mxu1 %vm250_vm0, %v13298_v49  ;;  %v13318_v49 = vld [vmem:[#allocation3 + $0x152] sm:$0xff] }
 0x4ee   : > { %9965 = vmatprep.mubr.msk.f32.mxu1 %vm250_vm0, %v13302_v11  ;;  %14635 = vst [vmem:[#allocation44_spill] sm:$0xff] %v13318_v49  ;;  %v13322_v11 = vld [vmem:[#allocation3 + $0x15a] sm:$0xff] }
 0x4ef   : > { %14636 = vst [vmem:[#allocation80_spill] sm:$0xff] %v13322_v11 }
 0x4f1   : > { %9966 = vmatmul.mubr.msk.f32.gmra.mrb[24].mxu1 %vm250_vm0, %v13306_v47  ;;  %v13326_v47 = vld [vmem:[#allocation3 + $0x16a] sm:$0xff] }
 0x4f2   : > { %9968 = vmatprep.mubr.msk.f32.mxu1 %vm250_vm0, %v13310_v63  ;;  %14637 = vst [vmem:[#allocation81_spill] sm:$0xff] %v13326_v47  ;;  %v13330_v63 = vld [vmem:[#allocation3 + $0x172] sm:$0xff] }
 0x4f5   : > { %9969 = vmatmul.mubr.msk.f32.gmra.mrb[26].mxu1 %vm250_vm0, %v13314_v20  ;;  %v6061_v20 = vld [vmem:[#allocation9 + $0xa0] sm:$0xff] }
 0x4f6   : > { %9971 = vmatprep.mubr.msk.f32.mxu1 %vm250_vm0, %v13318_v49  ;;  %v10421_v49 = vpack.c.bf16 %v5674_v30, %v5673_v18  ;;  %v6452_v18 = vld [vmem:[#allocation9 + $0xc0] sm:$0xff] }
 0x4f9   : > { %9972 = vmatmul.mubr.msk.f32.gmra.mrb[28].mxu1 %vm250_vm0, %v13322_v11 }
 0x4fa   : > { %9974 = vmatprep.mubr.msk.f32.mxu1 %vm250_vm0, %v13326_v47  ;;  %v10425_v47 = vpack.c.bf16 %v6062_v37, %v6061_v20  ;;  %v6064_v37 = vld [vmem:[#allocation9 + $0xb8] sm:$0xff]  ;;  %v6453_v20 = vld [vmem:[#allocation9 + $0xc8] sm:$0xff] }
 0x4fd   : > { %9975 = vmatmul.mubr.msk.f32.gmra.mrb[30].mxu1 %vm250_vm0, %v13330_v63 }
 0x4fe   : > { %9985 = vmatprep.mubr.msk.f32.mxu1 %vm250_vm0, %v13084_v10  ;;  %v13399_v10 = vld [vmem:[#allocation3 + $0x188] sm:$0xff] }
 0x501   : > { %9986 = vmatmul.mubr.msk.f32.vlgmr.msra.gmra.mrb[0].mxu1 %vm250_vm0, %v13091_v14  ;;  %v6063_v14 = vld [vmem:[#allocation9 + $0xb0] sm:$0xff] }
 0x502   : > { %9988 = vmatprep.mubr.msk.f32.mxu1 %vm250_vm0, %v13095_v41  ;;  %10420 = vmatpush3.bf16.msra.mxu1 %v13215_v48  ;;  %v13395_v48 = vld [vmem:[#allocation3 + $0x180] sm:$0xff]  ;;  %v10429_v30 = vpack.c.bf16 %v6064_v37, %v6063_v14  ;;  %v14641_v14 = vld [vmem:[#allocation50_spill] sm:$0xff]  ;;  %v14642_v37 = vld [vmem:[#allocation51_spill] sm:$0xff] }
 0x503   : > { %10422 = vmatprep.subr.bf16.mxu1 %v10421_v49 }
 0x505   : > { %9989 = vmatmul.mubr.msk.f32.gmra.mrb[2].mxu1 %vm250_vm0, %v13100_v57 }
 0x506   : > { %9991 = vmatprep.mubr.msk.f32.mxu1 %vm250_vm0, %v13104_v50  ;;  %10424 = vmatpush3.bf16.msra.mxu1 %v10421_v49  ;;  %v10433_v49 = vpack.c.bf16 %v6453_v20, %v6452_v18  ;;  %v14644_v18 = vld [vmem:[#allocation55_spill] sm:$0xff]  ;;  %v13463_v20 = vld [vmem:[#allocation3 + $0x181] sm:$0xff] }
 0x507   : > { %10426 = vmatprep.subr.bf16.mxu1 %v10425_v47  ;;  %14645 = vst [vmem:[#allocation82_spill] sm:$0xff] %v13463_v20 }
 0x509   : > { %9992 = vmatmul.mubr.msk.f32.gmra.mrb[4].mxu1 %vm250_vm0, %v13108_v39 }
 0x50a   : > { %9994 = vmatprep.mubr.msk.f32.mxu1 %vm250_vm0, %v13112_v55 }
 0x50d   : > { %9995 = vmatmul.mubr.msk.f32.gmra.mrb[6].mxu1 %vm250_vm0, %v13116_v15 }
 0x50e   : > { %9997 = vmatprep.mubr.msk.f32.mxu1 %vm250_vm0, %v13120_v38 }
 0x511   : > { %9998 = vmatmul.mubr.msk.f32.gmra.mrb[8].mxu1 %vm250_vm0, %v13124_v40 }
 0x512   : > { %10000 = vmatprep.mubr.msk.f32.mxu1 %vm250_vm0, %v13128_v51 }
 0x515   : > { %10001 = vmatmul.mubr.msk.f32.gmra.mrb[10].mxu1 %vm250_vm0, %v13132_v35 }
 0x516   : > { %10003 = vmatprep.mubr.msk.f32.mxu1 %vm250_vm0, %v13136_v62 }
 0x519   : > { %10004 = vmatmul.mubr.msk.f32.gmra.mrb[12].mxu1 %vm250_vm0, %v13140_v61 }
 0x51a   : > { %10006 = vmatprep.mubr.msk.f32.mxu1 %vm250_vm0, %v13144_v24 }
 0x51d   : > { %10007 = vmatmul.mubr.msk.f32.gmra.mrb[14].mxu1 %vm250_vm0, %v13148_v23 }
 0x51e   : > { %10009 = vmatprep.mubr.msk.f32.mxu1 %vm250_vm0, %v13152_v32 }
 0x521   : > { %10010 = vmatmul.mubr.msk.f32.gmra.mrb[16].mxu1 %vm250_vm0, %v13156_v33 }
 0x522   : > { %10012 = vmatprep.mubr.msk.f32.mxu1 %vm250_vm0, %v13160_v34 }
 0x525   : > { %10013 = vmatmul.mubr.msk.f32.gmra.mrb[18].mxu1 %vm250_vm0, %v13164_v36 }
 0x526   : > { %10015 = vmatprep.mubr.msk.f32.mxu1 %vm250_vm0, %v13168_v31 }
 0x529   : > { %10016 = vmatmul.mubr.msk.f32.gmra.mrb[20].mxu1 %vm250_vm0, %v13172_v45 }
 0x52a   : > { %10018 = vmatprep.mubr.msk.f32.mxu1 %vm250_vm0, %v13176_v46 }
 0x52d   : > { %10019 = vmatmul.mubr.msk.f32.gmra.mrb[22].mxu1 %vm250_vm0, %v13180_v52 }
 0x52e   : > { %10021 = vmatprep.mubr.msk.f32.mxu1 %vm250_vm0, %v13184_v53 }
 0x531   : > { %10022 = vmatmul.mubr.msk.f32.gmra.mrb[24].mxu1 %vm250_vm0, %v13188_v29 }
 0x532   : > { %10024 = vmatprep.mubr.msk.f32.mxu1 %vm250_vm0, %v13192_v13 }
 0x535   : > { %10025 = vmatmul.mubr.msk.f32.gmra.mrb[26].mxu1 %vm250_vm0, %v13196_v27 }
 0x536   : > { %10027 = vmatprep.mubr.msk.f32.mxu1 %vm250_vm0, %v13200_v42 }
 0x539   : > { %10028 = vmatmul.mubr.msk.f32.gmra.mrb[28].mxu1 %vm250_vm0, %v13204_v54 }
 0x53a   : > { %10030 = vmatprep.mubr.msk.f32.mxu1 %vm250_vm0, %v13395_v48 }
 0x53d   : > { %10031 = vmatmul.mubr.msk.f32.gmra.mrb[30].mxu1 %vm250_vm0, %v13399_v10 }
 0x53e   : > { %10041 = vmatprep.mubr.msk.f32.mxu1 %vm250_vm0, %v12962_v44  ;;  %v14638_v44 = vld [vmem:[#allocation47_spill] sm:$0xff] }
 0x541   : > { %10042 = vmatmul.mubr.msk.f32.vlgmr.msra.gmra.mrb[0].mxu1 %vm250_vm0, %v12964_v56  ;;  %v14639_v56 = vld [vmem:[#allocation48_spill] sm:$0xff] }
 0x542   : > { %10044 = vmatprep.mubr.msk.f32.mxu1 %vm250_vm0, %v12970_v58  ;;  %10428 = vmatpush3.bf16.msra.mxu1 %v10425_v47  ;;  %v14640_v47 = vld [vmem:[#allocation49_spill] sm:$0xff] }
 0x543   : > { %10430 = vmatprep.subr.bf16.mxu1 %v10429_v30 }
 0x545   : > { %10045 = vmatmul.mubr.msk.f32.gmra.mrb[2].mxu1 %vm250_vm0, %v12974_v59 }
 0x546   : > { %10047 = vmatprep.mubr.msk.f32.mxu1 %vm250_vm0, %v12978_v7  ;;  %10432 = vmatpush3.bf16.msra.mxu1 %v10429_v30  ;;  %v14643_v30 = vld [vmem:[#allocation54_spill] sm:$0xff] }
 0x547   : > { %10434 = vmatprep.subr.bf16.mxu1 %v10433_v49 }
 0x549   : > { %10048 = vmatmul.mubr.msk.f32.gmra.mrb[4].mxu1 %vm250_vm0, %v12982_v0 }
 0x54a   : > { %10050 = vmatprep.mubr.msk.f32.mxu1 %vm250_vm0, %v12986_v1 }
 0x54d   : > { %10051 = vmatmul.mubr.msk.f32.gmra.mrb[6].mxu1 %vm250_vm0, %v12990_v2 }
 0x54e   : > { %10053 = vmatprep.mubr.msk.f32.mxu1 %vm250_vm0, %v12994_v3 }
 0x551   : > { %10054 = vmatmul.mubr.msk.f32.gmra.mrb[8].mxu1 %vm250_vm0, %v12998_v28 }
 0x552   : > { %10056 = vmatprep.mubr.msk.f32.mxu1 %vm250_vm0, %v13002_v5 }
 0x555   : > { %10057 = vmatmul.mubr.msk.f32.gmra.mrb[10].mxu1 %vm250_vm0, %v13006_v60 }
 0x556   : > { %10059 = vmatprep.mubr.msk.f32.mxu1 %vm250_vm0, %v13010_v16 }
 0x559   : > { %10060 = vmatmul.mubr.msk.f32.gmra.mrb[12].mxu1 %vm250_vm0, %v13014_v19 }
 0x55a   : > { %10062 = vmatprep.mubr.msk.f32.mxu1 %vm250_vm0, %v13018_v22 }
 0x55d   : > { %10063 = vmatmul.mubr.msk.f32.gmra.mrb[14].mxu1 %vm250_vm0, %v13022_v12 }
 0x55e   : > { %10065 = vmatprep.mubr.msk.f32.mxu1 %vm250_vm0, %v13026_v25 }
 0x561   : > { %10066 = vmatmul.mubr.msk.f32.gmra.mrb[16].mxu1 %vm250_vm0, %v13030_v8 }
 0x562   : > { %10068 = vmatprep.mubr.msk.f32.mxu1 %vm250_vm0, %v13034_v4 }
 0x565   : > { %10069 = vmatmul.mubr.msk.f32.gmra.mrb[18].mxu1 %vm250_vm0, %v13038_v6 }
 0x566   : > { %10071 = vmatprep.mubr.msk.f32.mxu1 %vm250_vm0, %v13042_v21 }
 0x569   : > { %10072 = vmatmul.mubr.msk.f32.gmra.mrb[20].mxu1 %vm250_vm0, %v13046_v26  ;;  %v14648_v26 = vld [vmem:[#allocation58_spill] sm:$0xff] }
 0x56a   : > { %10074 = vmatprep.mubr.msk.f32.mxu1 %vm250_vm0, %v13050_v17  ;;  %v14647_v17 = vld [vmem:[#allocation57_spill] sm:$0xff] }
 0x56d   : > { %10075 = vmatmul.mubr.msk.f32.gmra.mrb[22].mxu1 %vm250_vm0, %v14638_v44  ;;  %v6455_v44 = vld [vmem:[#allocation9 + $0xd8] sm:$0xff] }
 0x56e   : > { %10077 = vmatprep.mubr.msk.f32.mxu1 %vm250_vm0, %v14639_v56  ;;  %v13467_v56 = vld [vmem:[#allocation3 + $0x189] sm:$0xff] }
 0x571   : > { %10078 = vmatmul.mubr.msk.f32.gmra.mrb[24].mxu1 %vm250_vm0, %v14640_v47  ;;  %v6454_v47 = vld [vmem:[#allocation9 + $0xd0] sm:$0xff] }
 0x572   : > { %10080 = vmatprep.mubr.msk.f32.mxu1 %vm250_vm0, %v14641_v14  ;;  %v6843_v14 = vld [vmem:[#allocation9 + $0xe8] sm:$0xff] }
 0x575   : > { %10081 = vmatmul.mubr.msk.f32.gmra.mrb[26].mxu1 %vm250_vm0, %v14642_v37  ;;  %v10437_v37 = vpack.c.bf16 %v6455_v44, %v6454_v47  ;;  %v14650_v44 = vld [vmem:[#allocation60_spill] sm:$0xff]  ;;  %v14653_v47 = vld [vmem:[#allocation63_spill] sm:$0xff] }
 0x576   : > { %10083 = vmatprep.mubr.msk.f32.mxu1 %vm250_vm0, %v14643_v30  ;;  %v6842_v30 = vld [vmem:[#allocation9 + $0xe0] sm:$0xff] }
 0x579   : > { %10084 = vmatmul.mubr.msk.f32.gmra.mrb[28].mxu1 %vm250_vm0, %v14644_v18  ;;  %v14646_v18 = vld [vmem:[#allocation56_spill] sm:$0xff] }
 0x57a   : > { %10086 = vmatprep.mubr.msk.f32.mxu1 %vm250_vm0, %v13463_v20  ;;  %v10441_v20 = vpack.c.bf16 %v6843_v14, %v6842_v30  ;;  %v14654_v14 = vld [vmem:[#allocation64_spill] sm:$0xff]  ;;  %v14656_v30 = vld [vmem:[#allocation66_spill] sm:$0xff] }
 0x57d   : > { %10087 = vmatmul.mubr.msk.f32.gmra.mrb[30].mxu1 %vm250_vm0, %v13467_v56 }
 0x57e   : > { %10097 = vmatprep.mubr.msk.f32.mxu1 %vm250_vm0, %v13210_v43  ;;  %v14649_v43 = vld [vmem:[#allocation59_spill] sm:$0xff] }
 0x581   : > { %10098 = vmatmul.mubr.msk.f32.vlgmr.msra.gmra.mrb[0].mxu1 %vm250_vm0, %v13217_v9  ;;  %v14651_v9 = vld [vmem:[#allocation61_spill] sm:$0xff] }
 0x582   : > { %10100 = vmatprep.mubr.msk.f32.mxu1 %vm250_vm0, %v14646_v18  ;;  %10436 = vmatpush3.bf16.msra.mxu1 %v10433_v49  ;;  %v14652_v49 = vld [vmem:[#allocation62_spill] sm:$0xff] }
 0x583   : > { %10438 = vmatprep.subr.bf16.mxu1 %v10437_v37 }
 0x585   : > { %10101 = vmatmul.mubr.msk.f32.gmra.mrb[2].mxu1 %vm250_vm0, %v14647_v17 }
 0x586   : > { %10103 = vmatprep.mubr.msk.f32.mxu1 %vm250_vm0, %v14648_v26  ;;  %10440 = vmatpush3.bf16.msra.mxu1 %v10437_v37  ;;  %v14655_v37 = vld [vmem:[#allocation65_spill] sm:$0xff] }
 0x587   : > { %10442 = vmatprep.subr.bf16.mxu1 %v10441_v20 }
 0x589   : > { %10104 = vmatmul.mubr.msk.f32.gmra.mrb[4].mxu1 %vm250_vm0, %v14649_v43  ;;  %v14657_v43 = vld [vmem:[#allocation67_spill] sm:$0xff] }
 0x58a   : > { %10106 = vmatprep.mubr.msk.f32.mxu1 %vm250_vm0, %v14650_v44  ;;  %v14658_v44 = vld [vmem:[#allocation68_spill] sm:$0xff] }
 0x58d   : > { %10107 = vmatmul.mubr.msk.f32.gmra.mrb[6].mxu1 %vm250_vm0, %v14651_v9  ;;  %v14659_v9 = vld [vmem:[#allocation69_spill] sm:$0xff] }
 0x58e   : > { %10109 = vmatprep.mubr.msk.f32.mxu1 %vm250_vm0, %v14652_v49  ;;  %v14660_v49 = vld [vmem:[#allocation70_spill] sm:$0xff] }
 0x591   : > { %10110 = vmatmul.mubr.msk.f32.gmra.mrb[8].mxu1 %vm250_vm0, %v14653_v47  ;;  %v14661_v47 = vld [vmem:[#allocation71_spill] sm:$0xff] }
 0x592   : > { %10112 = vmatprep.mubr.msk.f32.mxu1 %vm250_vm0, %v14654_v14  ;;  %v14662_v14 = vld [vmem:[#allocation72_spill] sm:$0xff] }
 0x595   : > { %10113 = vmatmul.mubr.msk.f32.gmra.mrb[10].mxu1 %vm250_vm0, %v14655_v37  ;;  %v14663_v37 = vld [vmem:[#allocation73_spill] sm:$0xff] }
 0x596   : > { %10115 = vmatprep.mubr.msk.f32.mxu1 %vm250_vm0, %v14656_v30  ;;  %v14664_v30 = vld [vmem:[#allocation74_spill] sm:$0xff] }
 0x599   : > { %10116 = vmatmul.mubr.msk.f32.gmra.mrb[12].mxu1 %vm250_vm0, %v14657_v43  ;;  %v14665_v43 = vld [vmem:[#allocation75_spill] sm:$0xff] }
 0x59a   : > { %10118 = vmatprep.mubr.msk.f32.mxu1 %vm250_vm0, %v14658_v44  ;;  %v14666_v44 = vld [vmem:[#allocation76_spill] sm:$0xff] }
 0x59d   : > { %10119 = vmatmul.mubr.msk.f32.gmra.mrb[14].mxu1 %vm250_vm0, %v14659_v9  ;;  %v14667_v9 = vld [vmem:[#allocation77_spill] sm:$0xff] }
 0x59e   : > { %10121 = vmatprep.mubr.msk.f32.mxu1 %vm250_vm0, %v14660_v49  ;;  %v14668_v49 = vld [vmem:[#allocation78_spill] sm:$0xff] }
 0x5a1   : > { %10122 = vmatmul.mubr.msk.f32.gmra.mrb[16].mxu1 %vm250_vm0, %v14661_v47  ;;  %v14669_v47 = vld [vmem:[#allocation79_spill] sm:$0xff] }
 0x5a2   : > { %10124 = vmatprep.mubr.msk.f32.mxu1 %vm250_vm0, %v14662_v14  ;;  %v14670_v14 = vld [vmem:[#allocation44_spill] sm:$0xff] }
 0x5a5   : > { %10125 = vmatmul.mubr.msk.f32.gmra.mrb[18].mxu1 %vm250_vm0, %v14663_v37 }
 0x5a6   : > { %10127 = vmatprep.mubr.msk.f32.mxu1 %vm250_vm0, %v14664_v30  ;;  %v14671_v30 = vld [vmem:[#allocation81_spill] sm:$0xff] }
 0x5a9   : > { %10128 = vmatmul.mubr.msk.f32.gmra.mrb[20].mxu1 %vm250_vm0, %v14665_v43 }
 0x5aa   : > { %10130 = vmatprep.mubr.msk.f32.mxu1 %vm250_vm0, %v14666_v44  ;;  %v13531_v44 = vld [vmem:[#allocation3 + $0x182] sm:$0xff] }
 0x5ab   : > { %14672 = vst [vmem:[#allocation56_spill] sm:$0xff] %v13531_v44 }
 0x5ad   : > { %10131 = vmatmul.mubr.msk.f32.gmra.mrb[22].mxu1 %vm250_vm0, %v14667_v9  ;;  %v6845_v9 = vld [vmem:[#allocation9 + $0xf8] sm:$0xff] }
 0x5ae   : > { %10133 = vmatprep.mubr.msk.f32.mxu1 %vm250_vm0, %v14668_v49  ;;  %v13535_v49 = vld [vmem:[#allocation3 + $0x18a] sm:$0xff] }
 0x5b1   : > { %10134 = vmatmul.mubr.msk.f32.gmra.mrb[24].mxu1 %vm250_vm0, %v14669_v47  ;;  %v6844_v47 = vld [vmem:[#allocation9 + $0xf0] sm:$0xff] }
 0x5b2   : > { %10136 = vmatprep.mubr.msk.f32.mxu1 %vm250_vm0, %v14670_v14  ;;  %v7233_v14 = vld [vmem:[#allocation9 + $0x108] sm:$0xff] }
 0x5b5   : > { %10137 = vmatmul.mubr.msk.f32.gmra.mrb[26].mxu1 %vm250_vm0, %v13322_v11  ;;  %v10445_v11 = vpack.c.bf16 %v6845_v9, %v6844_v47 }
 0x5b6   : > { %10139 = vmatprep.mubr.msk.f32.mxu1 %vm250_vm0, %v14671_v30  ;;  %v7232_v30 = vld [vmem:[#allocation9 + $0x100] sm:$0xff] }
 0x5b9   : > { %10140 = vmatmul.mubr.msk.f32.gmra.mrb[28].mxu1 %vm250_vm0, %v13330_v63 }
 0x5ba   : > { %10142 = vmatprep.mubr.msk.f32.mxu1 %vm250_vm0, %v13531_v44  ;;  %v10449_v44 = vpack.c.bf16 %v7233_v14, %v7232_v30 }
 0x5bd   : > { %10143 = vmatmul.mubr.msk.f32.gmra.mrb[30].mxu1 %vm250_vm0, %v13535_v49 }
 0x5be   : > { %10153 = vmatprep.mubr.msk.f32.mxu1 %vm250_vm0, %v13095_v41  ;;  %v6449_v41 = vld [vmem:[#allocation3 + $0x198] sm:$0xff] }
 0x5c1   : > { %10154 = vmatmul.mubr.msk.f32.vlgmr.msra.gmra.mrb[0].mxu1 %vm250_vm0, %v13100_v57  ;;  %v6450_v57 = vld [vmem:[#allocation3 + $0x1a0] sm:$0xff] }
 0x5c2   : > { %10156 = vmatprep.mubr.msk.f32.mxu1 %vm250_vm0, %v13104_v50  ;;  %10444 = vmatpush3.bf16.msra.mxu1 %v10441_v20  ;;  %v7234_v50 = vld [vmem:[#allocation9 + $0x110] sm:$0xff] }
 0x5c3   : > { %10446 = vmatprep.subr.bf16.mxu1 %v10445_v11 }
 0x5c5   : > { %10157 = vmatmul.mubr.msk.f32.gmra.mrb[2].mxu1 %vm250_vm0, %v13108_v39  ;;  %v7235_v39 = vld [vmem:[#allocation9 + $0x118] sm:$0xff] }
 0x5c6   : > { %10159 = vmatprep.mubr.msk.f32.mxu1 %vm250_vm0, %v13112_v55  ;;  %10448 = vmatpush3.bf16.msra.mxu1 %v10445_v11  ;;  %v10453_v55 = vpack.c.bf16 %v7235_v39, %v7234_v50 }
 0x5c7   : > { %10450 = vmatprep.subr.bf16.mxu1 %v10449_v44 }
 0x5c9   : > { %10160 = vmatmul.mubr.msk.f32.gmra.mrb[4].mxu1 %vm250_vm0, %v13116_v15  ;;  %v14692_v15 = vld [vmem:[#allocation68_spill] sm:$0xff] }
 0x5ca   : > { %10162 = vmatprep.mubr.msk.f32.mxu1 %vm250_vm0, %v13120_v38  ;;  %v14693_v38 = vld [vmem:[#allocation69_spill] sm:$0xff] }
 0x5cd   : > { %10163 = vmatmul.mubr.msk.f32.gmra.mrb[6].mxu1 %vm250_vm0, %v13124_v40  ;;  %v14694_v40 = vld [vmem:[#allocation70_spill] sm:$0xff] }
 0x5ce   : > { %10165 = vmatprep.mubr.msk.f32.mxu1 %vm250_vm0, %v13128_v51  ;;  %v14695_v51 = vld [vmem:[#allocation71_spill] sm:$0xff] }
 0x5d1   : > { %10166 = vmatmul.mubr.msk.f32.gmra.mrb[8].mxu1 %vm250_vm0, %v13132_v35  ;;  %v14696_v35 = vld [vmem:[#allocation72_spill] sm:$0xff] }
 0x5d2   : > { %10168 = vmatprep.mubr.msk.f32.mxu1 %vm250_vm0, %v13136_v62  ;;  %v14697_v62 = vld [vmem:[#allocation74_spill] sm:$0xff] }
 0x5d5   : > { %10169 = vmatmul.mubr.msk.f32.gmra.mrb[10].mxu1 %vm250_vm0, %v13140_v61  ;;  %v14698_v61 = vld [vmem:[#allocation76_spill] sm:$0xff] }
 0x5d6   : > { %10171 = vmatprep.mubr.msk.f32.mxu1 %vm250_vm0, %v13144_v24  ;;  %v14699_v24 = vld [vmem:[#allocation77_spill] sm:$0xff] }
 0x5d9   : > { %10172 = vmatmul.mubr.msk.f32.gmra.mrb[12].mxu1 %vm250_vm0, %v13148_v23  ;;  %v14700_v23 = vld [vmem:[#allocation78_spill] sm:$0xff] }
 0x5da   : > { %10174 = vmatprep.mubr.msk.f32.mxu1 %vm250_vm0, %v13152_v32  ;;  %v14701_v32 = vld [vmem:[#allocation79_spill] sm:$0xff] }
 0x5dd   : > { %10175 = vmatmul.mubr.msk.f32.gmra.mrb[14].mxu1 %vm250_vm0, %v13156_v33  ;;  %v14702_v33 = vld [vmem:[#allocation44_spill] sm:$0xff] }
 0x5de   : > { %10177 = vmatprep.mubr.msk.f32.mxu1 %vm250_vm0, %v13160_v34  ;;  %v14703_v34 = vld [vmem:[#allocation80_spill] sm:$0xff] }
 0x5e1   : > { %10178 = vmatmul.mubr.msk.f32.gmra.mrb[16].mxu1 %vm250_vm0, %v13164_v36  ;;  %v14704_v36 = vld [vmem:[#allocation81_spill] sm:$0xff] }
 0x5e2   : > { %10180 = vmatprep.mubr.msk.f32.mxu1 %vm250_vm0, %v13168_v31  ;;  %v14705_v31 = vld [vmem:[#allocation56_spill] sm:$0xff] }
 0x5e5   : > { %10181 = vmatmul.mubr.msk.f32.gmra.mrb[18].mxu1 %vm250_vm0, %v13172_v45  ;;  %v7229_v45 = vld [vmem:[#allocation3 + $0x19a] sm:$0xff] }
 0x5e6   : > { %10183 = vmatprep.mubr.msk.f32.mxu1 %vm250_vm0, %v13176_v46  ;;  %v7230_v46 = vld [vmem:[#allocation3 + $0x1a2] sm:$0xff] }
 0x5e9   : > { %10184 = vmatmul.mubr.msk.f32.gmra.mrb[20].mxu1 %vm250_vm0, %v13180_v52 }
 0x5ea   : > { %10186 = vmatprep.mubr.msk.f32.mxu1 %vm250_vm0, %v13184_v53 }
 0x5ed   : > { %10187 = vmatmul.mubr.msk.f32.gmra.mrb[22].mxu1 %vm250_vm0, %v13188_v29 }
 0x5ee   : > { %10189 = vmatprep.mubr.msk.f32.mxu1 %vm250_vm0, %v13192_v13 }
 0x5f1   : > { %10190 = vmatmul.mubr.msk.f32.gmra.mrb[24].mxu1 %vm250_vm0, %v13196_v27 }
 0x5f2   : > { %10192 = vmatprep.mubr.msk.f32.mxu1 %vm250_vm0, %v13200_v42 }
 0x5f5   : > { %10193 = vmatmul.mubr.msk.f32.gmra.mrb[26].mxu1 %vm250_vm0, %v13204_v54 }
 0x5f6   : > { %10195 = vmatprep.mubr.msk.f32.mxu1 %vm250_vm0, %v13395_v48 }
 0x5f9   : > { %10196 = vmatmul.mubr.msk.f32.gmra.mrb[28].mxu1 %vm250_vm0, %v13399_v10 }
 0x5fa   : > { %10198 = vmatprep.mubr.msk.f32.mxu1 %vm250_vm0, %v6449_v41 }
 0x5fd   : > { %10199 = vmatmul.mubr.msk.f32.gmra.mrb[30].mxu1 %vm250_vm0, %v6450_v57 }
 0x5fe   : > { %10209 = vmatprep.mubr.msk.f32.mxu1 %vm250_vm0, %v12970_v58  ;;  %v14673_v58 = vld [vmem:[#allocation45_spill] sm:$0xff] }
 0x601   : > { %10210 = vmatmul.mubr.msk.f32.vlgmr.msra.gmra.mrb[0].mxu1 %vm250_vm0, %v12974_v59  ;;  %v14674_v59 = vld [vmem:[#allocation46_spill] sm:$0xff] }
 0x602   : > { %10212 = vmatprep.mubr.msk.f32.mxu1 %vm250_vm0, %v12978_v7  ;;  %10452 = vmatpush3.bf16.msra.mxu1 %v10449_v44  ;;  %v14675_v7 = vld [vmem:[#allocation47_spill] sm:$0xff] }
 0x603   : > { %10454 = vmatprep.subr.bf16.mxu1 %v10453_v55 }
 0x605   : > { %10213 = vmatmul.mubr.msk.f32.gmra.mrb[2].mxu1 %vm250_vm0, %v12982_v0  ;;  %v14676_v0 = vld [vmem:[#allocation48_spill] sm:$0xff] }
 0x606   : > { %10215 = vmatprep.mubr.msk.f32.mxu1 %vm250_vm0, %v12986_v1  ;;  %10456 = vmatpush3.bf16.msra.mxu1 %v10453_v55  ;;  %v14677_v1 = vld [vmem:[#allocation49_spill] sm:$0xff] }
 0x609   : > { %10216 = vmatmul.mubr.msk.f32.gmra.mrb[4].mxu1 %vm250_vm0, %v12990_v2  ;;  %v14678_v2 = vld [vmem:[#allocation50_spill] sm:$0xff] }
 0x60a   : > { %10218 = vmatprep.mubr.msk.f32.mxu1 %vm250_vm0, %v12994_v3  ;;  %v14679_v3 = vld [vmem:[#allocation51_spill] sm:$0xff] }
 0x60d   : > { %10219 = vmatmul.mubr.msk.f32.gmra.mrb[6].mxu1 %vm250_vm0, %v12998_v28  ;;  %v14680_v28 = vld [vmem:[#allocation54_spill] sm:$0xff] }
 0x60e   : > { %10221 = vmatprep.mubr.msk.f32.mxu1 %vm250_vm0, %v13002_v5  ;;  %v14681_v5 = vld [vmem:[#allocation55_spill] sm:$0xff] }
 0x611   : > { %10222 = vmatmul.mubr.msk.f32.gmra.mrb[8].mxu1 %vm250_vm0, %v13006_v60  ;;  %v14682_v60 = vld [vmem:[#allocation82_spill] sm:$0xff] }
 0x612   : > { %10224 = vmatprep.mubr.msk.f32.mxu1 %vm250_vm0, %v13010_v16  ;;  %v6839_v16 = vld [vmem:[#allocation3 + $0x199] sm:$0xff] }
 0x615   : > { %10225 = vmatmul.mubr.msk.f32.gmra.mrb[10].mxu1 %vm250_vm0, %v13014_v19  ;;  %v6840_v19 = vld [vmem:[#allocation3 + $0x1a1] sm:$0xff] }
 0x616   : > { %10227 = vmatprep.mubr.msk.f32.mxu1 %vm250_vm0, %v13018_v22  ;;  %v14683_v22 = vld [vmem:[#allocation59_spill] sm:$0xff] }
 0x619   : > { %10228 = vmatmul.mubr.msk.f32.gmra.mrb[12].mxu1 %vm250_vm0, %v13022_v12  ;;  %v14684_v12 = vld [vmem:[#allocation60_spill] sm:$0xff] }
 0x61a   : > { %10230 = vmatprep.mubr.msk.f32.mxu1 %vm250_vm0, %v13026_v25  ;;  %v14685_v25 = vld [vmem:[#allocation61_spill] sm:$0xff] }
 0x61d   : > { %10231 = vmatmul.mubr.msk.f32.gmra.mrb[14].mxu1 %vm250_vm0, %v13030_v8  ;;  %v14686_v8 = vld [vmem:[#allocation62_spill] sm:$0xff] }
 0x61e   : > { %10233 = vmatprep.mubr.msk.f32.mxu1 %vm250_vm0, %v13034_v4  ;;  %v14687_v4 = vld [vmem:[#allocation63_spill] sm:$0xff] }
 0x621   : > { %10234 = vmatmul.mubr.msk.f32.gmra.mrb[16].mxu1 %vm250_vm0, %v13038_v6  ;;  %v14688_v6 = vld [vmem:[#allocation64_spill] sm:$0xff] }
 0x622   : > { %10236 = vmatprep.mubr.msk.f32.mxu1 %vm250_vm0, %v13042_v21  ;;  %v14689_v21 = vld [vmem:[#allocation65_spill] sm:$0xff] }
 0x625   : > { %10237 = vmatmul.mubr.msk.f32.gmra.mrb[18].mxu1 %vm250_vm0, %v14673_v58 }
 0x626   : > { %10239 = vmatprep.mubr.msk.f32.mxu1 %vm250_vm0, %v14674_v59 }
 0x629   : > { %10240 = vmatmul.mubr.msk.f32.gmra.mrb[20].mxu1 %vm250_vm0, %v14675_v7 }
 0x62a   : > { %10242 = vmatprep.mubr.msk.f32.mxu1 %vm250_vm0, %v14676_v0 }
 0x62d   : > { %10243 = vmatmul.mubr.msk.f32.gmra.mrb[22].mxu1 %vm250_vm0, %v14677_v1 }
 0x62e   : > { %10245 = vmatprep.mubr.msk.f32.mxu1 %vm250_vm0, %v14678_v2 }
 0x631   : > { %10246 = vmatmul.mubr.msk.f32.gmra.mrb[24].mxu1 %vm250_vm0, %v14679_v3 }
 0x632   : > { %10248 = vmatprep.mubr.msk.f32.mxu1 %vm250_vm0, %v14680_v28 }
 0x635   : > { %10249 = vmatmul.mubr.msk.f32.gmra.mrb[26].mxu1 %vm250_vm0, %v14681_v5 }
 0x636   : > { %10251 = vmatprep.mubr.msk.f32.mxu1 %vm250_vm0, %v14682_v60 }
 0x639   : > { %10252 = vmatmul.mubr.msk.f32.gmra.mrb[28].mxu1 %vm250_vm0, %v13467_v56 }
 0x63a   : > { %10254 = vmatprep.mubr.msk.f32.mxu1 %vm250_vm0, %v6839_v16 }
 0x63d   : > { %10255 = vmatmul.mubr.msk.f32.gmra.mrb[30].mxu1 %vm250_vm0, %v6840_v19 }
 0x63e   : > { %10265 = vmatprep.mubr.msk.f32.mxu1 %vm250_vm0, %v14646_v18 }
 0x641   : > { %10266 = vmatmul.mubr.msk.f32.vlgmr.msra.gmra.mrb[0].mxu1 %vm250_vm0, %v14647_v17  ;;  %v14691_v17 = vld [vmem:[#allocation67_spill] sm:$0xff] }
 0x642   : > { %10268 = vmatprep.mubr.msk.f32.mxu1 %vm250_vm0, %v14648_v26  ;;  %v14690_v26 = vld [vmem:[#allocation66_spill] sm:$0xff] }
 0x645   : > { %10269 = vmatmul.mubr.msk.f32.gmra.mrb[2].mxu1 %vm250_vm0, %v14683_v22 }
 0x646   : > { %10271 = vmatprep.mubr.msk.f32.mxu1 %vm250_vm0, %v14684_v12 }
 0x649   : > { %10272 = vmatmul.mubr.msk.f32.gmra.mrb[4].mxu1 %vm250_vm0, %v14685_v25 }
 0x64a   : > { %10274 = vmatprep.mubr.msk.f32.mxu1 %vm250_vm0, %v14686_v8 }
 0x64d   : > { %10275 = vmatmul.mubr.msk.f32.gmra.mrb[6].mxu1 %vm250_vm0, %v14687_v4 }
 0x64e   : > { %10277 = vmatprep.mubr.msk.f32.mxu1 %vm250_vm0, %v14688_v6 }
 0x651   : > { %10278 = vmatmul.mubr.msk.f32.gmra.mrb[8].mxu1 %vm250_vm0, %v14689_v21 }
 0x652   : > { %10280 = vmatprep.mubr.msk.f32.mxu1 %vm250_vm0, %v14690_v26 }
 0x655   : > { %10281 = vmatmul.mubr.msk.f32.gmra.mrb[10].mxu1 %vm250_vm0, %v14691_v17 }
 0x656   : > { %10283 = vmatprep.mubr.msk.f32.mxu1 %vm250_vm0, %v14692_v15 }
 0x659   : > { %10284 = vmatmul.mubr.msk.f32.gmra.mrb[12].mxu1 %vm250_vm0, %v14693_v38 }
 0x65a   : > { %10286 = vmatprep.mubr.msk.f32.mxu1 %vm250_vm0, %v14694_v40 }
 0x65d   : > { %10287 = vmatmul.mubr.msk.f32.gmra.mrb[14].mxu1 %vm250_vm0, %v14695_v51 }
 0x65e   : > { %10289 = vmatprep.mubr.msk.f32.mxu1 %vm250_vm0, %v14696_v35 }
 0x661   : > { %10290 = vmatmul.mubr.msk.f32.gmra.mrb[16].mxu1 %vm250_vm0, %v14663_v37 }
 0x662   : > { %10292 = vmatprep.mubr.msk.f32.mxu1 %vm250_vm0, %v14697_v62 }
 0x665   : > { %10293 = vmatmul.mubr.msk.f32.gmra.mrb[18].mxu1 %vm250_vm0, %v14665_v43 }
 0x666   : > { %10295 = vmatprep.mubr.msk.f32.mxu1 %vm250_vm0, %v14698_v61 }
 0x669   : > { %10296 = vmatmul.mubr.msk.f32.gmra.mrb[20].mxu1 %vm250_vm0, %v14699_v24 }
 0x66a   : > { %10298 = vmatprep.mubr.msk.f32.mxu1 %vm250_vm0, %v14700_v23 }
 0x66d   : > { %10299 = vmatmul.mubr.msk.f32.gmra.mrb[22].mxu1 %vm250_vm0, %v14701_v32 }
 0x66e   : > { %10301 = vmatprep.mubr.msk.f32.mxu1 %vm250_vm0, %v14702_v33 }
 0x671   : > { %10302 = vmatmul.mubr.msk.f32.gmra.mrb[24].mxu1 %vm250_vm0, %v14703_v34 }
 0x672   : > { %10304 = vmatprep.mubr.msk.f32.mxu1 %vm250_vm0, %v14704_v36 }
 0x675   : > { %10305 = vmatmul.mubr.msk.f32.gmra.mrb[26].mxu1 %vm250_vm0, %v13330_v63 }
 0x676   : > { %10307 = vmatprep.mubr.msk.f32.mxu1 %vm250_vm0, %v14705_v31 }
 0x679   : > { %10308 = vmatmul.mubr.msk.f32.gmra.mrb[28].mxu1 %vm250_vm0, %v13535_v49 }
 0x67a   : > { %10310 = vmatprep.mubr.msk.f32.mxu1 %vm250_vm0, %v7229_v45 }
 0x67d   : > { %10311 = vmatmul.mubr.msk.f32.gmra.mrb[30].mxu1 %vm250_vm0, %v7230_v46 }
 0x714   : > { %v13725_v52 = vpop.f32.mrb[0].mxu1 }
 0x715   : > { %v7590_v53 = vsel %vm250_vm0, %v13725_v52, 0.0  ;;  %v13729_v29 = vpop.f32.mrb[1].mxu1 }
 0x716   : > { %v7589_v13 = vsel %vm250_vm0, %v13729_v29, 0.0 }
 0x717   : > { %v7591_v27 = vadd.f32 %v7590_v53, %v7589_v13 }
 0x718   : > { %v13733_v42 = vpop.f32.mrb[2].mxu1 }
 0x719   : > { %v13735_v54 = vpop.f32.mrb[3].mxu1  ;;  %v7594_v48 = vsel %vm250_vm0, %v13733_v42, 0.0 }
 0x71a   : > { %v7592_v11 = vsel %vm250_vm0, %v13735_v54, 0.0 }
 0x71b   : > { %v7593_v63 = vadd.f32 %v7592_v11, %v7591_v27 }
 0x71c   : > { %v13741_v10 = vpop.f32.mrb[4].mxu1 }
 0x71d   : > { %v13743_v56 = vpop.f32.mrb[5].mxu1  ;;  %v7595_v18 = vadd.f32 %v7594_v48, %v7593_v63  ;;  %v7598_v44 = vsel %vm250_vm0, %v13741_v10, 0.0 }
 0x71e   : > { %v7596_v20 = vsel %vm250_vm0, %v13743_v56, 0.0 }
 0x71f   : > { %v7597_v43 = vadd.f32 %v7596_v20, %v7595_v18 }
 0x720   : > { %v13749_v9 = vpop.f32.mrb[6].mxu1 }
 0x721   : > { %v13751_v49 = vpop.f32.mrb[7].mxu1  ;;  %v7599_v47 = vadd.f32 %v7598_v44, %v7597_v43  ;;  %v7602_v30 = vsel %vm250_vm0, %v13749_v9, 0.0 }
 0x722   : > { %v7600_v14 = vsel %vm250_vm0, %v13751_v49, 0.0 }
 0x723   : > { %v7601_v37 = vadd.f32 %v7600_v14, %v7599_v47 }
 0x724   : > { %v13757_v41 = vpop.f32.mrb[8].mxu1 }
 0x725   : > { %v13759_v57 = vpop.f32.mrb[9].mxu1  ;;  %v7603_v50 = vadd.f32 %v7602_v30, %v7601_v37  ;;  %v7606_v58 = vsel %vm250_vm0, %v13757_v41, 0.0 }
 0x726   : > { %v7604_v39 = vsel %vm250_vm0, %v13759_v57, 0.0 }
 0x727   : > { %v7605_v55 = vadd.f32 %v7604_v39, %v7603_v50 }
 0x728   : > { %v13765_v59 = vpop.f32.mrb[10].mxu1 }
 0x729   : > { %v13767_v7 = vpop.f32.mrb[11].mxu1  ;;  %v7607_v0 = vadd.f32 %v7606_v58, %v7605_v55  ;;  %v7610_v3 = vsel %vm250_vm0, %v13765_v59, 0.0 }
 0x72a   : > { %v7608_v1 = vsel %vm250_vm0, %v13767_v7, 0.0 }
 0x72b   : > { %v7609_v2 = vadd.f32 %v7608_v1, %v7607_v0 }
 0x72c   : > { %v13773_v28 = vpop.f32.mrb[12].mxu1 }
 0x72d   : > { %v13775_v5 = vpop.f32.mrb[13].mxu1  ;;  %v7611_v60 = vadd.f32 %v7610_v3, %v7609_v2  ;;  %v7614_v22 = vsel %vm250_vm0, %v13773_v28, 0.0 }
 0x72e   : > { %v7612_v16 = vsel %vm250_vm0, %v13775_v5, 0.0 }
 0x72f   : > { %v7613_v19 = vadd.f32 %v7612_v16, %v7611_v60 }
 0x730   : > { %v13781_v12 = vpop.f32.mrb[14].mxu1 }
 0x731   : > { %v13783_v25 = vpop.f32.mrb[15].mxu1  ;;  %v7615_v8 = vadd.f32 %v7614_v22, %v7613_v19  ;;  %v7618_v21 = vsel %vm250_vm0, %v13781_v12, 0.0 }
 0x732   : > { %v7616_v4 = vsel %vm250_vm0, %v13783_v25, 0.0 }
 0x733   : > { %v7617_v6 = vadd.f32 %v7616_v4, %v7615_v8 }
 0x734   : > { %v13789_v26 = vpop.f32.mrb[16].mxu1 }
 0x735   : > { %v13791_v17 = vpop.f32.mrb[17].mxu1  ;;  %v7619_v15 = vadd.f32 %v7618_v21, %v7617_v6  ;;  %v7622_v51 = vsel %vm250_vm0, %v13789_v26, 0.0 }
 0x736   : > { %v7620_v38 = vsel %vm250_vm0, %v13791_v17, 0.0 }
 0x737   : > { %v7621_v40 = vadd.f32 %v7620_v38, %v7619_v15 }
 0x738   : > { %v13797_v35 = vpop.f32.mrb[18].mxu1 }
 0x739   : > { %v13799_v62 = vpop.f32.mrb[19].mxu1  ;;  %v7623_v61 = vadd.f32 %v7622_v51, %v7621_v40  ;;  %v7626_v32 = vsel %vm250_vm0, %v13797_v35, 0.0 }
 0x73a   : > { %v7624_v24 = vsel %vm250_vm0, %v13799_v62, 0.0 }
 0x73b   : > { %v7625_v23 = vadd.f32 %v7624_v24, %v7623_v61 }
 0x73c   : > { %v13805_v33 = vpop.f32.mrb[20].mxu1 }
 0x73d   : > { %v13807_v34 = vpop.f32.mrb[21].mxu1  ;;  %v7627_v36 = vadd.f32 %v7626_v32, %v7625_v23  ;;  %v7630_v46 = vsel %vm250_vm0, %v13805_v33, 0.0 }
 0x73e   : > { %v7628_v31 = vsel %vm250_vm0, %v13807_v34, 0.0 }
 0x73f   : > { %v7629_v45 = vadd.f32 %v7628_v31, %v7627_v36 }
 0x740   : > { %v10300_v53 = vpop.f32.mrb[22].mxu1 }
 0x741   : > { %v7508_v13 = vpop.f32.mrb[23].mxu1  ;;  %v7631_v27 = vadd.f32 %v7630_v46, %v7629_v45  ;;  %v7634_v48 = vsel %vm250_vm0, %v10300_v53, 0.0 }
 0x742   : > { %v7632_v11 = vsel %vm250_vm0, %v7508_v13, 0.0 }
 0x743   : > { %v7633_v63 = vadd.f32 %v7632_v11, %v7631_v27 }
 0x744   : > { %v10303_v18 = vpop.f32.mrb[24].mxu1 }
 0x745   : > { %v7518_v20 = vpop.f32.mrb[25].mxu1  ;;  %v7635_v43 = vadd.f32 %v7634_v48, %v7633_v63  ;;  %v7638_v14 = vsel %vm250_vm0, %v10303_v18, 0.0 }
 0x746   : > { %v7636_v44 = vsel %vm250_vm0, %v7518_v20, 0.0 }
 0x747   : > { %v7637_v47 = vadd.f32 %v7636_v44, %v7635_v43 }
 0x748   : > { %v10306_v37 = vpop.f32.mrb[26].mxu1 }
 0x749   : > { %v7528_v30 = vpop.f32.mrb[27].mxu1  ;;  %v7639_v50 = vadd.f32 %v7638_v14, %v7637_v47  ;;  %v7642_v58 = vsel %vm250_vm0, %v10306_v37, 0.0 }
 0x74a   : > { %v7640_v39 = vsel %vm250_vm0, %v7528_v30, 0.0 }
 0x74b   : > { %v7641_v55 = vadd.f32 %v7640_v39, %v7639_v50 }
 0x74c   : > { %v10309_v0 = vpop.f32.mrb[28].mxu1 }
 0x74d   : > { %v7538_v1 = vpop.f32.mrb[29].mxu1  ;;  %v7643_v2 = vadd.f32 %v7642_v58, %v7641_v55  ;;  %v7646_v16 = vsel %vm250_vm0, %v10309_v0, 0.0 }
 0x74e   : > { %v7644_v3 = vsel %vm250_vm0, %v7538_v1, 0.0 }
 0x74f   : > { %v7645_v60 = vadd.f32 %v7644_v3, %v7643_v2 }
 0x750   : > { %v10312_v19 = vpop.f32.mrb[30].mxu1 }
 0x751   : > { %v7548_v22 = vpop.f32.mrb[31].mxu1  ;;  %v7647_v8 = vadd.f32 %v7646_v16, %v7645_v60  ;;  %v7650_v21 = vsel %vm250_vm0, %v10312_v19, 0.0 }
 0x752   : > { %v7648_v4 = vsel %vm250_vm0, %v7548_v22, 0.0 }
 0x753   : > { %v7649_v6 = vadd.f32 %v7648_v4, %v7647_v8 }
 0x755   : > { %v7651_v15 = vadd.f32 %v7650_v21, %v7649_v6 }
 0x757   : > { %v7652_v38 = vrot.slane %v7651_v15, 4 }
 0x759   : > { %v7653_v40 = vadd.f32 %v7652_v38, %v7651_v15 }
 0x75b   : > { %v7654_v51 = vrot.slane %v7653_v40, 2 }
 0x75d   : > { %v7655_v61 = vadd.f32 %v7654_v51, %v7653_v40 }
 0x75f   : > { %v7656_v24 = vrot.slane %v7655_v61, 1 }
 0x761   : > { %v7657_v23 = vadd.f32 %v7656_v24, %v7655_v61 }
 0x763   : > { %v7658_v32 = vmul.f32 0.00390625, %v7657_v23 }
 0x765   : > { %v13824_v36 = vsub.f32 %v13729_v29, %v7658_v32  ;;  %v13827_v31 = vsub.f32 %v13725_v52, %v7658_v32  ;;  %v13830_v45 = vsub.f32 %v13735_v54, %v7658_v32  ;;  %v13833_v46 = vsub.f32 %v13733_v42, %v7658_v32 }
 0x766   : > { %v13836_v27 = vsub.f32 %v13743_v56, %v7658_v32  ;;  %v13839_v11 = vsub.f32 %v13741_v10, %v7658_v32  ;;  %v13842_v63 = vsub.f32 %v13751_v49, %v7658_v32  ;;  %v13845_v29 = vsub.f32 %v13749_v9, %v7658_v32 }
 0x767   : > { %v13848_v52 = vsub.f32 %v13759_v57, %v7658_v32  ;;  %v13851_v54 = vsub.f32 %v13757_v41, %v7658_v32  ;;  %v13854_v42 = vsub.f32 %v13767_v7, %v7658_v32  ;;  %v13857_v56 = vsub.f32 %v13765_v59, %v7658_v32 }
 0x768   : > { %v13860_v10 = vsub.f32 %v13775_v5, %v7658_v32  ;;  %v13863_v49 = vsub.f32 %v13773_v28, %v7658_v32  ;;  %v13866_v9 = vsub.f32 %v13783_v25, %v7658_v32  ;;  %v13869_v57 = vsub.f32 %v13781_v12, %v7658_v32 }
 0x769   : > { %v13872_v41 = vsub.f32 %v13791_v17, %v7658_v32  ;;  %v13875_v7 = vsub.f32 %v13789_v26, %v7658_v32  ;;  %v13878_v59 = vsub.f32 %v13799_v62, %v7658_v32  ;;  %v13881_v5 = vsub.f32 %v13797_v35, %v7658_v32 }
 0x76a   : > { %v13884_v28 = vsub.f32 %v13807_v34, %v7658_v32  ;;  %v13887_v25 = vsub.f32 %v13805_v33, %v7658_v32  ;;  %v13889_v12 = vsub.f32 %v7508_v13, %v7658_v32  ;;  %v13891_v48 = vsub.f32 %v10300_v53, %v7658_v32 }
 0x76b   : > { %v13893_v17 = vsub.f32 %v7518_v20, %v7658_v32  ;;  %v13895_v26 = vsub.f32 %v10303_v18, %v7658_v32  ;;  %v13897_v43 = vsub.f32 %v7528_v30, %v7658_v32  ;;  %v13899_v62 = vsub.f32 %v10306_v37, %v7658_v32 }
 0x76c   : > { %v13901_v35 = vsub.f32 %v7538_v1, %v7658_v32  ;;  %v13903_v44 = vsub.f32 %v10309_v0, %v7658_v32  ;;  %v13905_v34 = vsub.f32 %v7548_v22, %v7658_v32  ;;  %v13907_v33 = vsub.f32 %v10312_v19, %v7658_v32 }
 0x76d   : > { %v7691_v53 = vmul.f32 %v13824_v36, %v13824_v36  ;;  %v7692_v13 = vmul.f32 %v13827_v31, %v13827_v31  ;;  %v7693_v18 = vmul.f32 %v13830_v45, %v13830_v45  ;;  %v7694_v20 = vmul.f32 %v13833_v46, %v13833_v46 }
 0x76e   : > { %v7695_v30 = vmul.f32 %v13836_v27, %v13836_v27  ;;  %v7696_v55 = vmul.f32 %v13839_v11, %v13839_v11  ;;  %v7697_v1 = vmul.f32 %v13842_v63, %v13842_v63  ;;  %v7698_v60 = vmul.f32 %v13845_v29, %v13845_v29 }
 0x76f   : > { %v7723_v47 = vsel %vm250_vm0, %v7691_v53, 0.0  ;;  %v7724_v14 = vsel %vm250_vm0, %v7692_v13, 0.0  ;;  %v7726_v50 = vsel %vm250_vm0, %v7693_v18, 0.0  ;;  %v7728_v58 = vsel %vm250_vm0, %v7694_v20, 0.0 }
 0x770   : > { %v7725_v37 = vadd.f32 %v7724_v14, %v7723_v47  ;;  %v7730_v2 = vsel %vm250_vm0, %v7695_v30, 0.0  ;;  %v7732_v16 = vsel %vm250_vm0, %v7696_v55, 0.0  ;;  %v7699_v22 = vmul.f32 %v13848_v52, %v13848_v52 }
 0x771   : > { %v7734_v8 = vsel %vm250_vm0, %v7697_v1, 0.0  ;;  %v7700_v6 = vmul.f32 %v13851_v54, %v13851_v54  ;;  %v7736_v21 = vsel %vm250_vm0, %v7698_v60, 0.0  ;;  %v7701_v38 = vmul.f32 %v13854_v42, %v13854_v42 }
 0x772   : > { %v7727_v39 = vadd.f32 %v7726_v50, %v7725_v37  ;;  %v7738_v40 = vsel %vm250_vm0, %v7699_v22, 0.0  ;;  %v7702_v61 = vmul.f32 %v13857_v56, %v13857_v56  ;;  %v7703_v32 = vmul.f32 %v13860_v10, %v13860_v10 }
 0x773   : > { %v7740_v24 = vsel %vm250_vm0, %v7700_v6, 0.0  ;;  %v7742_v53 = vsel %vm250_vm0, %v7701_v38, 0.0  ;;  %v7704_v18 = vmul.f32 %v13863_v49, %v13863_v49  ;;  %v7705_v14 = vmul.f32 %v13866_v9, %v13866_v9 }
 0x774   : > { %v7729_v0 = vadd.f32 %v7728_v58, %v7727_v39  ;;  %v7744_v20 = vsel %vm250_vm0, %v7702_v61, 0.0  ;;  %v7746_v37 = vsel %vm250_vm0, %v7703_v32, 0.0  ;;  %v7706_v50 = vmul.f32 %v13869_v57, %v13869_v57 }
 0x775   : > { %v7748_v39 = vsel %vm250_vm0, %v7704_v18, 0.0  ;;  %v7707_v58 = vmul.f32 %v13872_v41, %v13872_v41 }
 0x776   : > { %v7731_v3 = vadd.f32 %v7730_v2, %v7729_v0  ;;  %v7750_v0 = vsel %vm250_vm0, %v7705_v14, 0.0  ;;  %v7708_v2 = vmul.f32 %v13875_v7, %v13875_v7 }
 0x778   : > { %v7733_v19 = vadd.f32 %v7732_v16, %v7731_v3  ;;  %v7752_v3 = vsel %vm250_vm0, %v7706_v50, 0.0  ;;  %v7709_v16 = vmul.f32 %v13878_v59, %v13878_v59 }
 0x77a   : > { %v7735_v4 = vadd.f32 %v7734_v8, %v7733_v19  ;;  %v7754_v19 = vsel %vm250_vm0, %v7707_v58, 0.0  ;;  %v7710_v8 = vmul.f32 %v13881_v5, %v13881_v5 }
 0x77c   : > { %v7737_v15 = vadd.f32 %v7736_v21, %v7735_v4  ;;  %v7756_v4 = vsel %vm250_vm0, %v7708_v2, 0.0  ;;  %v7711_v21 = vmul.f32 %v13884_v28, %v13884_v28 }
 0x77e   : > { %v7739_v51 = vadd.f32 %v7738_v40, %v7737_v15  ;;  %v7758_v15 = vsel %vm250_vm0, %v7709_v16, 0.0  ;;  %v7712_v40 = vmul.f32 %v13887_v25, %v13887_v25 }
 0x780   : > { %v7741_v23 = vadd.f32 %v7740_v24, %v7739_v51  ;;  %v7760_v51 = vsel %vm250_vm0, %v7710_v8, 0.0  ;;  %v7713_v24 = vmul.f32 %v13889_v12, %v13889_v12 }
 0x782   : > { %v7743_v13 = vadd.f32 %v7742_v53, %v7741_v23  ;;  %v7762_v23 = vsel %vm250_vm0, %v7711_v21, 0.0  ;;  %v7714_v53 = vmul.f32 %v13891_v48, %v13891_v48 }
 0x784   : > { %v7745_v47 = vadd.f32 %v7744_v20, %v7743_v13  ;;  %v7764_v13 = vsel %vm250_vm0, %v7712_v40, 0.0  ;;  %v7715_v20 = vmul.f32 %v13893_v17, %v13893_v17 }
 0x786   : > { %v7747_v30 = vadd.f32 %v7746_v37, %v7745_v47  ;;  %v7766_v47 = vsel %vm250_vm0, %v7713_v24, 0.0  ;;  %v7716_v37 = vmul.f32 %v13895_v26, %v13895_v26 }
 0x788   : > { %v7749_v55 = vadd.f32 %v7748_v39, %v7747_v30  ;;  %v7768_v30 = vsel %vm250_vm0, %v7714_v53, 0.0  ;;  %v7717_v39 = vmul.f32 %v13897_v43, %v13897_v43 }
 0x78a   : > { %v7751_v1 = vadd.f32 %v7750_v0, %v7749_v55  ;;  %v7770_v55 = vsel %vm250_vm0, %v7715_v20, 0.0  ;;  %v7718_v0 = vmul.f32 %v13899_v62, %v13899_v62 }
 0x78c   : > { %v7753_v60 = vadd.f32 %v7752_v3, %v7751_v1  ;;  %v7772_v1 = vsel %vm250_vm0, %v7716_v37, 0.0  ;;  %v7719_v3 = vmul.f32 %v13901_v35, %v13901_v35 }
 0x78e   : > { %v7755_v22 = vadd.f32 %v7754_v19, %v7753_v60  ;;  %v7774_v60 = vsel %vm250_vm0, %v7717_v39, 0.0  ;;  %v7720_v19 = vmul.f32 %v13903_v44, %v13903_v44 }
 0x790   : > { %v7757_v6 = vadd.f32 %v7756_v4, %v7755_v22  ;;  %v7776_v22 = vsel %vm250_vm0, %v7718_v0, 0.0  ;;  %v7721_v4 = vmul.f32 %v13905_v34, %v13905_v34 }
 0x792   : > { %v7759_v38 = vadd.f32 %v7758_v15, %v7757_v6  ;;  %v7778_v6 = vsel %vm250_vm0, %v7719_v3, 0.0  ;;  %v7722_v15 = vmul.f32 %v13907_v33, %v13907_v33 }
 0x794   : > { %v7761_v61 = vadd.f32 %v7760_v51, %v7759_v38  ;;  %v7780_v38 = vsel %vm250_vm0, %v7720_v19, 0.0  ;;  %v7782_v51 = vsel %vm250_vm0, %v7721_v4, 0.0  ;;  %v7784_v24 = vsel %vm250_vm0, %v7722_v15, 0.0 }
 0x796   : > { %v7763_v32 = vadd.f32 %v7762_v23, %v7761_v61 }
 0x798   : > { %v7765_v18 = vadd.f32 %v7764_v13, %v7763_v32 }
 0x79a   : > { %v7767_v14 = vadd.f32 %v7766_v47, %v7765_v18 }
 0x79c   : > { %v7769_v50 = vadd.f32 %v7768_v30, %v7767_v14 }
 0x79e   : > { %v7771_v58 = vadd.f32 %v7770_v55, %v7769_v50 }
 0x7a0   : > { %v7773_v2 = vadd.f32 %v7772_v1, %v7771_v58 }
 0x7a2   : > { %v7775_v16 = vadd.f32 %v7774_v60, %v7773_v2 }
 0x7a4   : > { %v7777_v8 = vadd.f32 %v7776_v22, %v7775_v16 }
 0x7a6   : > { %v7779_v21 = vadd.f32 %v7778_v6, %v7777_v8 }
 0x7a8   : > { %v7781_v40 = vadd.f32 %v7780_v38, %v7779_v21 }
 0x7aa   : > { %v7783_v61 = vadd.f32 %v7782_v51, %v7781_v40 }
 0x7ac   : > { %v7785_v23 = vadd.f32 %v7784_v24, %v7783_v61 }
 0x7ae   : > { %v7786_v32 = vrot.slane %v7785_v23, 4 }
 0x7b0   : > { %v7787_v53 = vadd.f32 %v7786_v32, %v7785_v23 }
 0x7b2   : > { %v7788_v13 = vrot.slane %v7787_v53, 2 }
 0x7b4   : > { %v7789_v18 = vadd.f32 %v7788_v13, %v7787_v53 }
 0x7b6   : > { %v7790_v20 = vrot.slane %v7789_v18, 1 }
 0x7b8   : > { %v7791_v47 = vadd.f32 %v7790_v20, %v7789_v18 }
 0x7ba   : > { %v7792_v14 = vmul.f32 0.00390625, %v7791_v47 }
 0x7bc   : > { %v7793_v37 = vadd.f32 1e-05, %v7792_v14 }
 0x7be   : > { %11043 = vrsqrt.f32 %v7793_v37 }
 0x7c8   : > { %v11044_v30 = vpop.eup %11043 }
 0x7c9   : > { %v7825_v50 = vmul.f32 %v11044_v30, %v13905_v34  ;;  %v14007_v39 = vmul.f32 %v11044_v30, %v13824_v36  ;;  %v14010_v55 = vmul.f32 %v11044_v30, %v13827_v31  ;;  %v14013_v58 = vmul.f32 %v11044_v30, %v13830_v45 }
 0x7ca   : > { %v14016_v0 = vmul.f32 %v11044_v30, %v13833_v46  ;;  %v14019_v1 = vmul.f32 %v11044_v30, %v13836_v27  ;;  %v14022_v2 = vmul.f32 %v11044_v30, %v13839_v11  ;;  %v14025_v34 = vmul.f32 %v11044_v30, %v13842_v63 }
 0x7cb   : > { %v7857_v36 = vmax.f32 %v7825_v50, 0.0  ;;  %v14028_v3 = vmul.f32 %v11044_v30, %v13845_v29  ;;  %v14031_v31 = vmul.f32 %v11044_v30, %v13848_v52  ;;  %v14034_v45 = vmul.f32 %v11044_v30, %v13851_v54  ;;  %v14706_v29 = vld [vmem:[#allocation52_spill] sm:$0xff] }
 0x7cc   : > { %v14037_v46 = vmul.f32 %v11044_v30, %v13854_v42  ;;  %v14040_v27 = vmul.f32 %v11044_v30, %v13857_v56  ;;  %v14043_v11 = vmul.f32 %v11044_v30, %v13860_v10  ;;  %v14046_v63 = vmul.f32 %v11044_v30, %v13863_v49 }
 0x7cd   : > { %v7889_v60 = vadd.f32 %v7857_v36, %v14706_v29  ;;  %v14050_v52 = vmul.f32 %v11044_v30, %v13866_v9  ;;  %v14053_v54 = vmul.f32 %v11044_v30, %v13869_v57  ;;  %v14056_v42 = vmul.f32 %v11044_v30, %v13872_v41 }
 0x7ce   : > { %v14059_v56 = vmul.f32 %v11044_v30, %v13875_v7  ;;  %v14062_v10 = vmul.f32 %v11044_v30, %v13878_v59  ;;  %v14065_v49 = vmul.f32 %v11044_v30, %v13881_v5  ;;  %v14068_v16 = vmul.f32 %v11044_v30, %v13884_v28 }
 0x7cf   : > { %v7921_v9 = vmax.f32 %v7889_v60, 0.0  ;;  %v14071_v19 = vmul.f32 %v11044_v30, %v13887_v25  ;;  %v14074_v57 = vmul.f32 %v11044_v30, %v13889_v12  ;;  %v14077_v41 = vmul.f32 %v11044_v30, %v13891_v48  ;;  %v14714_v60 = vld [vmem:[#allocation21_spill] sm:$0xff] }
 0x7d0   : > { %v14080_v7 = vmul.f32 %v11044_v30, %v13893_v17  ;;  %v14083_v59 = vmul.f32 %v11044_v30, %v13895_v26  ;;  %v14086_v5 = vmul.f32 %v11044_v30, %v13897_v43  ;;  %v14089_v28 = vmul.f32 %v11044_v30, %v13899_v62 }
 0x7d1   : > { %7953 = vst.msk [vmem:[%s14093_s18 + $0xf0] sm:$0xff] %vm250_vm0, %v7921_v9  ;;  %v14098_v25 = vmul.f32 %v11044_v30, %v13901_v35  ;;  %v14101_v12 = vmul.f32 %v11044_v30, %v13903_v44  ;;  %v14104_v48 = vmul.f32 %v11044_v30, %v13907_v33  ;;  %v7827_v17 = vmax.f32 %v14007_v39, 0.0  ;;  %v14718_v9 = vld [vmem:[#allocation25_spill] sm:$0xff] }
 0x7d2   : > { %v7828_v26 = vmax.f32 %v14010_v55, 0.0  ;;  %v7829_v43 = vmax.f32 %v14013_v58, 0.0  ;;  %v7830_v62 = vmax.f32 %v14016_v0, 0.0  ;;  %v7831_v22 = vmax.f32 %v14019_v1, 0.0  ;;  %v14707_v58 = vld [vmem:[#allocation14_spill] sm:$0xff]  ;;  %v14708_v1 = vld [vmem:[#allocation15_spill] sm:$0xff] }
 0x7d3   : > { %v7832_v8 = vmax.f32 %v14022_v2, 0.0  ;;  %v7833_v35 = vmax.f32 %v14025_v34, 0.0  ;;  %v7834_v44 = vmax.f32 %v14028_v3, 0.0  ;;  %v7835_v4 = vmax.f32 %v14031_v31, 0.0  ;;  %v14709_v34 = vld [vmem:[#allocation16_spill] sm:$0xff]  ;;  %v14710_v3 = vld [vmem:[#allocation17_spill] sm:$0xff] }
 0x7d4   : > { %v7836_v33 = vmax.f32 %v14034_v45, 0.0  ;;  %v7837_v6 = vmax.f32 %v14037_v46, 0.0  ;;  %v7838_v21 = vmax.f32 %v14040_v27, 0.0  ;;  %v7839_v15 = vmax.f32 %v14043_v11, 0.0  ;;  %v14711_v45 = vld [vmem:[#allocation18_spill] sm:$0xff]  ;;  %v14712_v27 = vld [vmem:[#allocation19_spill] sm:$0xff] }
 0x7d5   : > { %v7840_v38 = vmax.f32 %v14046_v63, 0.0  ;;  %v7841_v40 = vmax.f32 %v14050_v52, 0.0  ;;  %v7842_v51 = vmax.f32 %v14053_v54, 0.0  ;;  %v7843_v61 = vmax.f32 %v14056_v42, 0.0  ;;  %v14713_v63 = vld [vmem:[#allocation20_spill] sm:$0xff]  ;;  %v14715_v54 = vld [vmem:[#allocation22_spill] sm:$0xff] }
 0x7d6   : > { %v7844_v24 = vmax.f32 %v14059_v56, 0.0  ;;  %v7845_v23 = vmax.f32 %v14062_v10, 0.0  ;;  %v7846_v32 = vmax.f32 %v14065_v49, 0.0  ;;  %v7847_v53 = vmax.f32 %v14068_v16, 0.0  ;;  %v14716_v56 = vld [vmem:[#allocation23_spill] sm:$0xff]  ;;  %v14717_v49 = vld [vmem:[#allocation24_spill] sm:$0xff] }
 0x7d7   : > { %v7848_v13 = vmax.f32 %v14071_v19, 0.0  ;;  %v7849_v18 = vmax.f32 %v14074_v57, 0.0  ;;  %v7850_v20 = vmax.f32 %v14077_v41, 0.0  ;;  %v7851_v47 = vmax.f32 %v14080_v7, 0.0  ;;  %v14719_v57 = vld [vmem:[#allocation26_spill] sm:$0xff]  ;;  %v14720_v7 = vld [vmem:[#allocation27_spill] sm:$0xff] }
 0x7d8   : > { %v7852_v14 = vmax.f32 %v14083_v59, 0.0  ;;  %v7853_v37 = vmax.f32 %v14086_v5, 0.0  ;;  %v7854_v30 = vmax.f32 %v14089_v28, 0.0  ;;  %v7855_v50 = vmax.f32 %v14098_v25, 0.0  ;;  %v14721_v5 = vld [vmem:[#allocation28_spill] sm:$0xff]  ;;  %v14722_v25 = vld [vmem:[#allocation29_spill] sm:$0xff] }
 0x7d9   : > { %v7856_v39 = vmax.f32 %v14101_v12, 0.0  ;;  %v7858_v55 = vmax.f32 %v14104_v48, 0.0  ;;  %v7859_v0 = vadd.f32 %v7827_v17, %v14707_v58  ;;  %v7860_v2 = vadd.f32 %v7828_v26, %v14708_v1  ;;  %v14723_v48 = vld [vmem:[#allocation30_spill] sm:$0xff]  ;;  %v14724_v26 = vld [vmem:[#allocation31_spill] sm:$0xff] }
 0x7da   : > { %v7861_v36 = vadd.f32 %v7829_v43, %v14709_v34  ;;  %v7862_v31 = vadd.f32 %v7830_v62, %v14710_v3  ;;  %v7863_v46 = vadd.f32 %v7831_v22, %v14711_v45  ;;  %v7864_v11 = vadd.f32 %v7832_v8, %v14712_v27  ;;  %v14725_v62 = vld [vmem:[#allocation32_spill] sm:$0xff]  ;;  %v14726_v8 = vld [vmem:[#allocation33_spill] sm:$0xff]  ;;  %v14736_v34 = vld [vmem:[#allocation43_spill] sm:$0xff] }
 0x7db   : > { %v7865_v29 = vadd.f32 %v7833_v35, %v14713_v63  ;;  %v7866_v52 = vadd.f32 %v7834_v44, %v14714_v60  ;;  %v7867_v42 = vadd.f32 %v7835_v4, %v14715_v54  ;;  %v7868_v10 = vadd.f32 %v7836_v33, %v14716_v56  ;;  %v14727_v44 = vld [vmem:[#allocation34_spill] sm:$0xff]  ;;  %v14728_v33 = vld [vmem:[#allocation35_spill] sm:$0xff] }
 0x7dc   : > { %v7869_v16 = vadd.f32 %v7837_v6, %v14717_v49  ;;  %v7870_v19 = vadd.f32 %v7838_v21, %v14718_v9  ;;  %v7871_v41 = vadd.f32 %v7839_v15, %v14719_v57  ;;  %v7872_v59 = vadd.f32 %v7840_v38, %v14720_v7  ;;  %v14729_v21 = vld [vmem:[#allocation36_spill] sm:$0xff]  ;;  %v14730_v38 = vld [vmem:[#allocation37_spill] sm:$0xff] }
 0x7dd   : > { %v7873_v28 = vadd.f32 %v7841_v40, %v14721_v5  ;;  %v7874_v12 = vadd.f32 %v7842_v51, %v14722_v25  ;;  %v7875_v17 = vadd.f32 %v7843_v61, %v14723_v48  ;;  %v7876_v43 = vadd.f32 %v7844_v24, %v14724_v26  ;;  %v14731_v51 = vld [vmem:[#allocation38_spill] sm:$0xff]  ;;  %v14732_v24 = vld [vmem:[#allocation39_spill] sm:$0xff] }
 0x7de   : > { %v7877_v22 = vadd.f32 %v7845_v23, %v14725_v62  ;;  %v14157_v35 = vadd.f32 %v7846_v32, %v14726_v8  ;;  %v14160_v4 = vadd.f32 %v7847_v53, %v14727_v44  ;;  %v14163_v6 = vadd.f32 %v7848_v13, %v14728_v33  ;;  %v14733_v32 = vld [vmem:[#allocation40_spill] sm:$0xff]  ;;  %v14734_v53 = vld [vmem:[#allocation41_spill] sm:$0xff]  ;;  %v14735_v13 = vld [vmem:[#allocation42_spill] sm:$0xff] }
 0x7df   : > { %v14166_v15 = vadd.f32 %v7849_v18, %v14729_v21  ;;  %v14169_v40 = vadd.f32 %v7850_v20, %v14730_v38  ;;  %v14172_v61 = vadd.f32 %v7851_v47, %v14731_v51  ;;  %v14175_v23 = vadd.f32 %v7852_v14, %v14732_v24  ;;  %v14737_v47 = vld [vmem:[#allocation53_spill] sm:$0xff] }
 0x7e0   : > { %v14178_v58 = vadd.f32 %v7853_v37, %v14733_v32  ;;  %v14181_v1 = vadd.f32 %v7854_v30, %v14734_v53  ;;  %v14184_v18 = vadd.f32 %v7855_v50, %v14735_v13  ;;  %v14187_v20 = vadd.f32 %v7856_v39, %v14736_v34 }
 0x7e1   : > { %v14190_v3 = vadd.f32 %v7858_v55, %v14737_v47  ;;  %v7891_v14 = vmax.f32 %v7859_v0, 0.0  ;;  %v7892_v45 = vmax.f32 %v7860_v2, 0.0  ;;  %v7893_v27 = vmax.f32 %v7861_v36, 0.0 }
 0x7e2   : > { %v7894_v37 = vmax.f32 %v7862_v31, 0.0  ;;  %v7895_v63 = vmax.f32 %v7863_v46, 0.0  ;;  %v7896_v30 = vmax.f32 %v7864_v11, 0.0  ;;  %v7897_v60 = vmax.f32 %v7865_v29, 0.0 }
 0x7e3   : > { %v7898_v50 = vmax.f32 %v7866_v52, 0.0  ;;  %v7899_v54 = vmax.f32 %v7867_v42, 0.0  ;;  %v7900_v39 = vmax.f32 %v7868_v10, 0.0  ;;  %v7901_v56 = vmax.f32 %v7869_v16, 0.0  ;;  %7923 = vst.msk [vmem:[%s14093_s18] sm:$0xff] %vm250_vm0, %v7891_v14  ;;  %7924 = vst.msk [vmem:[%s14093_s18 + $0x8] sm:$0xff] %vm250_vm0, %v7892_v45 }
 0x7e4   : > { %7925 = vst.msk [vmem:[%s14093_s18 + $0x10] sm:$0xff] %vm250_vm0, %v7893_v27  ;;  %v7902_v55 = vmax.f32 %v7870_v19, 0.0  ;;  %v7903_v0 = vmax.f32 %v7871_v41, 0.0  ;;  %v7904_v2 = vmax.f32 %v7872_v59, 0.0  ;;  %v7905_v36 = vmax.f32 %v7873_v28, 0.0  ;;  %7926 = vst.msk [vmem:[%s14093_s18 + $0x18] sm:$0xff] %vm250_vm0, %v7894_v37 }
 0x7e5   : > { %7927 = vst.msk [vmem:[%s14093_s18 + $0x20] sm:$0xff] %vm250_vm0, %v7895_v63  ;;  %7928 = vst.msk [vmem:[%s14093_s18 + $0x28] sm:$0xff] %vm250_vm0, %v7896_v30  ;;  %v7906_v31 = vmax.f32 %v7874_v12, 0.0  ;;  %v7907_v46 = vmax.f32 %v7875_v17, 0.0  ;;  %v7908_v11 = vmax.f32 %v7876_v43, 0.0  ;;  %v7909_v29 = vmax.f32 %v7877_v22, 0.0 }
 0x7e6   : > { %7929 = vst.msk [vmem:[%s14093_s18 + $0x30] sm:$0xff] %vm250_vm0, %v7897_v60  ;;  %7930 = vst.msk [vmem:[%s14093_s18 + $0x38] sm:$0xff] %vm250_vm0, %v7898_v50  ;;  %v7910_v52 = vmax.f32 %v14157_v35, 0.0  ;;  %v7911_v42 = vmax.f32 %v14160_v4, 0.0  ;;  %v7912_v10 = vmax.f32 %v14163_v6, 0.0  ;;  %v7913_v49 = vmax.f32 %v14166_v15, 0.0 }
 0x7e7   : > { %7931 = vst.msk [vmem:[%s14093_s18 + $0x40] sm:$0xff] %vm250_vm0, %v7899_v54  ;;  %7932 = vst.msk [vmem:[%s14093_s18 + $0x48] sm:$0xff] %vm250_vm0, %v7900_v39  ;;  %v7914_v16 = vmax.f32 %v14169_v40, 0.0  ;;  %v7915_v9 = vmax.f32 %v14172_v61, 0.0  ;;  %v7916_v19 = vmax.f32 %v14175_v23, 0.0  ;;  %v7917_v57 = vmax.f32 %v14178_v58, 0.0 }
 0x7e8   : > { %7933 = vst.msk [vmem:[%s14093_s18 + $0x50] sm:$0xff] %vm250_vm0, %v7901_v56  ;;  %7934 = vst.msk [vmem:[%s14093_s18 + $0x58] sm:$0xff] %vm250_vm0, %v7902_v55  ;;  %v7918_v41 = vmax.f32 %v14181_v1, 0.0  ;;  %v7919_v7 = vmax.f32 %v14184_v18, 0.0  ;;  %v7920_v59 = vmax.f32 %v14187_v20, 0.0  ;;  %v7922_v5 = vmax.f32 %v14190_v3, 0.0 }
 0x7e9   : > { %7935 = vst.msk [vmem:[%s14093_s18 + $0x60] sm:$0xff] %vm250_vm0, %v7903_v0  ;;  %7936 = vst.msk [vmem:[%s14093_s18 + $0x68] sm:$0xff] %vm250_vm0, %v7904_v2 }
 0x7ea   : > { %7937 = vst.msk [vmem:[%s14093_s18 + $0x70] sm:$0xff] %vm250_vm0, %v7905_v36  ;;  %7938 = vst.msk [vmem:[%s14093_s18 + $0x78] sm:$0xff] %vm250_vm0, %v7906_v31 }
 0x7eb   : > { %7939 = vst.msk [vmem:[%s14093_s18 + $0x80] sm:$0xff] %vm250_vm0, %v7907_v46  ;;  %7940 = vst.msk [vmem:[%s14093_s18 + $0x88] sm:$0xff] %vm250_vm0, %v7908_v11 }
 0x7ec   : > { %7941 = vst.msk [vmem:[%s14093_s18 + $0x90] sm:$0xff] %vm250_vm0, %v7909_v29  ;;  %7942 = vst.msk [vmem:[%s14093_s18 + $0x98] sm:$0xff] %vm250_vm0, %v7910_v52 }
 0x7ed   : > { %7943 = vst.msk [vmem:[%s14093_s18 + $0xa0] sm:$0xff] %vm250_vm0, %v7911_v42  ;;  %7944 = vst.msk [vmem:[%s14093_s18 + $0xa8] sm:$0xff] %vm250_vm0, %v7912_v10 }
 0x7ee   : > { %7945 = vst.msk [vmem:[%s14093_s18 + $0xb0] sm:$0xff] %vm250_vm0, %v7913_v49  ;;  %7946 = vst.msk [vmem:[%s14093_s18 + $0xb8] sm:$0xff] %vm250_vm0, %v7914_v16 }
 0x7ef   : > { %7947 = vst.msk [vmem:[%s14093_s18 + $0xc0] sm:$0xff] %vm250_vm0, %v7915_v9  ;;  %7948 = vst.msk [vmem:[%s14093_s18 + $0xc8] sm:$0xff] %vm250_vm0, %v7916_v19 }
 0x7f0   : > { %7949 = vst.msk [vmem:[%s14093_s18 + $0xd0] sm:$0xff] %vm250_vm0, %v7917_v57  ;;  %7950 = vst.msk [vmem:[%s14093_s18 + $0xd8] sm:$0xff] %vm250_vm0, %v7918_v41 }
 0x7f1   : > { %7951 = vst.msk [vmem:[%s14093_s18 + $0xe0] sm:$0xff] %vm250_vm0, %v7919_v7  ;;  %7952 = vst.msk [vmem:[%s14093_s18 + $0xe8] sm:$0xff] %vm250_vm0, %v7920_v59 }
 0x7f2   : > { %7954 = vst.msk [vmem:[%s14093_s18 + $0xf8] sm:$0xff] %vm250_vm0, %v7922_v5 }
 0x7f3   : > { %11144 = shalt.err (!%p11141_p1)
}
 0x7f4   : > { %s11145_s10 = scalar_lea.hbm %s14243_s24, 4096  ;;  %s11149_s26 = scalar_lea.hbm %s14320_s3, 8192 }
 0x7f5   : > { %p11146_p13 = scmp.ne.s32.totalorder %s14243_s24, %s11145_s10  ;;  %p11150_p4 = scmp.lt.u32.totalorder %s14243_s24, %s14320_s3 }
 0x7f6   : > { %p11151_p5 = scmp.lt.u32.totalorder %s11149_s26, %s11145_s10  ;;  %p11153_p11 = scmp.lt.u32.totalorder %s11145_s10, %s14243_s24 }
 0x7f7   : > { %p11147_p6 = pnand %p11146_p13, %p14738_p0 }
 0x7f8   : > { %p11152_p8 = por %p11151_p5, %p11150_p4 }
 0x7f9   : > { %p11148_p10 = pneg %p11147_p6 }
 0x7fa   : > { %p11154_p2 = por %p11153_p11, %p11152_p8 }
 0x7fc   : > { %p11155_p3 = pnand %p11154_p2, %p11148_p10 }
 0x7fe   : > { %11158 = shalt.err (!%p11155_p3)
}
 0x7ff   : > { %s11210_s28 = smov 128   ;;  %s11211_s18 = smov 8  }
 0x800   : > { %10979 = dma.vmem_to_hbm [thread:$0]  (%p14738_p0), %s14245_s7, 4096, %s14243_s24, %s7956_s27, %s11210_s28, %s11210_s28, %s11211_s18  }
 0x801 PF: > { %s7984_s20 = sand.u32 1, %s11189_s12   ;;  %p14739_p7 = scmp.ne.s32.totalorder %s14488_s19, 0 }
 0x802   : > { %p14740_p9 = scmp.ge.s32.totalorder %s11201_s15, 2  ;;  %s7985_s16 = scalar_lea.sflag [#allocation6], %s7984_s20 }
 0x804   : > { %p10993_p12 = pnand %p14740_p9, %p14739_p7 }
 0x806   : > { %11184 = dma.done.wait (!%p10993_p12), %s7985_s16, 4096  }
 0x807   : > { %11186 = vsyncadd (!%p10993_p12), %s7985_s16, 4294963200  ;;  %p17_p1 = scmp.ge.s32.totalorder %s11348_s23, 4   ;;  %s14741_s12 = smov %s11193_s13 }
 0x808   : > { %s14742_s13 = smov %s11197_s14  ;;  %s14743_s14 = smov %s11364_s9 }
 0x809   : > { %s14744_s15 = smov %s11348_s23  ;;  %19 = sbr.rel (!%p17_p1) target bundleno = 6 (0x6), region = 105 }
 0x810   :  { %7990 = vsyncpa [#allocation5], 1 }
 0x811   :  { %7992 = vsyncpa [#allocation5 + $0x1], 1 }
 0x812   :  { %7993 = vsyncpa [#allocation8], 1 }
 0x813   :  { %7994 = vsyncpa [#allocation6], 1 }
 0x814   :  { %7996 = vsyncpa [#allocation6 + $0x1], 1 }

</bundles_post_ra>
